<compile_context>
chip_gen: v7x
topology: tpu7x:2x2x1
jax: 0.10.0
libtpu: 0.0.40
codegen_flags: <defaults>
</compile_context>

<pallas_src>
import jax
import jax.numpy as jnp
from jax.experimental import pallas as pl
from jax.experimental.pallas import tpu as pltpu


def _silu(z):
    return z * jax.nn.sigmoid(z)


def _round_up(v: int, m: int) -> int:
    return ((v + m - 1) // m) * m


def net3d_kernel(
    edge_dist_ref,   # [E, 1]     f32
    pair_oh_ref,     # [2E, N]    bf16  rows [0:E)=src one-hot, [E:2E)=dst
    dst_oh_t_ref,    # [N, E]     bf16  scatter operand (pre-transposed)
    batch_oh_ref,    # [B, N]     f32
    batch_oh_t_ref,  # [N, B]     f32
    wm1_ref,         # [L, 3H, H] f32   message-net layer-1 weights
    w_hh_ref,        # [L, 3, H, H] f32 0=wm2, 1=wu1, 2=wu2
    pl_vec_ref,      # [L, 6, H]  f32   0=bm1 1=bm2 2=bu1 3=bu2 4=ws 5=bs(bcast)
    g_vec_ref,       # [7, H]     f32   0=node_emb 1=we 2=be 3=bn1 4=bn2 5=bo1 6=bo2(pad)
    g_mat_ref,       # [3, H, H]  f32   0=wn1 1=wn2 2=wo2(pad to HxH)
    wo1_ref,         # [3H, H]    f32   readout layer-1 weight
    out_ref,         # [B, T]     f32
    max_scratch,     # [B_pad, H] f32   VMEM scratch for per-graph max rows
):
    f32 = jnp.float32
    bf16 = jnp.bfloat16
    E = edge_dist_ref.shape[0]
    B, N = batch_oh_ref.shape
    H = wo1_ref.shape[1]
    L = wm1_ref.shape[0]
    T = out_ref.shape[1]

    g_vec = g_vec_ref[...]                              # [7, H]
    node_emb = g_vec[0:1, :]
    we, be = g_vec[1:2, :], g_vec[2:3, :]
    bn1, bn2 = g_vec[3:4, :], g_vec[4:5, :]
    bo1, bo2 = g_vec[5:6, :], g_vec[6:7, :T]

    # use_node_features=False: every node starts from the learned embedding.
    x = jnp.broadcast_to(node_emb, (N, H))

    # edge_input MLP (layers=1: Linear(1->H) + SiLU) followed by the extra
    # F.silu applied in Net3D.forward. fourier_encodings=0 -> raw distance.
    e = edge_dist_ref[...] * we + be                    # [E,1]*[1,H] -> [E,H]
    e = _silu(_silu(e))

    pair_oh = pair_oh_ref[...]                          # [2E, N] bf16 (loop-invariant)
    dst_oh_t = dst_oh_t_ref[...]                        # [N, E]  bf16 (loop-invariant)

    for l in range(L):                                  # propagation_depth, unrolled
        vecs = pl_vec_ref[l]                            # [6, H]
        bm1, bm2 = vecs[0:1, :], vecs[1:2, :]
        bu1, bu2 = vecs[2:3, :], vecs[3:4, :]
        ws, bs = vecs[4:5, :], vecs[5:6, 0:1]

        # Fused endpoint gather: one bf16 MXU matmul for both x_j and x_i.
        xj_xi = jnp.dot(pair_oh, x.astype(bf16), preferred_element_type=f32)  # [2E,H]

        # Message net layer 1: 3H = 96 <= 128 lanes -> one matmul over the lane
        # concat instead of three split dots (review item 3).
        m_in = jnp.concatenate([xj_xi[:E], xj_xi[E:], e], axis=-1)            # [E,3H]
        m = _silu(jnp.dot(m_in, wm1_ref[l], preferred_element_type=f32) + bm1)
        m = _silu(jnp.dot(m, w_hh_ref[l, 0, :, :], preferred_element_type=f32) + bm2)

        # in-place `edge_attr += message` of the PyTorch layer (persists across layers)
        e = e + m

        # soft edge gate: sigmoid(Linear(H->1)) -- cross-lane reduce stays on XLU
        gate = jax.nn.sigmoid(jnp.sum(m * ws, axis=-1, keepdims=True) + bs)   # [E,1]

        # scatter-sum onto target nodes via pre-transposed one-hot (plain dot)
        agg = jnp.dot(dst_oh_t, (m * gate).astype(bf16),
                      preferred_element_type=f32)                              # [N,H]

        # update network (Linear+SiLU, Linear) with two residual connections
        inp = agg + x
        h = _silu(jnp.dot(inp, w_hh_ref[l, 1, :, :], preferred_element_type=f32) + bu1)
        h = jnp.dot(h, w_hh_ref[l, 2, :, :], preferred_element_type=f32) + bu2
        x = h + x

    # node-wise output network (layers=2, last_activation='None')
    x = _silu(jnp.dot(x, g_mat_ref[0, :, :], preferred_element_type=f32) + bn1)
    x = jnp.dot(x, g_mat_ref[1, :, :], preferred_element_type=f32) + bn2

    # readout aggregators: ['sum', 'mean', 'max'] per graph (f32 for accuracy)
    boh = batch_oh_ref[...]                                       # [B,N]
    boh_t = batch_oh_t_ref[...]                                   # [N,B]
    sums = jnp.dot(boh, x, preferred_element_type=f32)            # [B,H]
    counts = jnp.sum(boh, axis=-1, keepdims=True)                 # [B,1]
    inv_counts = pl.reciprocal(jnp.maximum(counts, 1.0), approx=True)  # EUP slot
    means = sums * inv_counts                                     # empty-graph safe

    # per-graph max: masked 2-D reductions written row-by-row into VMEM scratch
    # (no [B,N,H] broadcast, no concatenate of [1,H] rows).
    for b in range(B):
        mask_b = boh_t[:, b:b + 1] > 0.0                          # [N,1]
        masked = jnp.where(mask_b, x, -1e30)                      # sentinel kept f32
        max_scratch[b:b + 1, :] = jnp.max(masked, axis=0, keepdims=True)
    maxs = max_scratch[0:B, :]
    maxs = jnp.where(counts > 0.0, maxs, 0.0)                     # empty-graph guard

    # output MLP: Linear -> BatchNorm1d(eval, fresh running stats) -> ReLU -> Linear
    # readout concat is only 3H = 96 lanes -> single readout layer-1 matmul.
    readout = jnp.concatenate([sums, means, maxs], axis=-1)       # [B,3H]
    h = jnp.dot(readout, wo1_ref[...], preferred_element_type=f32) + bo1
    # TODO(synk): BN uses freshly-initialized running stats (mean=0, var=1,
    # gamma=1, beta=0); a trained checkpoint's stats must be passed in.
    h = h * (1.0 / jnp.sqrt(1.0 + 1e-5))
    h = jnp.maximum(h, 0.0)
    out = jnp.dot(h, g_mat_ref[2, :, :], preferred_element_type=f32)[:, :T] + bo2
    out_ref[...] = out.astype(out_ref.dtype)


def net3d_forward(params, edge_dist, src_oh, dst_oh, batch_oh, target_dim):
    f32 = jnp.float32
    bf16 = jnp.bfloat16
    H = params["node_emb"].shape[1]
    L = params["wm1"].shape[0]
    T = target_dim
    assert T <= H, "wo2/bo2 lane-padding assumes target_dim <= hidden_dim"

    E0, N0 = src_oh.shape
    B = batch_oh.shape[0]
    # Sublane-align E and N so the in-kernel [2E,H]->[E,H]+[E,H] split and the
    # gather/scatter tiles need no retile copies. Padded edges/nodes are inert:
    # zero one-hot rows/cols keep them out of scatter and readout.
    E = _round_up(E0, 8)
    N = _round_up(N0, 8)
    if (E, N) != (E0, N0):
        edge_dist = jnp.pad(edge_dist, ((0, E - E0), (0, 0)))
        src_oh = jnp.pad(src_oh, ((0, E - E0), (0, N - N0)))
        dst_oh = jnp.pad(dst_oh, ((0, E - E0), (0, N - N0)))
        batch_oh = jnp.pad(batch_oh, ((0, 0), (0, N - N0)))

    # Host-side (loop-invariant) layout prep.
    pair_oh = jnp.concatenate([src_oh, dst_oh], axis=0).astype(bf16)     # [2E, N]
    dst_oh_t = dst_oh.T.astype(bf16)                                     # [N, E]
    batch_oh_t = batch_oh.T                                              # [N, B]

    # Pack the ~30 tiny weight/bias tensors into 6 stacked arrays (each separate
    # input would pad to a full (8,128) tile and cost its own DMA descriptor).
    w_hh = jnp.stack([params["wm2"], params["wu1"], params["wu2"]], axis=1)  # [L,3,H,H]
    bs_row = jnp.broadcast_to(params["bs"], (L, 1, H))
    pl_vec = jnp.concatenate(
        [params["bm1"], params["bm2"], params["bu1"], params["bu2"],
         params["ws"], bs_row], axis=1)                                      # [L,6,H]
    bo2_pad = jnp.pad(params["bo2"], ((0, 0), (0, H - T)))
    g_vec = jnp.concatenate(
        [params["node_emb"], params["we"], params["be"], params["bn1"],
         params["bn2"], params["bo1"], bo2_pad], axis=0)                     # [7,H]
    wo2_pad = jnp.pad(params["wo2"], ((0, 0), (0, H - T)))
    g_mat = jnp.stack([params["wn1"], params["wn2"], wo2_pad], axis=0)       # [3,H,H]

    ordered = [edge_dist, pair_oh, dst_oh_t, batch_oh, batch_oh_t,
               params["wm1"], w_hh, pl_vec, g_vec, g_mat, params["wo1"]]

    flops = int(
        L * (2 * (2 * E) * N * H            # fused endpoint gather
             + 2 * E * (3 * H) * H          # message net layer 1
             + 2 * E * H * H                # message net layer 2
             + 2 * N * E * H                # scatter-sum
             + 2 * 2 * N * H * H)           # update net
        + 2 * 2 * N * H * H                 # node-wise output net
        + 2 * B * N * H                     # readout sums
        + 2 * B * (3 * H) * H               # readout layer 1
        + 2 * B * H * H)                    # readout layer 2 (lane-padded)
    transcendentals = int(2 * E * H + L * (2 * E * H + E + N * H) + N * H + B)
    bytes_accessed = int(sum(int(a.size) * a.dtype.itemsize for a in ordered)
                         + B * T * 4)

    B_pad = max(8, _round_up(B, 8))
    vmem = pl.BlockSpec(memory_space=pltpu.MemorySpace.VMEM)
    return pl.pallas_call(
        net3d_kernel,
        out_shape=jax.ShapeDtypeStruct((B, T), f32),
        in_specs=[vmem] * len(ordered),
        out_specs=vmem,
        scratch_shapes=[pltpu.VMEM((B_pad, H), f32)],
        compiler_params=pltpu.CompilerParams(
            # Default scoped VMEM is only 16 MiB on v5e; raise explicitly.
            # TODO(synk): size against 128 MiB (v5e/v6e) vs 64 MiB (v7x) once
            # the kernel is gridded/tiled for production graph sizes.
            vmem_limit_bytes=32 * 1024 * 1024),
        cost_estimate=pl.CostEstimate(
            flops=flops, transcendentals=transcendentals,
            bytes_accessed=bytes_accessed),
    )(*ordered)


def net3d_reference(params, edge_dist, src_oh, dst_oh, batch_oh, bf16_graph_ops=True):
    """Pure-JAX reference. bf16_graph_ops=True mirrors the kernel's bf16 MXU
    operands for the gather/scatter matmuls; False is the original all-f32
    module semantics."""
    p = params
    f32 = jnp.float32
    gdt = jnp.bfloat16 if bf16_graph_ops else f32
    N = src_oh.shape[1]
    H = p["node_emb"].shape[1]
    L = p["wm1"].shape[0]
    silu = jax.nn.silu

    src_g = src_oh.astype(gdt)
    dst_g = dst_oh.astype(gdt)
    dst_gt = dst_oh.T.astype(gdt)

    x = jnp.broadcast_to(p["node_emb"], (N, H))
    e = silu(silu(edge_dist * p["we"] + p["be"]))
    for l in range(L):
        x_g = x.astype(gdt)
        x_j = jnp.dot(src_g, x_g, preferred_element_type=f32)
        x_i = jnp.dot(dst_g, x_g, preferred_element_type=f32)
        m_in = jnp.concatenate([x_j, x_i, e], axis=-1)
        m = silu(m_in @ p["wm1"][l] + p["bm1"][l])
        m = silu(m @ p["wm2"][l] + p["bm2"][l])
        e = e + m
        gate = jax.nn.sigmoid(jnp.sum(m * p["ws"][l], axis=-1, keepdims=True) + p["bs"][l])
        agg = jnp.dot(dst_gt, (m * gate).astype(gdt), preferred_element_type=f32)
        inp = agg + x
        h = silu(inp @ p["wu1"][l] + p["bu1"][l])
        h = h @ p["wu2"][l] + p["bu2"][l]
        x = h + x
    x = silu(x @ p["wn1"] + p["bn1"])
    x = x @ p["wn2"] + p["bn2"]
    sums = batch_oh @ x
    counts = jnp.sum(batch_oh, axis=-1, keepdims=True)
    means = sums / jnp.maximum(counts, 1.0)
    maxs = jnp.max(jnp.where(batch_oh[:, :, None] > 0, x[None, :, :], -1e30), axis=1)
    maxs = jnp.where(counts > 0, maxs, 0.0)
    readout = jnp.concatenate([sums, means, maxs], axis=-1)
    h = readout @ p["wo1"] + p["bo1"]
    h = jnp.maximum(h * (1.0 / jnp.sqrt(1.0 + 1e-5)), 0.0)
    return h @ p["wo2"] + p["bo2"]


def init_params(key, hidden, target, depth, n_aggr):
    keys = iter(jax.random.split(key, 64))

    def w(fan_in, shape):
        return (jax.random.normal(next(keys), shape, dtype=jnp.float32)
                / jnp.sqrt(float(fan_in)))

    H, T, L = hidden, target, depth
    p = {}
    p["node_emb"] = jax.random.normal(next(keys), (1, H), dtype=jnp.float32)
    p["we"] = w(1, (1, H));                 p["be"] = jnp.zeros((1, H), jnp.float32)
    p["wm1"] = w(3 * H, (L, 3 * H, H));     p["bm1"] = jnp.zeros((L, 1, H), jnp.float32)
    p["wm2"] = w(H, (L, H, H));             p["bm2"] = jnp.zeros((L, 1, H), jnp.float32)
    p["ws"] = w(H, (L, 1, H));              p["bs"] = jnp.zeros((L, 1, 1), jnp.float32)
    p["wu1"] = w(H, (L, H, H));             p["bu1"] = jnp.zeros((L, 1, H), jnp.float32)
    p["wu2"] = w(H, (L, H, H));             p["bu2"] = jnp.zeros((L, 1, H), jnp.float32)
    p["wn1"] = w(H, (H, H));                p["bn1"] = jnp.zeros((1, H), jnp.float32)
    p["wn2"] = w(H, (H, H));                p["bn2"] = jnp.zeros((1, H), jnp.float32)
    p["wo1"] = w(n_aggr * H, (n_aggr * H, H)); p["bo1"] = jnp.zeros((1, H), jnp.float32)
    p["wo2"] = w(H, (H, T));                p["bo2"] = jnp.zeros((1, T), jnp.float32)
    return p


if __name__ == "__main__":
    H, T, L = 32, 8, 4                 # hidden_dim, target_dim, propagation_depth
    N, E, B = 16, 32, 2                # nodes, edges, graphs
    AGGRS = ("sum", "mean", "max")

    key = jax.random.PRNGKey(0)
    kp, ks0, kd0, ks1, kd1, kdist = jax.random.split(key, 6)
    params = init_params(kp, H, T, L, len(AGGRS))

    # Two graphs of 8 nodes each; edges stay inside their own graph.
    src = jnp.concatenate([jax.random.randint(ks0, (E // 2,), 0, N // 2),
                           jax.random.randint(ks1, (E // 2,), N // 2, N)])
    dst = jnp.concatenate([jax.random.randint(kd0, (E // 2,), 0, N // 2),
                           jax.random.randint(kd1, (E // 2,), N // 2, N)])
    batch = jnp.concatenate([jnp.zeros((N // 2,), jnp.int32),
                             jnp.ones((N // 2,), jnp.int32)])
    edge_dist = jax.random.uniform(kdist, (E, 1), jnp.float32, 0.5, 5.0)

    # Express graph gather/scatter as dense one-hot matmuls (glue, plain JAX).
    src_oh = jax.nn.one_hot(src, N, dtype=jnp.float32)          # [E, N]
    dst_oh = jax.nn.one_hot(dst, N, dtype=jnp.float32)          # [E, N]
    batch_oh = jax.nn.one_hot(batch, B, dtype=jnp.float32).T    # [B, N]

    out = net3d_forward(params, edge_dist, src_oh, dst_oh, batch_oh, T)
    out = jax.block_until_ready(out)

    # Tight check against a reference that mirrors the kernel's bf16 graph-op casts.
    ref_matched = net3d_reference(params, edge_dist, src_oh, dst_oh, batch_oh,
                                  bf16_graph_ops=True)
    # Loose check against the original all-f32 module semantics (bf16 drift only).
    ref_f32 = net3d_reference(params, edge_dist, src_oh, dst_oh, batch_oh,
                              bf16_graph_ops=False)

    assert out.shape == (B, T)
    assert bool(jnp.all(jnp.isfinite(out)))
    assert bool(jnp.allclose(out, ref_matched, rtol=3e-3, atol=3e-3)), (out, ref_matched)
    assert bool(jnp.allclose(out, ref_f32, rtol=1e-1, atol=1e-1)), (out, ref_f32)
    print("KERNEL_OK")
</pallas_src>

<mosaic_0001>
module attributes {stable_mosaic.version = 11 : i64} {
  func.func @net3d_kernel(%arg0: memref<32x1xf32, #tpu.memory_space<vmem>>, %arg1: memref<64x16xbf16, #tpu.memory_space<vmem>>, %arg2: memref<16x32xbf16, #tpu.memory_space<vmem>>, %arg3: memref<2x16xf32, #tpu.memory_space<vmem>>, %arg4: memref<16x2xf32, #tpu.memory_space<vmem>>, %arg5: memref<4x96x32xf32, #tpu.memory_space<vmem>>, %arg6: memref<4x3x32x32xf32, #tpu.memory_space<vmem>>, %arg7: memref<4x6x32xf32, #tpu.memory_space<vmem>>, %arg8: memref<7x32xf32, #tpu.memory_space<vmem>>, %arg9: memref<3x32x32xf32, #tpu.memory_space<vmem>>, %arg10: memref<96x32xf32, #tpu.memory_space<vmem>>, %arg11: memref<2x8xf32, #tpu.memory_space<vmem>>, %arg12: memref<8x32xf32, #tpu.memory_space<vmem>>) attributes {dimension_semantics = [], scalar_prefetch = 0 : i64, scratch_operands = 1 : i64, tpu.core_type = #tpu.core_type<tc>} {
    %c0 = arith.constant 0 : index
    %c0_0 = arith.constant 0 : index
    %0 = vector.load %arg8[%c0, %c0_0] : memref<7x32xf32, #tpu.memory_space<vmem>>, vector<7x32xf32>
    %1 = vector.extract_strided_slice %0 {offsets = [0, 0], sizes = [1, 32], strides = [1, 1]} : vector<7x32xf32> to vector<1x32xf32>
    %2 = vector.extract_strided_slice %0 {offsets = [1, 0], sizes = [1, 32], strides = [1, 1]} : vector<7x32xf32> to vector<1x32xf32>
    %3 = vector.extract_strided_slice %0 {offsets = [2, 0], sizes = [1, 32], strides = [1, 1]} : vector<7x32xf32> to vector<1x32xf32>
    %4 = vector.extract_strided_slice %0 {offsets = [3, 0], sizes = [1, 32], strides = [1, 1]} : vector<7x32xf32> to vector<1x32xf32>
    %5 = vector.extract_strided_slice %0 {offsets = [4, 0], sizes = [1, 32], strides = [1, 1]} : vector<7x32xf32> to vector<1x32xf32>
    %6 = vector.extract_strided_slice %0 {offsets = [5, 0], sizes = [1, 32], strides = [1, 1]} : vector<7x32xf32> to vector<1x32xf32>
    %7 = vector.extract_strided_slice %0 {offsets = [6, 0], sizes = [1, 8], strides = [1, 1]} : vector<7x32xf32> to vector<1x8xf32>
    %8 = vector.shape_cast %1 : vector<1x32xf32> to vector<1x32xf32>
    %9 = vector.broadcast %8 : vector<1x32xf32> to vector<16x32xf32>
    %c0_1 = arith.constant 0 : index
    %c0_2 = arith.constant 0 : index
    %10 = vector.load %arg0[%c0_1, %c0_2] : memref<32x1xf32, #tpu.memory_space<vmem>>, vector<32x1xf32>
    %11 = vector.broadcast %10 : vector<32x1xf32> to vector<32x32xf32>
    %12 = vector.broadcast %2 : vector<1x32xf32> to vector<32x32xf32>
    %13 = arith.mulf %11, %12 : vector<32x32xf32>
    %14 = vector.broadcast %3 : vector<1x32xf32> to vector<32x32xf32>
    %15 = arith.addf %13, %14 : vector<32x32xf32>
    %16 = arith.negf %15 : vector<32x32xf32>
    %17 = math.exp %16 : vector<32x32xf32>
    %cst = arith.constant 1.000000e+00 : f32
    %18 = vector.broadcast %cst : f32 to vector<32x32xf32>
    %19 = arith.addf %18, %17 : vector<32x32xf32>
    %20 = arith.divf %18, %19 : vector<32x32xf32>
    %21 = arith.mulf %15, %20 : vector<32x32xf32>
    %22 = arith.negf %21 : vector<32x32xf32>
    %23 = math.exp %22 : vector<32x32xf32>
    %cst_3 = arith.constant 1.000000e+00 : f32
    %24 = vector.broadcast %cst_3 : f32 to vector<32x32xf32>
    %25 = arith.addf %24, %23 : vector<32x32xf32>
    %26 = arith.divf %24, %25 : vector<32x32xf32>
    %27 = arith.mulf %21, %26 : vector<32x32xf32>
    %c0_4 = arith.constant 0 : index
    %c0_5 = arith.constant 0 : index
    %28 = vector.load %arg1[%c0_4, %c0_5] : memref<64x16xbf16, #tpu.memory_space<vmem>>, vector<64x16xbf16>
    %c0_6 = arith.constant 0 : index
    %c0_7 = arith.constant 0 : index
    %29 = vector.load %arg2[%c0_6, %c0_7] : memref<16x32xbf16, #tpu.memory_space<vmem>>, vector<16x32xbf16>
    %c0_8 = arith.constant 0 : index
    %c0_9 = arith.constant 0 : index
    %c0_10 = arith.constant 0 : index
    %30 = vector.load %arg7[%c0_8, %c0_9, %c0_10] : memref<4x6x32xf32, #tpu.memory_space<vmem>>, vector<1x6x32xf32>
    %31 = vector.shape_cast %30 : vector<1x6x32xf32> to vector<6x32xf32>
    %32 = vector.extract_strided_slice %31 {offsets = [0, 0], sizes = [1, 32], strides = [1, 1]} : vector<6x32xf32> to vector<1x32xf32>
    %33 = vector.extract_strided_slice %31 {offsets = [1, 0], sizes = [1, 32], strides = [1, 1]} : vector<6x32xf32> to vector<1x32xf32>
    %34 = vector.extract_strided_slice %31 {offsets = [2, 0], sizes = [1, 32], strides = [1, 1]} : vector<6x32xf32> to vector<1x32xf32>
    %35 = vector.extract_strided_slice %31 {offsets = [3, 0], sizes = [1, 32], strides = [1, 1]} : vector<6x32xf32> to vector<1x32xf32>
    %36 = vector.extract_strided_slice %31 {offsets = [4, 0], sizes = [1, 32], strides = [1, 1]} : vector<6x32xf32> to vector<1x32xf32>
    %37 = vector.extract_strided_slice %31 {offsets = [5, 0], sizes = [1, 1], strides = [1, 1]} : vector<6x32xf32> to vector<1x1xf32>
    %38 = arith.truncf %9 : vector<16x32xf32> to vector<16x32xbf16>
    %cst_11 = arith.constant dense<0.000000e+00> : vector<64x32xf32>
    %39 = tpu.matmul %28, %38, %cst_11 {dimension_numbers = #tpu.dot_dimension_numbers<[1], [0], [0], [1], [0, 0, 1, 1], [], []>} : vector<64x16xbf16>, vector<16x32xbf16>, vector<64x32xf32> -> vector<64x32xf32>
    %40 = vector.extract_strided_slice %39 {offsets = [0, 0], sizes = [32, 32], strides = [1, 1]} : vector<64x32xf32> to vector<32x32xf32>
    %41 = vector.extract_strided_slice %39 {offsets = [32, 0], sizes = [32, 32], strides = [1, 1]} : vector<64x32xf32> to vector<32x32xf32>
    %42 = tpu.concatenate %40, %41, %27 in 1 : vector<32x32xf32>, vector<32x32xf32>, vector<32x32xf32> -> vector<32x96xf32>
    %c0_12 = arith.constant 0 : index
    %c0_13 = arith.constant 0 : index
    %c0_14 = arith.constant 0 : index
    %43 = vector.load %arg5[%c0_12, %c0_13, %c0_14] : memref<4x96x32xf32, #tpu.memory_space<vmem>>, vector<1x96x32xf32>
    %44 = vector.shape_cast %43 : vector<1x96x32xf32> to vector<96x32xf32>
    %cst_15 = arith.constant dense<0.000000e+00> : vector<32x32xf32>
    %45 = tpu.matmul %42, %44, %cst_15 {dimension_numbers = #tpu.dot_dimension_numbers<[1], [0], [0], [1], [0, 0, 1, 1], [], []>} : vector<32x96xf32>, vector<96x32xf32>, vector<32x32xf32> -> vector<32x32xf32>
    %46 = vector.broadcast %32 : vector<1x32xf32> to vector<32x32xf32>
    %47 = arith.addf %45, %46 : vector<32x32xf32>
    %48 = arith.negf %47 : vector<32x32xf32>
    %49 = math.exp %48 : vector<32x32xf32>
    %cst_16 = arith.constant 1.000000e+00 : f32
    %50 = vector.broadcast %cst_16 : f32 to vector<32x32xf32>
    %51 = arith.addf %50, %49 : vector<32x32xf32>
    %52 = arith.divf %50, %51 : vector<32x32xf32>
    %53 = arith.mulf %47, %52 : vector<32x32xf32>
    %c0_17 = arith.constant 0 : index
    %c0_18 = arith.constant 0 : index
    %c0_19 = arith.constant 0 : index
    %c0_20 = arith.constant 0 : index
    %54 = vector.load %arg6[%c0_17, %c0_18, %c0_19, %c0_20] : memref<4x3x32x32xf32, #tpu.memory_space<vmem>>, vector<1x1x32x32xf32>
    %55 = vector.shape_cast %54 : vector<1x1x32x32xf32> to vector<32x32xf32>
    %cst_21 = arith.constant dense<0.000000e+00> : vector<32x32xf32>
    %56 = tpu.matmul %53, %55, %cst_21 {dimension_numbers = #tpu.dot_dimension_numbers<[1], [0], [0], [1], [0, 0, 1, 1], [], []>} : vector<32x32xf32>, vector<32x32xf32>, vector<32x32xf32> -> vector<32x32xf32>
    %57 = vector.broadcast %33 : vector<1x32xf32> to vector<32x32xf32>
    %58 = arith.addf %56, %57 : vector<32x32xf32>
    %59 = arith.negf %58 : vector<32x32xf32>
    %60 = math.exp %59 : vector<32x32xf32>
    %cst_22 = arith.constant 1.000000e+00 : f32
    %61 = vector.broadcast %cst_22 : f32 to vector<32x32xf32>
    %62 = arith.addf %61, %60 : vector<32x32xf32>
    %63 = arith.divf %61, %62 : vector<32x32xf32>
    %64 = arith.mulf %58, %63 : vector<32x32xf32>
    %65 = arith.addf %27, %64 : vector<32x32xf32>
    %66 = vector.broadcast %36 : vector<1x32xf32> to vector<32x32xf32>
    %67 = arith.mulf %64, %66 : vector<32x32xf32>
    %cst_23 = arith.constant dense<0.000000e+00> : vector<32xf32>
    %68 = vector.multi_reduction <add>, %67, %cst_23 [1] : vector<32x32xf32> to vector<32xf32>
    %69 = vector.shape_cast %68 : vector<32xf32> to vector<32x1xf32>
    %70 = vector.broadcast %37 : vector<1x1xf32> to vector<32x1xf32>
    %71 = arith.addf %69, %70 : vector<32x1xf32>
    %72 = arith.negf %71 : vector<32x1xf32>
    %73 = math.exp %72 : vector<32x1xf32>
    %cst_24 = arith.constant 1.000000e+00 : f32
    %74 = vector.broadcast %cst_24 : f32 to vector<32x1xf32>
    %75 = arith.addf %74, %73 : vector<32x1xf32>
    %76 = arith.divf %74, %75 : vector<32x1xf32>
    %77 = vector.broadcast %76 : vector<32x1xf32> to vector<32x32xf32>
    %78 = arith.mulf %64, %77 : vector<32x32xf32>
    %79 = arith.truncf %78 : vector<32x32xf32> to vector<32x32xbf16>
    %cst_25 = arith.constant dense<0.000000e+00> : vector<16x32xf32>
    %80 = tpu.matmul %29, %79, %cst_25 {dimension_numbers = #tpu.dot_dimension_numbers<[1], [0], [0], [1], [0, 0, 1, 1], [], []>} : vector<16x32xbf16>, vector<32x32xbf16>, vector<16x32xf32> -> vector<16x32xf32>
    %81 = arith.addf %80, %9 : vector<16x32xf32>
    %c0_26 = arith.constant 0 : index
    %c1 = arith.constant 1 : index
    %c0_27 = arith.constant 0 : index
    %c0_28 = arith.constant 0 : index
    %82 = vector.load %arg6[%c0_26, %c1, %c0_27, %c0_28] : memref<4x3x32x32xf32, #tpu.memory_space<vmem>>, vector<1x1x32x32xf32>
    %83 = vector.shape_cast %82 : vector<1x1x32x32xf32> to vector<32x32xf32>
    %cst_29 = arith.constant dense<0.000000e+00> : vector<16x32xf32>
    %84 = tpu.matmul %81, %83, %cst_29 {dimension_numbers = #tpu.dot_dimension_numbers<[1], [0], [0], [1], [0, 0, 1, 1], [], []>} : vector<16x32xf32>, vector<32x32xf32>, vector<16x32xf32> -> vector<16x32xf32>
    %85 = vector.broadcast %34 : vector<1x32xf32> to vector<16x32xf32>
    %86 = arith.addf %84, %85 : vector<16x32xf32>
    %87 = arith.negf %86 : vector<16x32xf32>
    %88 = math.exp %87 : vector<16x32xf32>
    %cst_30 = arith.constant 1.000000e+00 : f32
    %89 = vector.broadcast %cst_30 : f32 to vector<16x32xf32>
    %90 = arith.addf %89, %88 : vector<16x32xf32>
    %91 = arith.divf %89, %90 : vector<16x32xf32>
    %92 = arith.mulf %86, %91 : vector<16x32xf32>
    %c0_31 = arith.constant 0 : index
    %c2 = arith.constant 2 : index
    %c0_32 = arith.constant 0 : index
    %c0_33 = arith.constant 0 : index
    %93 = vector.load %arg6[%c0_31, %c2, %c0_32, %c0_33] : memref<4x3x32x32xf32, #tpu.memory_space<vmem>>, vector<1x1x32x32xf32>
    %94 = vector.shape_cast %93 : vector<1x1x32x32xf32> to vector<32x32xf32>
    %cst_34 = arith.constant dense<0.000000e+00> : vector<16x32xf32>
    %95 = tpu.matmul %92, %94, %cst_34 {dimension_numbers = #tpu.dot_dimension_numbers<[1], [0], [0], [1], [0, 0, 1, 1], [], []>} : vector<16x32xf32>, vector<32x32xf32>, vector<16x32xf32> -> vector<16x32xf32>
    %96 = vector.broadcast %35 : vector<1x32xf32> to vector<16x32xf32>
    %97 = arith.addf %95, %96 : vector<16x32xf32>
    %98 = arith.addf %97, %9 : vector<16x32xf32>
    %c1_35 = arith.constant 1 : index
    %c0_36 = arith.constant 0 : index
    %c0_37 = arith.constant 0 : index
    %99 = vector.load %arg7[%c1_35, %c0_36, %c0_37] : memref<4x6x32xf32, #tpu.memory_space<vmem>>, vector<1x6x32xf32>
    %100 = vector.shape_cast %99 : vector<1x6x32xf32> to vector<6x32xf32>
    %101 = vector.extract_strided_slice %100 {offsets = [0, 0], sizes = [1, 32], strides = [1, 1]} : vector<6x32xf32> to vector<1x32xf32>
    %102 = vector.extract_strided_slice %100 {offsets = [1, 0], sizes = [1, 32], strides = [1, 1]} : vector<6x32xf32> to vector<1x32xf32>
    %103 = vector.extract_strided_slice %100 {offsets = [2, 0], sizes = [1, 32], strides = [1, 1]} : vector<6x32xf32> to vector<1x32xf32>
    %104 = vector.extract_strided_slice %100 {offsets = [3, 0], sizes = [1, 32], strides = [1, 1]} : vector<6x32xf32> to vector<1x32xf32>
    %105 = vector.extract_strided_slice %100 {offsets = [4, 0], sizes = [1, 32], strides = [1, 1]} : vector<6x32xf32> to vector<1x32xf32>
    %106 = vector.extract_strided_slice %100 {offsets = [5, 0], sizes = [1, 1], strides = [1, 1]} : vector<6x32xf32> to vector<1x1xf32>
    %107 = arith.truncf %98 : vector<16x32xf32> to vector<16x32xbf16>
    %cst_38 = arith.constant dense<0.000000e+00> : vector<64x32xf32>
    %108 = tpu.matmul %28, %107, %cst_38 {dimension_numbers = #tpu.dot_dimension_numbers<[1], [0], [0], [1], [0, 0, 1, 1], [], []>} : vector<64x16xbf16>, vector<16x32xbf16>, vector<64x32xf32> -> vector<64x32xf32>
    %109 = vector.extract_strided_slice %108 {offsets = [0, 0], sizes = [32, 32], strides = [1, 1]} : vector<64x32xf32> to vector<32x32xf32>
    %110 = vector.extract_strided_slice %108 {offsets = [32, 0], sizes = [32, 32], strides = [1, 1]} : vector<64x32xf32> to vector<32x32xf32>
    %111 = tpu.concatenate %109, %110, %65 in 1 : vector<32x32xf32>, vector<32x32xf32>, vector<32x32xf32> -> vector<32x96xf32>
    %c1_39 = arith.constant 1 : index
    %c0_40 = arith.constant 0 : index
    %c0_41 = arith.constant 0 : index
    %112 = vector.load %arg5[%c1_39, %c0_40, %c0_41] : memref<4x96x32xf32, #tpu.memory_space<vmem>>, vector<1x96x32xf32>
    %113 = vector.shape_cast %112 : vector<1x96x32xf32> to vector<96x32xf32>
    %cst_42 = arith.constant dense<0.000000e+00> : vector<32x32xf32>
    %114 = tpu.matmul %111, %113, %cst_42 {dimension_numbers = #tpu.dot_dimension_numbers<[1], [0], [0], [1], [0, 0, 1, 1], [], []>} : vector<32x96xf32>, vector<96x32xf32>, vector<32x32xf32> -> vector<32x32xf32>
    %115 = vector.broadcast %101 : vector<1x32xf32> to vector<32x32xf32>
    %116 = arith.addf %114, %115 : vector<32x32xf32>
    %117 = arith.negf %116 : vector<32x32xf32>
    %118 = math.exp %117 : vector<32x32xf32>
    %cst_43 = arith.constant 1.000000e+00 : f32
    %119 = vector.broadcast %cst_43 : f32 to vector<32x32xf32>
    %120 = arith.addf %119, %118 : vector<32x32xf32>
    %121 = arith.divf %119, %120 : vector<32x32xf32>
    %122 = arith.mulf %116, %121 : vector<32x32xf32>
    %c1_44 = arith.constant 1 : index
    %c0_45 = arith.constant 0 : index
    %c0_46 = arith.constant 0 : index
    %c0_47 = arith.constant 0 : index
    %123 = vector.load %arg6[%c1_44, %c0_45, %c0_46, %c0_47] : memref<4x3x32x32xf32, #tpu.memory_space<vmem>>, vector<1x1x32x32xf32>
    %124 = vector.shape_cast %123 : vector<1x1x32x32xf32> to vector<32x32xf32>
    %cst_48 = arith.constant dense<0.000000e+00> : vector<32x32xf32>
    %125 = tpu.matmul %122, %124, %cst_48 {dimension_numbers = #tpu.dot_dimension_numbers<[1], [0], [0], [1], [0, 0, 1, 1], [], []>} : vector<32x32xf32>, vector<32x32xf32>, vector<32x32xf32> -> vector<32x32xf32>
    %126 = vector.broadcast %102 : vector<1x32xf32> to vector<32x32xf32>
    %127 = arith.addf %125, %126 : vector<32x32xf32>
    %128 = arith.negf %127 : vector<32x32xf32>
    %129 = math.exp %128 : vector<32x32xf32>
    %cst_49 = arith.constant 1.000000e+00 : f32
    %130 = vector.broadcast %cst_49 : f32 to vector<32x32xf32>
    %131 = arith.addf %130, %129 : vector<32x32xf32>
    %132 = arith.divf %130, %131 : vector<32x32xf32>
    %133 = arith.mulf %127, %132 : vector<32x32xf32>
    %134 = arith.addf %65, %133 : vector<32x32xf32>
    %135 = vector.broadcast %105 : vector<1x32xf32> to vector<32x32xf32>
    %136 = arith.mulf %133, %135 : vector<32x32xf32>
    %cst_50 = arith.constant dense<0.000000e+00> : vector<32xf32>
    %137 = vector.multi_reduction <add>, %136, %cst_50 [1] : vector<32x32xf32> to vector<32xf32>
    %138 = vector.shape_cast %137 : vector<32xf32> to vector<32x1xf32>
    %139 = vector.broadcast %106 : vector<1x1xf32> to vector<32x1xf32>
    %140 = arith.addf %138, %139 : vector<32x1xf32>
    %141 = arith.negf %140 : vector<32x1xf32>
    %142 = math.exp %141 : vector<32x1xf32>
    %cst_51 = arith.constant 1.000000e+00 : f32
    %143 = vector.broadcast %cst_51 : f32 to vector<32x1xf32>
    %144 = arith.addf %143, %142 : vector<32x1xf32>
    %145 = arith.divf %143, %144 : vector<32x1xf32>
    %146 = vector.broadcast %145 : vector<32x1xf32> to vector<32x32xf32>
    %147 = arith.mulf %133, %146 : vector<32x32xf32>
    %148 = arith.truncf %147 : vector<32x32xf32> to vector<32x32xbf16>
    %cst_52 = arith.constant dense<0.000000e+00> : vector<16x32xf32>
    %149 = tpu.matmul %29, %148, %cst_52 {dimension_numbers = #tpu.dot_dimension_numbers<[1], [0], [0], [1], [0, 0, 1, 1], [], []>} : vector<16x32xbf16>, vector<32x32xbf16>, vector<16x32xf32> -> vector<16x32xf32>
    %150 = arith.addf %149, %98 : vector<16x32xf32>
    %c1_53 = arith.constant 1 : index
    %c1_54 = arith.constant 1 : index
    %c0_55 = arith.constant 0 : index
    %c0_56 = arith.constant 0 : index
    %151 = vector.load %arg6[%c1_53, %c1_54, %c0_55, %c0_56] : memref<4x3x32x32xf32, #tpu.memory_space<vmem>>, vector<1x1x32x32xf32>
    %152 = vector.shape_cast %151 : vector<1x1x32x32xf32> to vector<32x32xf32>
    %cst_57 = arith.constant dense<0.000000e+00> : vector<16x32xf32>
    %153 = tpu.matmul %150, %152, %cst_57 {dimension_numbers = #tpu.dot_dimension_numbers<[1], [0], [0], [1], [0, 0, 1, 1], [], []>} : vector<16x32xf32>, vector<32x32xf32>, vector<16x32xf32> -> vector<16x32xf32>
    %154 = vector.broadcast %103 : vector<1x32xf32> to vector<16x32xf32>
    %155 = arith.addf %153, %154 : vector<16x32xf32>
    %156 = arith.negf %155 : vector<16x32xf32>
    %157 = math.exp %156 : vector<16x32xf32>
    %cst_58 = arith.constant 1.000000e+00 : f32
    %158 = vector.broadcast %cst_58 : f32 to vector<16x32xf32>
    %159 = arith.addf %158, %157 : vector<16x32xf32>
    %160 = arith.divf %158, %159 : vector<16x32xf32>
    %161 = arith.mulf %155, %160 : vector<16x32xf32>
    %c1_59 = arith.constant 1 : index
    %c2_60 = arith.constant 2 : index
    %c0_61 = arith.constant 0 : index
    %c0_62 = arith.constant 0 : index
    %162 = vector.load %arg6[%c1_59, %c2_60, %c0_61, %c0_62] : memref<4x3x32x32xf32, #tpu.memory_space<vmem>>, vector<1x1x32x32xf32>
    %163 = vector.shape_cast %162 : vector<1x1x32x32xf32> to vector<32x32xf32>
    %cst_63 = arith.constant dense<0.000000e+00> : vector<16x32xf32>
    %164 = tpu.matmul %161, %163, %cst_63 {dimension_numbers = #tpu.dot_dimension_numbers<[1], [0], [0], [1], [0, 0, 1, 1], [], []>} : vector<16x32xf32>, vector<32x32xf32>, vector<16x32xf32> -> vector<16x32xf32>
    %165 = vector.broadcast %104 : vector<1x32xf32> to vector<16x32xf32>
    %166 = arith.addf %164, %165 : vector<16x32xf32>
    %167 = arith.addf %166, %98 : vector<16x32xf32>
    %c2_64 = arith.constant 2 : index
    %c0_65 = arith.constant 0 : index
    %c0_66 = arith.constant 0 : index
    %168 = vector.load %arg7[%c2_64, %c0_65, %c0_66] : memref<4x6x32xf32, #tpu.memory_space<vmem>>, vector<1x6x32xf32>
    %169 = vector.shape_cast %168 : vector<1x6x32xf32> to vector<6x32xf32>
    %170 = vector.extract_strided_slice %169 {offsets = [0, 0], sizes = [1, 32], strides = [1, 1]} : vector<6x32xf32> to vector<1x32xf32>
    %171 = vector.extract_strided_slice %169 {offsets = [1, 0], sizes = [1, 32], strides = [1, 1]} : vector<6x32xf32> to vector<1x32xf32>
    %172 = vector.extract_strided_slice %169 {offsets = [2, 0], sizes = [1, 32], strides = [1, 1]} : vector<6x32xf32> to vector<1x32xf32>
    %173 = vector.extract_strided_slice %169 {offsets = [3, 0], sizes = [1, 32], strides = [1, 1]} : vector<6x32xf32> to vector<1x32xf32>
    %174 = vector.extract_strided_slice %169 {offsets = [4, 0], sizes = [1, 32], strides = [1, 1]} : vector<6x32xf32> to vector<1x32xf32>
    %175 = vector.extract_strided_slice %169 {offsets = [5, 0], sizes = [1, 1], strides = [1, 1]} : vector<6x32xf32> to vector<1x1xf32>
    %176 = arith.truncf %167 : vector<16x32xf32> to vector<16x32xbf16>
    %cst_67 = arith.constant dense<0.000000e+00> : vector<64x32xf32>
    %177 = tpu.matmul %28, %176, %cst_67 {dimension_numbers = #tpu.dot_dimension_numbers<[1], [0], [0], [1], [0, 0, 1, 1], [], []>} : vector<64x16xbf16>, vector<16x32xbf16>, vector<64x32xf32> -> vector<64x32xf32>
    %178 = vector.extract_strided_slice %177 {offsets = [0, 0], sizes = [32, 32], strides = [1, 1]} : vector<64x32xf32> to vector<32x32xf32>
    %179 = vector.extract_strided_slice %177 {offsets = [32, 0], sizes = [32, 32], strides = [1, 1]} : vector<64x32xf32> to vector<32x32xf32>
    %180 = tpu.concatenate %178, %179, %134 in 1 : vector<32x32xf32>, vector<32x32xf32>, vector<32x32xf32> -> vector<32x96xf32>
    %c2_68 = arith.constant 2 : index
    %c0_69 = arith.constant 0 : index
    %c0_70 = arith.constant 0 : index
    %181 = vector.load %arg5[%c2_68, %c0_69, %c0_70] : memref<4x96x32xf32, #tpu.memory_space<vmem>>, vector<1x96x32xf32>
    %182 = vector.shape_cast %181 : vector<1x96x32xf32> to vector<96x32xf32>
    %cst_71 = arith.constant dense<0.000000e+00> : vector<32x32xf32>
    %183 = tpu.matmul %180, %182, %cst_71 {dimension_numbers = #tpu.dot_dimension_numbers<[1], [0], [0], [1], [0, 0, 1, 1], [], []>} : vector<32x96xf32>, vector<96x32xf32>, vector<32x32xf32> -> vector<32x32xf32>
    %184 = vector.broadcast %170 : vector<1x32xf32> to vector<32x32xf32>
    %185 = arith.addf %183, %184 : vector<32x32xf32>
    %186 = arith.negf %185 : vector<32x32xf32>
    %187 = math.exp %186 : vector<32x32xf32>
    %cst_72 = arith.constant 1.000000e+00 : f32
    %188 = vector.broadcast %cst_72 : f32 to vector<32x32xf32>
    %189 = arith.addf %188, %187 : vector<32x32xf32>
    %190 = arith.divf %188, %189 : vector<32x32xf32>
    %191 = arith.mulf %185, %190 : vector<32x32xf32>
    %c2_73 = arith.constant 2 : index
    %c0_74 = arith.constant 0 : index
    %c0_75 = arith.constant 0 : index
    %c0_76 = arith.constant 0 : index
    %192 = vector.load %arg6[%c2_73, %c0_74, %c0_75, %c0_76] : memref<4x3x32x32xf32, #tpu.memory_space<vmem>>, vector<1x1x32x32xf32>
    %193 = vector.shape_cast %192 : vector<1x1x32x32xf32> to vector<32x32xf32>
    %cst_77 = arith.constant dense<0.000000e+00> : vector<32x32xf32>
    %194 = tpu.matmul %191, %193, %cst_77 {dimension_numbers = #tpu.dot_dimension_numbers<[1], [0], [0], [1], [0, 0, 1, 1], [], []>} : vector<32x32xf32>, vector<32x32xf32>, vector<32x32xf32> -> vector<32x32xf32>
    %195 = vector.broadcast %171 : vector<1x32xf32> to vector<32x32xf32>
    %196 = arith.addf %194, %195 : vector<32x32xf32>
    %197 = arith.negf %196 : vector<32x32xf32>
    %198 = math.exp %197 : vector<32x32xf32>
    %cst_78 = arith.constant 1.000000e+00 : f32
    %199 = vector.broadcast %cst_78 : f32 to vector<32x32xf32>
    %200 = arith.addf %199, %198 : vector<32x32xf32>
    %201 = arith.divf %199, %200 : vector<32x32xf32>
    %202 = arith.mulf %196, %201 : vector<32x32xf32>
    %203 = arith.addf %134, %202 : vector<32x32xf32>
    %204 = vector.broadcast %174 : vector<1x32xf32> to vector<32x32xf32>
    %205 = arith.mulf %202, %204 : vector<32x32xf32>
    %cst_79 = arith.constant dense<0.000000e+00> : vector<32xf32>
    %206 = vector.multi_reduction <add>, %205, %cst_79 [1] : vector<32x32xf32> to vector<32xf32>
    %207 = vector.shape_cast %206 : vector<32xf32> to vector<32x1xf32>
    %208 = vector.broadcast %175 : vector<1x1xf32> to vector<32x1xf32>
    %209 = arith.addf %207, %208 : vector<32x1xf32>
    %210 = arith.negf %209 : vector<32x1xf32>
    %211 = math.exp %210 : vector<32x1xf32>
    %cst_80 = arith.constant 1.000000e+00 : f32
    %212 = vector.broadcast %cst_80 : f32 to vector<32x1xf32>
    %213 = arith.addf %212, %211 : vector<32x1xf32>
    %214 = arith.divf %212, %213 : vector<32x1xf32>
    %215 = vector.broadcast %214 : vector<32x1xf32> to vector<32x32xf32>
    %216 = arith.mulf %202, %215 : vector<32x32xf32>
    %217 = arith.truncf %216 : vector<32x32xf32> to vector<32x32xbf16>
    %cst_81 = arith.constant dense<0.000000e+00> : vector<16x32xf32>
    %218 = tpu.matmul %29, %217, %cst_81 {dimension_numbers = #tpu.dot_dimension_numbers<[1], [0], [0], [1], [0, 0, 1, 1], [], []>} : vector<16x32xbf16>, vector<32x32xbf16>, vector<16x32xf32> -> vector<16x32xf32>
    %219 = arith.addf %218, %167 : vector<16x32xf32>
    %c2_82 = arith.constant 2 : index
    %c1_83 = arith.constant 1 : index
    %c0_84 = arith.constant 0 : index
    %c0_85 = arith.constant 0 : index
    %220 = vector.load %arg6[%c2_82, %c1_83, %c0_84, %c0_85] : memref<4x3x32x32xf32, #tpu.memory_space<vmem>>, vector<1x1x32x32xf32>
    %221 = vector.shape_cast %220 : vector<1x1x32x32xf32> to vector<32x32xf32>
    %cst_86 = arith.constant dense<0.000000e+00> : vector<16x32xf32>
    %222 = tpu.matmul %219, %221, %cst_86 {dimension_numbers = #tpu.dot_dimension_numbers<[1], [0], [0], [1], [0, 0, 1, 1], [], []>} : vector<16x32xf32>, vector<32x32xf32>, vector<16x32xf32> -> vector<16x32xf32>
    %223 = vector.broadcast %172 : vector<1x32xf32> to vector<16x32xf32>
    %224 = arith.addf %222, %223 : vector<16x32xf32>
    %225 = arith.negf %224 : vector<16x32xf32>
    %226 = math.exp %225 : vector<16x32xf32>
    %cst_87 = arith.constant 1.000000e+00 : f32
    %227 = vector.broadcast %cst_87 : f32 to vector<16x32xf32>
    %228 = arith.addf %227, %226 : vector<16x32xf32>
    %229 = arith.divf %227, %228 : vector<16x32xf32>
    %230 = arith.mulf %224, %229 : vector<16x32xf32>
    %c2_88 = arith.constant 2 : index
    %c2_89 = arith.constant 2 : index
    %c0_90 = arith.constant 0 : index
    %c0_91 = arith.constant 0 : index
    %231 = vector.load %arg6[%c2_88, %c2_89, %c0_90, %c0_91] : memref<4x3x32x32xf32, #tpu.memory_space<vmem>>, vector<1x1x32x32xf32>
    %232 = vector.shape_cast %231 : vector<1x1x32x32xf32> to vector<32x32xf32>
    %cst_92 = arith.constant dense<0.000000e+00> : vector<16x32xf32>
    %233 = tpu.matmul %230, %232, %cst_92 {dimension_numbers = #tpu.dot_dimension_numbers<[1], [0], [0], [1], [0, 0, 1, 1], [], []>} : vector<16x32xf32>, vector<32x32xf32>, vector<16x32xf32> -> vector<16x32xf32>
    %234 = vector.broadcast %173 : vector<1x32xf32> to vector<16x32xf32>
    %235 = arith.addf %233, %234 : vector<16x32xf32>
    %236 = arith.addf %235, %167 : vector<16x32xf32>
    %c3 = arith.constant 3 : index
    %c0_93 = arith.constant 0 : index
    %c0_94 = arith.constant 0 : index
    %237 = vector.load %arg7[%c3, %c0_93, %c0_94] : memref<4x6x32xf32, #tpu.memory_space<vmem>>, vector<1x6x32xf32>
    %238 = vector.shape_cast %237 : vector<1x6x32xf32> to vector<6x32xf32>
    %239 = vector.extract_strided_slice %238 {offsets = [0, 0], sizes = [1, 32], strides = [1, 1]} : vector<6x32xf32> to vector<1x32xf32>
    %240 = vector.extract_strided_slice %238 {offsets = [1, 0], sizes = [1, 32], strides = [1, 1]} : vector<6x32xf32> to vector<1x32xf32>
    %241 = vector.extract_strided_slice %238 {offsets = [2, 0], sizes = [1, 32], strides = [1, 1]} : vector<6x32xf32> to vector<1x32xf32>
    %242 = vector.extract_strided_slice %238 {offsets = [3, 0], sizes = [1, 32], strides = [1, 1]} : vector<6x32xf32> to vector<1x32xf32>
    %243 = vector.extract_strided_slice %238 {offsets = [4, 0], sizes = [1, 32], strides = [1, 1]} : vector<6x32xf32> to vector<1x32xf32>
    %244 = vector.extract_strided_slice %238 {offsets = [5, 0], sizes = [1, 1], strides = [1, 1]} : vector<6x32xf32> to vector<1x1xf32>
    %245 = arith.truncf %236 : vector<16x32xf32> to vector<16x32xbf16>
    %cst_95 = arith.constant dense<0.000000e+00> : vector<64x32xf32>
    %246 = tpu.matmul %28, %245, %cst_95 {dimension_numbers = #tpu.dot_dimension_numbers<[1], [0], [0], [1], [0, 0, 1, 1], [], []>} : vector<64x16xbf16>, vector<16x32xbf16>, vector<64x32xf32> -> vector<64x32xf32>
    %247 = vector.extract_strided_slice %246 {offsets = [0, 0], sizes = [32, 32], strides = [1, 1]} : vector<64x32xf32> to vector<32x32xf32>
    %248 = vector.extract_strided_slice %246 {offsets = [32, 0], sizes = [32, 32], strides = [1, 1]} : vector<64x32xf32> to vector<32x32xf32>
    %249 = tpu.concatenate %247, %248, %203 in 1 : vector<32x32xf32>, vector<32x32xf32>, vector<32x32xf32> -> vector<32x96xf32>
    %c3_96 = arith.constant 3 : index
    %c0_97 = arith.constant 0 : index
    %c0_98 = arith.constant 0 : index
    %250 = vector.load %arg5[%c3_96, %c0_97, %c0_98] : memref<4x96x32xf32, #tpu.memory_space<vmem>>, vector<1x96x32xf32>
    %251 = vector.shape_cast %250 : vector<1x96x32xf32> to vector<96x32xf32>
    %cst_99 = arith.constant dense<0.000000e+00> : vector<32x32xf32>
    %252 = tpu.matmul %249, %251, %cst_99 {dimension_numbers = #tpu.dot_dimension_numbers<[1], [0], [0], [1], [0, 0, 1, 1], [], []>} : vector<32x96xf32>, vector<96x32xf32>, vector<32x32xf32> -> vector<32x32xf32>
    %253 = vector.broadcast %239 : vector<1x32xf32> to vector<32x32xf32>
    %254 = arith.addf %252, %253 : vector<32x32xf32>
    %255 = arith.negf %254 : vector<32x32xf32>
    %256 = math.exp %255 : vector<32x32xf32>
    %cst_100 = arith.constant 1.000000e+00 : f32
    %257 = vector.broadcast %cst_100 : f32 to vector<32x32xf32>
    %258 = arith.addf %257, %256 : vector<32x32xf32>
    %259 = arith.divf %257, %258 : vector<32x32xf32>
    %260 = arith.mulf %254, %259 : vector<32x32xf32>
    %c3_101 = arith.constant 3 : index
    %c0_102 = arith.constant 0 : index
    %c0_103 = arith.constant 0 : index
    %c0_104 = arith.constant 0 : index
    %261 = vector.load %arg6[%c3_101, %c0_102, %c0_103, %c0_104] : memref<4x3x32x32xf32, #tpu.memory_space<vmem>>, vector<1x1x32x32xf32>
    %262 = vector.shape_cast %261 : vector<1x1x32x32xf32> to vector<32x32xf32>
    %cst_105 = arith.constant dense<0.000000e+00> : vector<32x32xf32>
    %263 = tpu.matmul %260, %262, %cst_105 {dimension_numbers = #tpu.dot_dimension_numbers<[1], [0], [0], [1], [0, 0, 1, 1], [], []>} : vector<32x32xf32>, vector<32x32xf32>, vector<32x32xf32> -> vector<32x32xf32>
    %264 = vector.broadcast %240 : vector<1x32xf32> to vector<32x32xf32>
    %265 = arith.addf %263, %264 : vector<32x32xf32>
    %266 = arith.negf %265 : vector<32x32xf32>
    %267 = math.exp %266 : vector<32x32xf32>
    %cst_106 = arith.constant 1.000000e+00 : f32
    %268 = vector.broadcast %cst_106 : f32 to vector<32x32xf32>
    %269 = arith.addf %268, %267 : vector<32x32xf32>
    %270 = arith.divf %268, %269 : vector<32x32xf32>
    %271 = arith.mulf %265, %270 : vector<32x32xf32>
    %272 = vector.broadcast %243 : vector<1x32xf32> to vector<32x32xf32>
    %273 = arith.mulf %271, %272 : vector<32x32xf32>
    %cst_107 = arith.constant dense<0.000000e+00> : vector<32xf32>
    %274 = vector.multi_reduction <add>, %273, %cst_107 [1] : vector<32x32xf32> to vector<32xf32>
    %275 = vector.shape_cast %274 : vector<32xf32> to vector<32x1xf32>
    %276 = vector.broadcast %244 : vector<1x1xf32> to vector<32x1xf32>
    %277 = arith.addf %275, %276 : vector<32x1xf32>
    %278 = arith.negf %277 : vector<32x1xf32>
    %279 = math.exp %278 : vector<32x1xf32>
    %cst_108 = arith.constant 1.000000e+00 : f32
    %280 = vector.broadcast %cst_108 : f32 to vector<32x1xf32>
    %281 = arith.addf %280, %279 : vector<32x1xf32>
    %282 = arith.divf %280, %281 : vector<32x1xf32>
    %283 = vector.broadcast %282 : vector<32x1xf32> to vector<32x32xf32>
    %284 = arith.mulf %271, %283 : vector<32x32xf32>
    %285 = arith.truncf %284 : vector<32x32xf32> to vector<32x32xbf16>
    %cst_109 = arith.constant dense<0.000000e+00> : vector<16x32xf32>
    %286 = tpu.matmul %29, %285, %cst_109 {dimension_numbers = #tpu.dot_dimension_numbers<[1], [0], [0], [1], [0, 0, 1, 1], [], []>} : vector<16x32xbf16>, vector<32x32xbf16>, vector<16x32xf32> -> vector<16x32xf32>
    %287 = arith.addf %286, %236 : vector<16x32xf32>
    %c3_110 = arith.constant 3 : index
    %c1_111 = arith.constant 1 : index
    %c0_112 = arith.constant 0 : index
    %c0_113 = arith.constant 0 : index
    %288 = vector.load %arg6[%c3_110, %c1_111, %c0_112, %c0_113] : memref<4x3x32x32xf32, #tpu.memory_space<vmem>>, vector<1x1x32x32xf32>
    %289 = vector.shape_cast %288 : vector<1x1x32x32xf32> to vector<32x32xf32>
    %cst_114 = arith.constant dense<0.000000e+00> : vector<16x32xf32>
    %290 = tpu.matmul %287, %289, %cst_114 {dimension_numbers = #tpu.dot_dimension_numbers<[1], [0], [0], [1], [0, 0, 1, 1], [], []>} : vector<16x32xf32>, vector<32x32xf32>, vector<16x32xf32> -> vector<16x32xf32>
    %291 = vector.broadcast %241 : vector<1x32xf32> to vector<16x32xf32>
    %292 = arith.addf %290, %291 : vector<16x32xf32>
    %293 = arith.negf %292 : vector<16x32xf32>
    %294 = math.exp %293 : vector<16x32xf32>
    %cst_115 = arith.constant 1.000000e+00 : f32
    %295 = vector.broadcast %cst_115 : f32 to vector<16x32xf32>
    %296 = arith.addf %295, %294 : vector<16x32xf32>
    %297 = arith.divf %295, %296 : vector<16x32xf32>
    %298 = arith.mulf %292, %297 : vector<16x32xf32>
    %c3_116 = arith.constant 3 : index
    %c2_117 = arith.constant 2 : index
    %c0_118 = arith.constant 0 : index
    %c0_119 = arith.constant 0 : index
    %299 = vector.load %arg6[%c3_116, %c2_117, %c0_118, %c0_119] : memref<4x3x32x32xf32, #tpu.memory_space<vmem>>, vector<1x1x32x32xf32>
    %300 = vector.shape_cast %299 : vector<1x1x32x32xf32> to vector<32x32xf32>
    %cst_120 = arith.constant dense<0.000000e+00> : vector<16x32xf32>
    %301 = tpu.matmul %298, %300, %cst_120 {dimension_numbers = #tpu.dot_dimension_numbers<[1], [0], [0], [1], [0, 0, 1, 1], [], []>} : vector<16x32xf32>, vector<32x32xf32>, vector<16x32xf32> -> vector<16x32xf32>
    %302 = vector.broadcast %242 : vector<1x32xf32> to vector<16x32xf32>
    %303 = arith.addf %301, %302 : vector<16x32xf32>
    %304 = arith.addf %303, %236 : vector<16x32xf32>
    %c0_121 = arith.constant 0 : index
    %c0_122 = arith.constant 0 : index
    %c0_123 = arith.constant 0 : index
    %305 = vector.load %arg9[%c0_121, %c0_122, %c0_123] : memref<3x32x32xf32, #tpu.memory_space<vmem>>, vector<1x32x32xf32>
    %306 = vector.shape_cast %305 : vector<1x32x32xf32> to vector<32x32xf32>
    %cst_124 = arith.constant dense<0.000000e+00> : vector<16x32xf32>
    %307 = tpu.matmul %304, %306, %cst_124 {dimension_numbers = #tpu.dot_dimension_numbers<[1], [0], [0], [1], [0, 0, 1, 1], [], []>} : vector<16x32xf32>, vector<32x32xf32>, vector<16x32xf32> -> vector<16x32xf32>
    %308 = vector.broadcast %4 : vector<1x32xf32> to vector<16x32xf32>
    %309 = arith.addf %307, %308 : vector<16x32xf32>
    %310 = arith.negf %309 : vector<16x32xf32>
    %311 = math.exp %310 : vector<16x32xf32>
    %cst_125 = arith.constant 1.000000e+00 : f32
    %312 = vector.broadcast %cst_125 : f32 to vector<16x32xf32>
    %313 = arith.addf %312, %311 : vector<16x32xf32>
    %314 = arith.divf %312, %313 : vector<16x32xf32>
    %315 = arith.mulf %309, %314 : vector<16x32xf32>
    %c1_126 = arith.constant 1 : index
    %c0_127 = arith.constant 0 : index
    %c0_128 = arith.constant 0 : index
    %316 = vector.load %arg9[%c1_126, %c0_127, %c0_128] : memref<3x32x32xf32, #tpu.memory_space<vmem>>, vector<1x32x32xf32>
    %317 = vector.shape_cast %316 : vector<1x32x32xf32> to vector<32x32xf32>
    %cst_129 = arith.constant dense<0.000000e+00> : vector<16x32xf32>
    %318 = tpu.matmul %315, %317, %cst_129 {dimension_numbers = #tpu.dot_dimension_numbers<[1], [0], [0], [1], [0, 0, 1, 1], [], []>} : vector<16x32xf32>, vector<32x32xf32>, vector<16x32xf32> -> vector<16x32xf32>
    %319 = vector.broadcast %5 : vector<1x32xf32> to vector<16x32xf32>
    %320 = arith.addf %318, %319 : vector<16x32xf32>
    %c0_130 = arith.constant 0 : index
    %c0_131 = arith.constant 0 : index
    %321 = vector.load %arg3[%c0_130, %c0_131] : memref<2x16xf32, #tpu.memory_space<vmem>>, vector<2x16xf32>
    %c0_132 = arith.constant 0 : index
    %c0_133 = arith.constant 0 : index
    %322 = vector.load %arg4[%c0_132, %c0_133] : memref<16x2xf32, #tpu.memory_space<vmem>>, vector<16x2xf32>
    %cst_134 = arith.constant dense<0.000000e+00> : vector<2x32xf32>
    %323 = tpu.matmul %321, %320, %cst_134 {dimension_numbers = #tpu.dot_dimension_numbers<[1], [0], [0], [1], [0, 0, 1, 1], [], []>} : vector<2x16xf32>, vector<16x32xf32>, vector<2x32xf32> -> vector<2x32xf32>
    %cst_135 = arith.constant dense<0.000000e+00> : vector<2xf32>
    %324 = vector.multi_reduction <add>, %321, %cst_135 [1] : vector<2x16xf32> to vector<2xf32>
    %325 = vector.shape_cast %324 : vector<2xf32> to vector<2x1xf32>
    %cst_136 = arith.constant 1.000000e+00 : f32
    %326 = vector.broadcast %cst_136 : f32 to vector<2x1xf32>
    %327 = arith.maximumf %325, %326 : vector<2x1xf32>
    %328 = tpu.reciprocal %327 {approx = true} : vector<2x1xf32> -> vector<2x1xf32>
    %329 = vector.broadcast %328 : vector<2x1xf32> to vector<2x32xf32>
    %330 = arith.mulf %323, %329 : vector<2x32xf32>
    %331 = vector.extract_strided_slice %322 {offsets = [0, 0], sizes = [16, 1], strides = [1, 1]} : vector<16x2xf32> to vector<16x1xf32>
    %cst_137 = arith.constant 0.000000e+00 : f32
    %332 = vector.broadcast %cst_137 : f32 to vector<16x1xf32>
    %333 = arith.cmpf ogt, %331, %332 : vector<16x1xf32>
    %cst_138 = arith.constant -1.000000e+30 : f32
    %334 = vector.shape_cast %333 : vector<16x1xi1> to vector<16x1xi1>
    %335 = vector.broadcast %334 : vector<16x1xi1> to vector<16x32xi1>
    %336 = vector.broadcast %cst_138 : f32 to vector<16x32xf32>
    %337 = arith.select %335, %320, %336 : vector<16x32xi1>, vector<16x32xf32>
    %cst_139 = arith.constant dense<0xFF800000> : vector<32xf32>
    %338 = vector.multi_reduction <maximumf>, %337, %cst_139 [0] : vector<16x32xf32> to vector<32xf32>
    %339 = vector.shape_cast %338 : vector<32xf32> to vector<1x32xf32>
    %c0_140 = arith.constant 0 : index
    %c0_141 = arith.constant 0 : index
    %340 = vector.load %arg12[%c0_140, %c0_141] : memref<8x32xf32, #tpu.memory_space<vmem>>, vector<1x32xf32>
    tpu.vector_store %arg12[%c0_140, %c0_141], %339 {strides = array<i32>} : memref<8x32xf32, #tpu.memory_space<vmem>>, vector<1x32xf32>,
    %341 = vector.extract_strided_slice %322 {offsets = [0, 1], sizes = [16, 1], strides = [1, 1]} : vector<16x2xf32> to vector<16x1xf32>
    %cst_142 = arith.constant 0.000000e+00 : f32
    %342 = vector.broadcast %cst_142 : f32 to vector<16x1xf32>
    %343 = arith.cmpf ogt, %341, %342 : vector<16x1xf32>
    %cst_143 = arith.constant -1.000000e+30 : f32
    %344 = vector.shape_cast %343 : vector<16x1xi1> to vector<16x1xi1>
    %345 = vector.broadcast %344 : vector<16x1xi1> to vector<16x32xi1>
    %346 = vector.broadcast %cst_143 : f32 to vector<16x32xf32>
    %347 = arith.select %345, %320, %346 : vector<16x32xi1>, vector<16x32xf32>
    %cst_144 = arith.constant dense<0xFF800000> : vector<32xf32>
    %348 = vector.multi_reduction <maximumf>, %347, %cst_144 [0] : vector<16x32xf32> to vector<32xf32>
    %349 = vector.shape_cast %348 : vector<32xf32> to vector<1x32xf32>
    %c1_145 = arith.constant 1 : index
    %c0_146 = arith.constant 0 : index
    %350 = vector.load %arg12[%c1_145, %c0_146] : memref<8x32xf32, #tpu.memory_space<vmem>>, vector<1x32xf32>
    tpu.vector_store %arg12[%c1_145, %c0_146], %349 {strides = array<i32>} : memref<8x32xf32, #tpu.memory_space<vmem>>, vector<1x32xf32>,
    %c0_147 = arith.constant 0 : index
    %c0_148 = arith.constant 0 : index
    %351 = vector.load %arg12[%c0_147, %c0_148] : memref<8x32xf32, #tpu.memory_space<vmem>>, vector<2x32xf32>
    %cst_149 = arith.constant 0.000000e+00 : f32
    %352 = vector.broadcast %cst_149 : f32 to vector<2x1xf32>
    %353 = arith.cmpf ogt, %325, %352 : vector<2x1xf32>
    %cst_150 = arith.constant 0.000000e+00 : f32
    %354 = vector.shape_cast %353 : vector<2x1xi1> to vector<2x1xi1>
    %355 = vector.broadcast %354 : vector<2x1xi1> to vector<2x32xi1>
    %356 = vector.broadcast %cst_150 : f32 to vector<2x32xf32>
    %357 = arith.select %355, %351, %356 : vector<2x32xi1>, vector<2x32xf32>
    %358 = tpu.concatenate %323, %330, %357 in 1 : vector<2x32xf32>, vector<2x32xf32>, vector<2x32xf32> -> vector<2x96xf32>
    %c0_151 = arith.constant 0 : index
    %c0_152 = arith.constant 0 : index
    %359 = vector.load %arg10[%c0_151, %c0_152] : memref<96x32xf32, #tpu.memory_space<vmem>>, vector<96x32xf32>
    %cst_153 = arith.constant dense<0.000000e+00> : vector<2x32xf32>
    %360 = tpu.matmul %358, %359, %cst_153 {dimension_numbers = #tpu.dot_dimension_numbers<[1], [0], [0], [1], [0, 0, 1, 1], [], []>} : vector<2x96xf32>, vector<96x32xf32>, vector<2x32xf32> -> vector<2x32xf32>
    %361 = vector.broadcast %6 : vector<1x32xf32> to vector<2x32xf32>
    %362 = arith.addf %360, %361 : vector<2x32xf32>
    %cst_154 = arith.constant 1.000010e+00 : f32
    %363 = math.sqrt %cst_154 : f32
    %cst_155 = arith.constant 1.000000e+00 : f32
    %364 = arith.divf %cst_155, %363 : f32
    %365 = vector.broadcast %364 : f32 to vector<2x32xf32>
    %366 = arith.mulf %362, %365 : vector<2x32xf32>
    %cst_156 = arith.constant 0.000000e+00 : f32
    %367 = vector.broadcast %cst_156 : f32 to vector<2x32xf32>
    %368 = arith.maximumf %366, %367 : vector<2x32xf32>
    %c2_157 = arith.constant 2 : index
    %c0_158 = arith.constant 0 : index
    %c0_159 = arith.constant 0 : index
    %369 = vector.load %arg9[%c2_157, %c0_158, %c0_159] : memref<3x32x32xf32, #tpu.memory_space<vmem>>, vector<1x32x32xf32>
    %370 = vector.shape_cast %369 : vector<1x32x32xf32> to vector<32x32xf32>
    %cst_160 = arith.constant dense<0.000000e+00> : vector<2x32xf32>
    %371 = tpu.matmul %368, %370, %cst_160 {dimension_numbers = #tpu.dot_dimension_numbers<[1], [0], [0], [1], [0, 0, 1, 1], [], []>} : vector<2x32xf32>, vector<32x32xf32>, vector<2x32xf32> -> vector<2x32xf32>
    %372 = vector.extract_strided_slice %371 {offsets = [0, 0], sizes = [2, 8], strides = [1, 1]} : vector<2x32xf32> to vector<2x8xf32>
    %373 = vector.broadcast %7 : vector<1x8xf32> to vector<2x8xf32>
    %374 = arith.addf %372, %373 : vector<2x8xf32>
    %c0_161 = arith.constant 0 : index
    %c0_162 = arith.constant 0 : index
    %375 = vector.load %arg11[%c0_161, %c0_162] : memref<2x8xf32, #tpu.memory_space<vmem>>, vector<2x8xf32>
    tpu.vector_store %arg11[%c0_161, %c0_162], %374 {strides = array<i32>} : memref<2x8xf32, #tpu.memory_space<vmem>>, vector<2x8xf32>,
    return
  }
}

</mosaic_0001>

<bundles_post_ra>
// kernel: tpu_custom_call.1
= control target key start
LH: loop header
LB: loop body
LE: loop exit
PB: predicated region body
PF: predicated region fallthrough
CT: control target
= control target key end

     0   :  { %v41_v2 = vlaneseq  ;;  %v4923_v3 = vmov 0   ;;  %vm173_vm0 = vcmask 130048   ;;  %s5929_s0 = inlined_call_operand.vmem [shape: f32[32,1], index: 0, kind: input, shape index: {}]   ;;  %s5930_s1 = inlined_call_operand.vmem [shape: bf16[64,16], index: 1, kind: input, shape index: {}]   ;;  %s5931_s2 = inlined_call_operand.vmem [shape: bf16[16,32], index: 2, kind: input, shape index: {}]   ;;  %s5932_s3 = inlined_call_operand.vmem [shape: f32[2,16], index: 3, kind: input, shape index: {}]   ;;  %s5933_s4 = inlined_call_operand.vmem [shape: f32[16,2], index: 4, kind: input, shape index: {}]   ;;  %s5934_s5 = inlined_call_operand.vmem [shape: f32[4,96,32], index: 5, kind: input, shape index: {}]   ;;  %s5935_s6 = inlined_call_operand.vmem [shape: f32[4,3,32,32], index: 6, kind: input, shape index: {}]   ;;  %s5936_s7 = inlined_call_operand.vmem [shape: f32[4,6,32], index: 7, kind: input, shape index: {}]   ;;  %s5937_s8 = inlined_call_operand.vmem [shape: f32[7,32], index: 8, kind: input, shape index: {}]   ;;  %s5938_s9 = inlined_call_operand.vmem [shape: f32[3,32,32], index: 9, kind: input, shape index: {}]   ;;  %s5939_s10 = inlined_call_operand.vmem [shape: f32[96,32], index: 10, kind: input, shape index: {}]   ;;  %s5940_s11 = inlined_call_operand.hbm [shape: f32[2,8], index: 11, kind: output, shape index: {}]  }
   0x1   :  { %v47_v0 = vld [vmem:[%s5929_s0 + $0x10] sm:$0xff]  ;;  %v45_v1 = vld [vmem:[%s5929_s0] sm:$0xff]  ;;  %4619 = vset.pattern.permute.xlu1 %v4923_v3  ;;  %4618 = vset.pattern.permute.xlu0 %v4923_v3  ;;  %v48_v4 = vld [vmem:[%s5929_s0 + $0x18] sm:$0xff] }
   0x2   :  { %v46_v5 = vld [vmem:[%s5929_s0 + $0x8] sm:$0xff]  ;;  %61 = vperm.xlu1 %4619, %v47_v0   ;;  %51 = vperm.xlu0 %4618, %v45_v1   ;;  %v5005_v6 = vshrl.u32 %v41_v2, 7  ;;  %v5010_v7 = vld [vmem:[%s5930_s1] sm:$0xff]  }
   0x3   :  { %v40_v8 = vld [vmem:[%s5937_s8] sm:$0x7f]  ;;  %3974 = vmatprep.mubr.msk.bf16.mxu0 %vm173_vm0, %v5010_v7 }
   0x4   :  { %v5016_v9 = vsub.s32 0, %v5005_v6 }
   0x6   :  { %66 = vperm.xlu1 %4619, %v48_v4   ;;  %56 = vperm.xlu0 %4618, %v46_v5   ;;  %v5021_v10 = vrot.slane %v40_v8, %v5016_v9 }
   0x7   :  { %16 = vsyncpa [#allocation4], 0  ;;  %v5028_v12 = vld [vmem:[%s5930_s1 + $0x8] sm:$0xff]   ;;  %v5033_v13 = vld [vmem:[%s5930_s1 + $0x10] sm:$0xff]   ;;  %v5047_v15 = vsub.s32 1, %v5005_v6  ;;  %v5050_v16 = vsub.s32 2, %v5005_v6 }
   0x8   :  { %v152_v11 = vpack.c.bf16 %v5021_v10, %v5021_v10  ;;  %v5042_v14 = vld [vmem:[%s5930_s1 + $0x18] sm:$0xff]   ;;  %v293_v49 = vld [vmem:[%s5934_s5] sm:$0xff]  ;;  %v294_v50 = vld [vmem:[%s5934_s5 + $0x8] sm:$0xff]  ;;  %s4924_s30 = smov 64   ;;  %s4925_s20 = smov 32   ;;  %vm283_vm1 = vcmask 261120  }
   0x9   :  { %v72_v17 = vrot.slane %v40_v8, %v5047_v15  ;;  %v80_v18 = vrot.slane %v40_v8, %v5050_v16  ;;  %v295_v51 = vld [vmem:[%s5934_s5 + $0x10] sm:$0xff]  ;;  %v4375_v52 = vpack.c.bf16 %v294_v50, %v293_v49  ;;  %v296_v53 = vld [vmem:[%s5934_s5 + $0x18] sm:$0xff]  ;;  %v297_v56 = vld [vmem:[%s5934_s5 + $0x20] sm:$0xff]  ;;  %vm288_vm2 = vcmask 523264   ;;  %s4930_s17 = smov [#allocation3]  }
   0xa   :  { %3972 = vmatprep.subr.bf16.mxu0 %v152_v11  ;;  %v4379_v55 = vpack.c.bf16 %v296_v53, %v295_v51  ;;  %v298_v57 = vld [vmem:[%s5934_s5 + $0x28] sm:$0xff]  ;;  %v299_v61 = vld [vmem:[%s5934_s5 + $0x30] sm:$0xff]  ;;  %v300_v62 = vld [vmem:[%s5934_s5 + $0x38] sm:$0xff]  ;;  %vm309_vm3 = vcmask 785408   ;;  %vm4927_vm4 = vmmov 0   ;;  %vm3269_vm7 = vcmask 123904  }
   0xb   :  { %3973 = vmatpush3.bf16.msra.mxu0 %v152_v11  ;;  %4376 = vmatprep.subr.bf16.mxu1 %v4375_v52  ;;  %v4383_v60 = vpack.c.bf16 %v298_v57, %v297_v56  ;;  %v4387_v2 = vpack.c.bf16 %v300_v62, %v299_v61  ;;  %v301_v4 = vld [vmem:[%s5934_s5 + $0x40] sm:$0xff]  ;;  %v302_v5 = vld [vmem:[%s5934_s5 + $0x48] sm:$0xff]  ;;  %v437_v62 = vld [vmem:[%s5935_s6 + $0x10] sm:$0xff]  ;;  %vm3299_vm12 = vcmask 253952   ;;  %s3518_s18 = sshll.u32 %s4930_s17, 4  ;;  %vm3510_vm14 = vcmask 58368   ;;  %s3519_s18 = int_to_ptr.vmem [resolvable:$true] %s3518_s18 }
   0xc   :  { %4378 = vmatpush3.bf16.msra.mxu1 %v4375_v52  ;;  %p4904_p1 = scmp.lt.s32.totalorder %s3519_s18, %s3519_s18 }
   0xd   :  { %4380 = vmatprep.subr.bf16.mxu1 %v4379_v55 }
   0xe   :  { %3975 = vmatmul.mubr.msk.bf16.vlgmr.msra.gmra.mrb[0].mxu0 %vm173_vm0, %v5028_v12 }
   0xf   :  { %3978 = vmatprep.mubr.msk.bf16.mxu0 %vm173_vm0, %v5033_v13 }
  0x10   :  { %4382 = vmatpush3.bf16.msra.mxu1 %v4379_v55 }
  0x11   :  { %4384 = vmatprep.subr.bf16.mxu1 %v4383_v60 }
  0x14   :  { %4386 = vmatpush3.bf16.msra.mxu1 %v4383_v60  ;;  %v436_v60 = vld [vmem:[%s5935_s6 + $0x8] sm:$0xff] }
  0x15   :  { %4388 = vmatprep.subr.bf16.mxu1 %v4387_v2 }
  0x16   :  { %3979 = vmatmul.mubr.msk.bf16.gmra.mrb[4].mxu0 %vm173_vm0, %v5042_v14 }
  0x18   :  { %4390 = vmatpush3.bf16.msra.mxu1 %v4387_v2  ;;  %v5137_v2 = vld [vmem:[%s5936_s7] sm:$0x3f] }
  0x81   :  { %v52_v19 = vpop.permute.xlu0 %51  ;;  %v62_v31 = vpop.permute.xlu1 %61 }
  0x82   :  { %v73_v20 = vmul.f32 %v72_v17, %v52_v19  ;;  %v75_v34 = vmul.f32 %v72_v17, %v62_v31 }
  0x84   :  { %v81_v21 = vadd.f32 %v80_v18, %v73_v20  ;;  %v83_v39 = vadd.f32 %v80_v18, %v75_v34 }
  0x85   :  { %v57_v22 = vpop.permute.xlu0 %56  ;;  %v67_v33 = vpop.permute.xlu1 %66 }
  0x86   :  { %v3526_v23 = vmul.f32 -1.442695, %v81_v21  ;;  %v74_v24 = vmul.f32 %v72_v17, %v57_v22  ;;  %v76_v37 = vmul.f32 %v72_v17, %v67_v33  ;;  %v3528_v43 = vmul.f32 -1.442695, %v83_v39 }
  0x87   :  { %v4391_v17 = vpack.c.bf16 %v302_v5, %v301_v4  ;;  %v308_v4 = vrot.slane %v5137_v2, %v5016_v9 }
  0x88   :  { %v82_v25 = vadd.f32 %v80_v18, %v74_v24  ;;  %4627 = vpow2.f32 %v3526_v23  ;;  %v84_v41 = vadd.f32 %v80_v18, %v76_v37  ;;  %v303_v24 = vld [vmem:[%s5934_s5 + $0x50] sm:$0xff] }
  0x89   :  { %4392 = vmatprep.subr.bf16.mxu1 %v4391_v17 }
  0x8a   :  { %v3527_v26 = vmul.f32 -1.442695, %v82_v25  ;;  %v3529_v44 = vmul.f32 -1.442695, %v84_v41  ;;  %4394 = vmatpush3.bf16.msra.mxu1 %v4391_v17 }
  0x8c   :  { %4629 = vpow2.f32 %v3527_v26 }
  0x92   :  { %v4628_v27 = vpop.eup %4627 }
  0x93   :  { %v97_v28 = vadd.f32 1.0, %v4628_v27 }
  0x95   :  { %4631 = vrcp.f32 %v97_v28 }
  0x96   :  { %v4630_v29 = vpop.eup %4629 }
  0x97   :  { %v98_v30 = vadd.f32 1.0, %v4630_v29 }
  0x99   :  { %4633 = vrcp.f32 %v98_v30 }
  0x9f   :  { %v4632_v32 = vpop.eup %4631 }
  0xa0   :  { %v109_v35 = vmul.f32 %v4632_v32, %v81_v21 }
  0xa2   :  { %v3530_v36 = vmul.f32 -1.442695, %v109_v35 }
  0xa3   :  { %v4634_v38 = vpop.eup %4633 }
  0xa4   :  { %4635 = vpow2.f32 %v3530_v36  ;;  %v110_v40 = vmul.f32 %v4634_v38, %v82_v25  ;;  %v304_v25 = vld [vmem:[%s5934_s5 + $0x58] sm:$0xff] }
  0xa5   :  { %v4395_v27 = vpack.c.bf16 %v304_v25, %v303_v24 }
  0xa6   :  { %v3531_v42 = vmul.f32 -1.442695, %v110_v40 }
  0xa7   :  { %4396 = vmatprep.subr.bf16.mxu1 %v4395_v27 }
  0xa8   :  { %4637 = vpow2.f32 %v3531_v42  ;;  %4398 = vmatpush3.bf16.msra.mxu1 %v4395_v27 }
  0xa9   :  { %4639 = vpow2.f32 %v3528_v43 }
  0xaa   :  { %4641 = vpow2.f32 %v3529_v44 }
  0xae   :  { %v4636_v45 = vpop.eup %4635 }
  0xaf   :  { %v125_v46 = vadd.f32 1.0, %v4636_v45 }
  0xb1   :  { %4643 = vrcp.f32 %v125_v46 }
  0xb2   :  { %v4638_v47 = vpop.eup %4637 }
  0xb3   :  { %v126_v48 = vadd.f32 1.0, %v4638_v47  ;;  %v4640_v54 = vpop.eup %4639 }
  0xb4   :  { %v4642_v58 = vpop.eup %4641  ;;  %v99_v59 = vadd.f32 1.0, %v4640_v54 }
  0xb5   :  { %4645 = vrcp.f32 %v126_v48  ;;  %v100_v0 = vadd.f32 1.0, %v4642_v58 }
  0xb6   :  { %4647 = vrcp.f32 %v99_v59  ;;  %v435_v59 = vld [vmem:[%s5935_s6] sm:$0xff] }
  0xb7   :  { %4649 = vrcp.f32 %v100_v0  ;;  %v4399_v61 = vpack.c.bf16 %v436_v60, %v435_v59 }
  0xb9   :  { %4400 = vmatprep.subr.bf16.mxu0 %v4399_v61 }
  0xba   :  { %4402 = vmatpush3.bf16.msra.mxu0 %v4399_v61 }
  0xbb   :  { %v4644_v63 = vpop.eup %4643 }
  0xbc   :  { %v5078_v1 = vmul.f32 %v4644_v63, %v109_v35  ;;  %v438_v63 = vld [vmem:[%s5935_s6 + $0x18] sm:$0xff] }
  0xbd   :  { %v4403_v0 = vpack.c.bf16 %v438_v63, %v437_v62 }
  0xbe   :  { %271 = vrot.lane.b32.xlu0 %v5078_v1, %s4924_s30 }
  0xbf   :  { %v4646_v8 = vpop.eup %4645  ;;  %4404 = vmatprep.subr.bf16.mxu0 %v4403_v0 }
  0xc0   :  { %v5088_v11 = vmul.f32 %v4646_v8, %v110_v40  ;;  %v4648_v18 = vpop.eup %4647  ;;  %4406 = vmatpush3.bf16.msra.mxu0 %v4403_v0 }
  0xc1   :  { %v4650_v19 = vpop.eup %4649  ;;  %v111_v20 = vmul.f32 %v4648_v18, %v83_v39 }
  0xc2   :  { %273 = vrot.lane.b32.xlu1 %v5088_v11, %s4924_s30  ;;  %v112_v21 = vmul.f32 %v4650_v19, %v84_v41 }
  0xc3   :  { %v3532_v22 = vmul.f32 -1.442695, %v111_v20 }
  0xc4   :  { %v3533_v23 = vmul.f32 -1.442695, %v112_v21 }
  0xc5   :  { %4651 = vpow2.f32 %v3532_v22 }
  0xc6   :  { %4653 = vpow2.f32 %v3533_v23 }
  0xcf   :  { %v4652_v26 = vpop.eup %4651 }
  0xd0   :  { %v4654_v28 = vpop.eup %4653  ;;  %v127_v29 = vadd.f32 1.0, %v4652_v26 }
  0xd1   :  { %v128_v31 = vadd.f32 1.0, %v4654_v28 }
  0xd2   :  { %4655 = vrcp.f32 %v127_v29 }
  0xd3   :  { %4657 = vrcp.f32 %v128_v31 }
  0xdc   :  { %v4656_v39 = vpop.eup %4655 }
  0xdd   :  { %v4658_v40 = vpop.eup %4657  ;;  %v5102_v41 = vmul.f32 %v4656_v39, %v111_v20 }
  0xde   :  { %v5106_v42 = vmul.f32 %v4658_v40, %v112_v21 }
  0xe1   :  { %v3976_v30 = vpop.f32.mrb[0].mxu0 }
  0xe2   :  { %v220_v32 = vpop.f32.mrb[1].mxu0 }
  0xe3   :  { %v3977_v33 = vpop.f32.mrb[2].mxu0 }
  0xe4   :  { %v223_v34 = vpop.f32.mrb[3].mxu0 }
  0xe9   :  { %v3980_v35 = vpop.f32.mrb[4].mxu0 }
  0xea   :  { %v236_v36 = vpop.f32.mrb[5].mxu0 }
  0xeb   :  { %255 = vrot.lane.b32.xlu0 %v236_v36, %s4925_s20  ;;  %v3981_v37 = vpop.f32.mrb[6].mxu0 }
  0xec   :  { %v239_v38 = vpop.f32.mrb[7].mxu0 }
  0xed   :  { %257 = vrot.lane.b32.xlu1 %v239_v38, %s4925_s20 }
  0xef   :  { %259 = vrot.lane.b32.xlu0 %v3980_v35, %s4925_s20 }
  0xf1   :  { %261 = vrot.lane.b32.xlu1 %v3981_v37, %s4925_s20 }
  0xf3   :  { %275 = vrot.lane.b32.xlu0 %v5102_v41, %s4924_s30 }
  0xf5   :  { %277 = vrot.lane.b32.xlu1 %v5106_v42, %s4924_s30 }
 0x130   :  { %v272_v43 = vpop.permute.xlu0 %271 }
 0x134   :  { %v274_v44 = vpop.permute.xlu1 %273 }
 0x15d   :  { %v256_v45 = vpop.permute.xlu0 %255 }
 0x15e   :  { %v284_v46 = vsel %vm283_vm1, %v220_v32, %v256_v45  ;;  %v442_v45 = vrot.slane %v5137_v2, %v5047_v15 }
 0x15f   :  { %v258_v47 = vpop.permute.xlu1 %257  ;;  %v289_v48 = vsel %vm288_vm2, %v284_v46, %v272_v43 }
 0x160   :  { %v285_v49 = vsel %vm283_vm1, %v223_v34, %v258_v47  ;;  %4006 = vmatprep.mubr.msk.f32.mxu1 %vm309_vm3, %v289_v48 }
 0x161   :  { %v260_v50 = vpop.permute.xlu0 %259  ;;  %v290_v51 = vsel %vm288_vm2, %v285_v49, %v274_v44 }
 0x162   :  { %4007 = vmatmul.mubr.msk.f32.vlgmr.msra.gmra.mrb[0].mxu1 %vm309_vm3, %v290_v51  ;;  %v286_v53 = vsel %vm283_vm1, %v3976_v30, %v260_v50 }
 0x163   :  { %v262_v52 = vpop.permute.xlu1 %261 }
 0x164   :  { %v287_v56 = vsel %vm283_vm1, %v3977_v33, %v262_v52 }
 0x165   :  { %v276_v54 = vpop.permute.xlu0 %275 }
 0x166   :  { %v291_v55 = vsel %vm288_vm2, %v286_v53, %v276_v54 }
 0x167   :  { %4009 = vmatprep.mubr.msk.f32.mxu1 %vm309_vm3, %v291_v55  ;;  %v278_v57 = vpop.permute.xlu1 %277 }
 0x168   :  { %v292_v58 = vsel %vm288_vm2, %v287_v56, %v278_v57 }
 0x169   :  { %4010 = vmatmul.mubr.msk.f32.gmra.mrb[2].mxu1 %vm309_vm3, %v292_v58 }
 0x235   :  { %v4008_v5 = vpop.f32.mrb[0].mxu1 }
 0x236   :  { %v394_v8 = vadd.f32 %v4008_v5, %v308_v4  ;;  %v388_v17 = vpop.f32.mrb[1].mxu1 }
 0x237   :  { %v389_v18 = vadd.f32 %v388_v17, %v308_v4 }
 0x238   :  { %v3547_v19 = vmul.f32 -1.442695, %v394_v8 }
 0x239   :  { %v3546_v20 = vmul.f32 -1.442695, %v389_v18 }
 0x23a   :  { %4659 = vpow2.f32 %v3547_v19 }
 0x23b   :  { %4661 = vpow2.f32 %v3546_v20 }
 0x23c   :  { %v4011_v21 = vpop.f32.mrb[2].mxu1 }
 0x23d   :  { %v404_v22 = vadd.f32 %v4011_v21, %v308_v4  ;;  %v398_v23 = vpop.f32.mrb[3].mxu1 }
 0x23e   :  { %v399_v24 = vadd.f32 %v398_v23, %v308_v4  ;;  %v5148_v4 = vsub.s32 4, %v5005_v6 }
 0x23f   :  { %v3549_v25 = vmul.f32 -1.442695, %v404_v22 }
 0x240   :  { %v3548_v26 = vmul.f32 -1.442695, %v399_v24 }
 0x241   :  { %4663 = vpow2.f32 %v3549_v25 }
 0x242   :  { %4665 = vpow2.f32 %v3548_v26 }
 0x244   :  { %v4660_v27 = vpop.eup %4659 }
 0x245   :  { %v4662_v28 = vpop.eup %4661  ;;  %v420_v29 = vadd.f32 1.0, %v4660_v27 }
 0x246   :  { %v419_v30 = vadd.f32 1.0, %v4662_v28 }
 0x247   :  { %4667 = vrcp.f32 %v420_v29 }
 0x248   :  { %4669 = vrcp.f32 %v419_v30 }
 0x24b   :  { %v4664_v31 = vpop.eup %4663 }
 0x24c   :  { %v4666_v32 = vpop.eup %4665  ;;  %v422_v33 = vadd.f32 1.0, %v4664_v31 }
 0x24d   :  { %v421_v34 = vadd.f32 1.0, %v4666_v32 }
 0x24e   :  { %4671 = vrcp.f32 %v422_v33  ;;  %v5169_v33 = vsub.s32 5, %v5005_v6 }
 0x24f   :  { %4673 = vrcp.f32 %v421_v34 }
 0x250   :  { %v595_v34 = vrot.slane %v5137_v2, %v5169_v33 }
 0x251   :  { %v4668_v35 = vpop.eup %4667 }
 0x252   :  { %v4670_v36 = vpop.eup %4669  ;;  %v432_v38 = vmul.f32 %v4668_v35, %v394_v8  ;;  %v575_v8 = vrot.slane %v5137_v2, %v5148_v4 }
 0x253   :  { %v431_v37 = vmul.f32 %v4670_v36, %v389_v18 }
 0x255   :  { %4020 = vmatprep.mubr.msk.f32.mxu0 %vm283_vm1, %v431_v37 }
 0x256   :  { %4021 = vmatmul.mubr.msk.f32.vlgmr.msra.gmra.mrb[8].mxu0 %vm283_vm1, %v432_v38 }
 0x258   :  { %v4672_v39 = vpop.eup %4671 }
 0x259   :  { %v4674_v40 = vpop.eup %4673  ;;  %v434_v44 = vmul.f32 %v4672_v39, %v404_v22 }
 0x25a   :  { %v433_v43 = vmul.f32 %v4674_v40, %v399_v24 }
 0x25c   :  { %4023 = vmatprep.mubr.msk.f32.mxu0 %vm283_vm1, %v433_v43 }
 0x25d   :  { %4024 = vmatmul.mubr.msk.f32.gmra.mrb[10].mxu0 %vm283_vm1, %v434_v44 }
 0x329   :  { %v4022_v46 = vpop.f32.mrb[8].mxu0 }
 0x32a   :  { %v527_v47 = vadd.f32 %v4022_v46, %v442_v45  ;;  %v521_v48 = vpop.f32.mrb[9].mxu0 }
 0x32b   :  { %v522_v49 = vadd.f32 %v521_v48, %v442_v45 }
 0x32c   :  { %v3555_v50 = vmul.f32 -1.442695, %v527_v47 }
 0x32d   :  { %v3554_v51 = vmul.f32 -1.442695, %v522_v49 }
 0x32e   :  { %4675 = vpow2.f32 %v3555_v50 }
 0x32f   :  { %4677 = vpow2.f32 %v3554_v51 }
 0x330   :  { %v4025_v52 = vpop.f32.mrb[10].mxu0 }
 0x331   :  { %v537_v53 = vadd.f32 %v4025_v52, %v442_v45  ;;  %v531_v54 = vpop.f32.mrb[11].mxu0 }
 0x332   :  { %v532_v55 = vadd.f32 %v531_v54, %v442_v45 }
 0x333   :  { %v3557_v56 = vmul.f32 -1.442695, %v537_v53 }
 0x334   :  { %v3556_v57 = vmul.f32 -1.442695, %v532_v55 }
 0x335   :  { %4679 = vpow2.f32 %v3557_v56 }
 0x336   :  { %4681 = vpow2.f32 %v3556_v57 }
 0x338   :  { %v4676_v58 = vpop.eup %4675 }
 0x339   :  { %v4678_v59 = vpop.eup %4677  ;;  %v553_v60 = vadd.f32 1.0, %v4676_v58 }
 0x33a   :  { %v552_v61 = vadd.f32 1.0, %v4678_v59 }
 0x33b   :  { %4683 = vrcp.f32 %v553_v60  ;;  %v4926_v60 = vmov 0.0  }
 0x33c   :  { %4685 = vrcp.f32 %v552_v61  ;;  %4026 = vmatprep.subr.bf16.mxu0 %v4926_v60  ;;  %4030 = vmatprep.mubr.msk.bf16.mxu0 %vm4927_vm4, %v4926_v60 }
 0x33f   :  { %v4680_v62 = vpop.eup %4679 }
 0x340   :  { %v4682_v63 = vpop.eup %4681  ;;  %v555_v0 = vadd.f32 1.0, %v4680_v62 }
 0x341   :  { %v554_v5 = vadd.f32 1.0, %v4682_v63 }
 0x342   :  { %4687 = vrcp.f32 %v555_v0  ;;  %v3565_v0 = vld [vmem:[%s5935_s6 + $0x28] sm:$0xff] }
 0x343   :  { %4689 = vrcp.f32 %v554_v5 }
 0x345   :  { %v4684_v17 = vpop.eup %4683 }
 0x346   :  { %v4686_v18 = vpop.eup %4685  ;;  %v5152_v19 = vmul.f32 %v4684_v17, %v527_v47 }
 0x347   :  { %v5154_v20 = vmul.f32 %v4686_v18, %v522_v49 }
 0x348   :  { %v577_v21 = vmul.f32 %v575_v8, %v5152_v19  ;;  %v5182_v63 = vadd.f32 %v5152_v19, %v5088_v11 }
 0x349   :  { %v576_v22 = vmul.f32 %v575_v8, %v5154_v20  ;;  %v5175_v59 = vadd.f32 %v5154_v20, %v5078_v1  ;;  %v3564_v1 = vld [vmem:[%s5935_s6 + $0x20] sm:$0xff] }
 0x34a   :  { %v583_v23 = vsel %vm283_vm1, %v577_v21, 0.0  ;;  %v4407_v5 = vpack.c.bf16 %v3565_v0, %v3564_v1  ;;  %v5235_v1 = vsub.s32 3, %v5005_v6 }
 0x34b   :  { %584 = vadd.xlane.f32.xlu1 %v583_v23  ;;  %v580_v24 = vsel %vm283_vm1, %v576_v22, 0.0 }
 0x34c   :  { %v4688_v25 = vpop.eup %4687  ;;  %581 = vadd.xlane.f32.xlu0 %v580_v24  ;;  %4408 = vmatprep.subr.bf16.mxu1 %v4407_v5  ;;  %v811_v0 = vrot.slane %v5137_v2, %v5235_v1 }
 0x34d   :  { %v4690_v26 = vpop.eup %4689  ;;  %v5160_v27 = vmul.f32 %v4688_v25, %v537_v53  ;;  %4410 = vmatpush3.bf16.msra.mxu1 %v4407_v5 }
 0x34e   :  { %v5162_v28 = vmul.f32 %v4690_v26, %v532_v55 }
 0x34f   :  { %v579_v31 = vmul.f32 %v575_v8, %v5160_v27 }
 0x350   :  { %v578_v29 = vmul.f32 %v575_v8, %v5162_v28 }
 0x351   :  { %v589_v32 = vsel %vm283_vm1, %v579_v31, 0.0 }
 0x352   :  { %v586_v30 = vsel %vm283_vm1, %v578_v29, 0.0  ;;  %v5202_v29 = vld [vmem:[%s5931_s2] sm:$0xff]  }
 0x353   :  { %587 = vadd.xlane.f32.xlu0 %v586_v30 }
 0x357   :  { %590 = vadd.xlane.f32.xlu0 %v589_v32 }
 0x3d8   :  { %v585_v35 = vpop.xlane.xlu1 %584 }
 0x3d9   :  { %v597_v36 = vadd.f32 %v595_v34, %v585_v35  ;;  %v582_v37 = vpop.xlane.xlu0 %581 }
 0x3da   :  { %v596_v38 = vadd.f32 %v595_v34, %v582_v37 }
 0x3db   :  { %v3559_v39 = vmul.f32 -1.442695, %v597_v36 }
 0x3dc   :  { %v3558_v40 = vmul.f32 -1.442695, %v596_v38  ;;  %v3572_v38 = vld [vmem:[%s5935_s6 + $0x40] sm:$0xff] }
 0x3dd   :  { %4691 = vpow2.f32 %v3559_v39  ;;  %v3573_v39 = vld [vmem:[%s5935_s6 + $0x48] sm:$0xff] }
 0x3de   :  { %4693 = vpow2.f32 %v3558_v40  ;;  %v4415_v40 = vpack.c.bf16 %v3573_v39, %v3572_v38 }
 0x3e0   :  { %v588_v43 = vpop.xlane.xlu0 %587 }
 0x3e1   :  { %v598_v44 = vadd.f32 %v595_v34, %v588_v43  ;;  %v3574_v43 = vld [vmem:[%s5935_s6 + $0x50] sm:$0xff] }
 0x3e3   :  { %v3560_v45 = vmul.f32 -1.442695, %v598_v44  ;;  %v3575_v44 = vld [vmem:[%s5935_s6 + $0x58] sm:$0xff] }
 0x3e4   :  { %v591_v46 = vpop.xlane.xlu0 %590 }
 0x3e5   :  { %4695 = vpow2.f32 %v3560_v45  ;;  %v599_v47 = vadd.f32 %v595_v34, %v591_v46  ;;  %v4419_v45 = vpack.c.bf16 %v3575_v44, %v3574_v43  ;;  %v707_v46 = vrot.slane %v5137_v2, %v5050_v16  ;;  %v3585_v2 = vld [vmem:[%s5934_s5 + $0x70] sm:$0xff] }
 0x3e7   :  { %v4692_v48 = vpop.eup %4691  ;;  %v3561_v49 = vmul.f32 -1.442695, %v599_v47 }
 0x3e8   :  { %v4694_v50 = vpop.eup %4693  ;;  %v613_v51 = vadd.f32 1.0, %v4692_v48 }
 0x3e9   :  { %v612_v52 = vadd.f32 1.0, %v4694_v50  ;;  %4697 = vpow2.f32 %v3561_v49 }
 0x3ea   :  { %4699 = vrcp.f32 %v613_v51 }
 0x3eb   :  { %4701 = vrcp.f32 %v612_v52 }
 0x3ef   :  { %v4696_v53 = vpop.eup %4695 }
 0x3f0   :  { %v614_v54 = vadd.f32 1.0, %v4696_v53 }
 0x3f2   :  { %4703 = vrcp.f32 %v614_v54 }
 0x3f3   :  { %v4698_v55 = vpop.eup %4697 }
 0x3f4   :  { %v4700_v56 = vpop.eup %4699  ;;  %v615_v57 = vadd.f32 1.0, %v4698_v55 }
 0x3f5   :  { %v4702_v58 = vpop.eup %4701  ;;  %631 = vperm.xlu0 %4618, %v4700_v56  }
 0x3f6   :  { %4705 = vrcp.f32 %v615_v57  ;;  %626 = vperm.xlu1 %4619, %v4702_v58  }
 0x3f9   :  { %983 = vrot.lane.b32.xlu0 %v5175_v59, %s4924_s30 }
 0x3fc   :  { %v4704_v61 = vpop.eup %4703 }
 0x3fd   :  { %636 = vperm.xlu1 %4619, %v4704_v61  }
 0x400   :  { %v4706_v62 = vpop.eup %4705 }
 0x401   :  { %641 = vperm.xlu1 %4619, %v4706_v62  }
 0x405   :  { %985 = vrot.lane.b32.xlu1 %v5182_v63, %s4924_s30 }
 0x474   :  { %v632_v11 = vpop.permute.xlu0 %631 }
 0x475   :  { %v645_v8 = vmul.f32 %v632_v11, %v5152_v19  ;;  %v627_v17 = vpop.permute.xlu1 %626  ;;  %v3566_v19 = vld [vmem:[%s5935_s6 + $0x30] sm:$0xff] }
 0x476   :  { %v644_v18 = vmul.f32 %v627_v17, %v5154_v20  ;;  %v3567_v20 = vld [vmem:[%s5935_s6 + $0x38] sm:$0xff] }
 0x477   :  { %v4411_v30 = vpack.c.bf16 %v3567_v20, %v3566_v19  ;;  %v3590_v19 = vld [vmem:[%s5934_s5 + $0x98] sm:$0xff] }
 0x478   :  { %v648_v21 = vpack.c.bf16 %v645_v8, %v644_v18 }
 0x479   :  { %4412 = vmatprep.subr.bf16.mxu1 %v4411_v30 }
 0x47a   :  { %4027 = vmatpush3.bf16.msra.mxu0 %v648_v21  ;;  %4414 = vmatpush3.bf16.msra.mxu1 %v4411_v30  ;;  %v3591_v30 = vld [vmem:[%s5934_s5 + $0xa0] sm:$0xff] }
 0x47b   :  { %4028 = vmatprep.subr.bf16.mxu0 %v4926_v60 }
 0x47c   :  { %v637_v22 = vpop.permute.xlu1 %636 }
 0x47d   :  { %v646_v24 = vmul.f32 %v637_v22, %v5162_v28 }
 0x480   :  { %v642_v23 = vpop.permute.xlu1 %641 }
 0x481   :  { %v647_v25 = vmul.f32 %v642_v23, %v5160_v27 }
 0x483   :  { %v649_v26 = vpack.c.bf16 %v647_v25, %v646_v24  ;;  %v3588_v24 = vld [vmem:[%s5934_s5 + $0x88] sm:$0xff] }
 0x485   :  { %4029 = vmatpush3.bf16.msra.mxu0 %v649_v26  ;;  %v3589_v26 = vld [vmem:[%s5934_s5 + $0x90] sm:$0xff] }
 0x486   :  { %4416 = vmatprep.subr.bf16.mxu0 %v4415_v40  ;;  %v4435_v20 = vpack.c.bf16 %v3590_v19, %v3589_v26 }
 0x488   :  { %4031 = vmatmul.mubr.msk.bf16.vlgmr.msra.gmra.mrb[12].mxu0 %vm283_vm1, %v5202_v29 }
 0x489   :  { %4418 = vmatpush3.bf16.msra.mxu0 %v4415_v40 }
 0x48a   :  { %4420 = vmatprep.subr.bf16.mxu0 %v4419_v45 }
 0x48d   :  { %4422 = vmatpush3.bf16.msra.mxu0 %v4419_v45 }
 0x55b   :  { %v692_v31 = vpop.f32.mrb[12].mxu0 }
 0x55c   :  { %v693_v32 = vadd.f32 %v692_v31, %v5021_v10  ;;  %v4032_v34 = vpop.f32.mrb[13].mxu0  ;;  %v3592_v31 = vld [vmem:[%s5934_s5 + $0xa8] sm:$0xff] }
 0x55d   :  { %v695_v35 = vpop.f32.mrb[14].mxu0  ;;  %v3593_v34 = vld [vmem:[%s5934_s5 + $0xb0] sm:$0xff] }
 0x55e   :  { %v696_v36 = vadd.f32 %v695_v35, %v5021_v10  ;;  %v4033_v37 = vpop.f32.mrb[15].mxu0  ;;  %4042 = vmatprep.mubr.msk.f32.mxu1 %vm283_vm1, %v693_v32  ;;  %v4439_v32 = vpack.c.bf16 %v3592_v31, %v3591_v30  ;;  %v3594_v35 = vld [vmem:[%s5934_s5 + $0xb8] sm:$0xff] }
 0x560   :  { %4043 = vmatmul.mubr.msk.f32.vlgmr.msra.gmra.mrb[4].mxu1 %vm283_vm1, %v696_v36  ;;  %v4443_v36 = vpack.c.bf16 %v3594_v35, %v3593_v34 }
 0x633   :  { %v4044_v47 = vpop.f32.mrb[4].mxu1 }
 0x634   :  { %v786_v48 = vadd.f32 %v4044_v47, %v707_v46  ;;  %v780_v49 = vpop.f32.mrb[5].mxu1  ;;  %v5295_v47 = vadd.f32 %v5162_v28, %v5102_v41 }
 0x635   :  { %v781_v50 = vadd.f32 %v780_v49, %v707_v46  ;;  %v984_v49 = vpop.permute.xlu0 %983 }
 0x636   :  { %v3571_v51 = vmul.f32 -1.442695, %v786_v48 }
 0x637   :  { %v3570_v52 = vmul.f32 -1.442695, %v781_v50 }
 0x638   :  { %4707 = vpow2.f32 %v3571_v51 }
 0x639   :  { %4709 = vpow2.f32 %v3570_v52 }
 0x642   :  { %v4708_v53 = vpop.eup %4707 }
 0x643   :  { %v4710_v54 = vpop.eup %4709  ;;  %v796_v55 = vadd.f32 1.0, %v4708_v53 }
 0x644   :  { %v795_v56 = vadd.f32 1.0, %v4710_v54 }
 0x645   :  { %4711 = vrcp.f32 %v796_v55 }
 0x646   :  { %4713 = vrcp.f32 %v795_v56 }
 0x64f   :  { %v4712_v57 = vpop.eup %4711 }
 0x650   :  { %v4714_v58 = vpop.eup %4713  ;;  %v802_v62 = vmul.f32 %v4712_v57, %v786_v48  ;;  %v5301_v48 = vadd.f32 %v5160_v27, %v5106_v42 }
 0x651   :  { %v801_v61 = vmul.f32 %v4714_v58, %v781_v50  ;;  %v986_v50 = vpop.permute.xlu1 %985 }
 0x653   :  { %4053 = vmatprep.mubr.msk.f32.mxu0 %vm283_vm1, %v801_v61 }
 0x654   :  { %4054 = vmatmul.mubr.msk.f32.vlgmr.msra.gmra.mrb[16].mxu0 %vm283_vm1, %v802_v62 }
 0x655   :  { %4058 = vmatprep.mubr.msk.bf16.mxu0 %vm173_vm0, %v5010_v7  ;;  %v3583_v7 = vld [vmem:[%s5934_s5 + $0x60] sm:$0xff] }
 0x727   :  { %v4055_v5 = vpop.f32.mrb[16].mxu0 }
 0x728   :  { %v890_v11 = vadd.f32 %v4055_v5, %v811_v0  ;;  %v884_v8 = vpop.f32.mrb[17].mxu0  ;;  %v3604_v5 = vld [vmem:[%s5935_s6 + $0x68] sm:$0xff] }
 0x729   :  { %v885_v17 = vadd.f32 %v884_v8, %v811_v0  ;;  %v3603_v0 = vld [vmem:[%s5935_s6 + $0x60] sm:$0xff]  ;;  %v3605_v8 = vld [vmem:[%s5935_s6 + $0x70] sm:$0xff] }
 0x72a   :  { %v5240_v18 = vadd.f32 %v890_v11, %v5021_v10  ;;  %v4447_v11 = vpack.c.bf16 %v3604_v5, %v3603_v0 }
 0x72b   :  { %v5243_v21 = vadd.f32 %v885_v17, %v5021_v10  ;;  %v3584_v10 = vld [vmem:[%s5934_s5 + $0x68] sm:$0xff]  ;;  %v3606_v17 = vld [vmem:[%s5935_s6 + $0x78] sm:$0xff] }
 0x72c   :  { %v4423_v23 = vpack.c.bf16 %v3584_v10, %v3583_v7  ;;  %4448 = vmatprep.subr.bf16.mxu1 %v4447_v11  ;;  %v5333_v7 = vld [vmem:[%s5936_s7 + $0x8] sm:$0x3f] }
 0x72d   :  { %v897_v22 = vpack.c.bf16 %v5240_v18, %v5243_v21  ;;  %4450 = vmatpush3.bf16.msra.mxu1 %v4447_v11  ;;  %v1019_v10 = vrot.slane %v5333_v7, %v5016_v9 }
 0x72f   :  { %4056 = vmatprep.subr.bf16.mxu0 %v897_v22 }
 0x730   :  { %4057 = vmatpush3.bf16.msra.mxu0 %v897_v22  ;;  %v4451_v22 = vpack.c.bf16 %v3606_v17, %v3605_v8 }
 0x731   :  { %4424 = vmatprep.subr.bf16.mxu0 %v4423_v23 }
 0x732   :  { %4452 = vmatprep.subr.bf16.mxu1 %v4451_v22 }
 0x733   :  { %4059 = vmatmul.mubr.msk.bf16.vlgmr.msra.gmra.mrb[20].mxu0 %vm173_vm0, %v5028_v12  ;;  %v3586_v12 = vld [vmem:[%s5934_s5 + $0x78] sm:$0xff]  ;;  %4454 = vmatpush3.bf16.msra.mxu1 %v4451_v22 }
 0x734   :  { %4062 = vmatprep.mubr.msk.bf16.mxu0 %vm173_vm0, %v5033_v13  ;;  %v4427_v13 = vpack.c.bf16 %v3586_v12, %v3585_v2  ;;  %4426 = vmatpush3.bf16.msra.mxu0 %v4423_v23 }
 0x735   :  { %4110 = vmatprep.subr.bf16.mxu1 %v4926_v60 }
 0x736   :  { %4428 = vmatprep.subr.bf16.mxu0 %v4427_v13 }
 0x738   :  { %4430 = vmatpush3.bf16.msra.mxu0 %v4427_v13 }
 0x73b   :  { %4063 = vmatmul.mubr.msk.bf16.gmra.mrb[24].mxu0 %vm173_vm0, %v5042_v14  ;;  %v3587_v14 = vld [vmem:[%s5934_s5 + $0x80] sm:$0xff] }
 0x73c   :  { %v4431_v25 = vpack.c.bf16 %v3588_v24, %v3587_v14 }
 0x73e   :  { %4432 = vmatprep.subr.bf16.mxu0 %v4431_v25 }
 0x73f   :  { %4434 = vmatpush3.bf16.msra.mxu0 %v4431_v25 }
 0x740   :  { %4436 = vmatprep.subr.bf16.mxu0 %v4435_v20 }
 0x743   :  { %4438 = vmatpush3.bf16.msra.mxu0 %v4435_v20 }
 0x744   :  { %4440 = vmatprep.subr.bf16.mxu0 %v4439_v32 }
 0x747   :  { %4442 = vmatpush3.bf16.msra.mxu0 %v4439_v32 }
 0x748   :  { %4444 = vmatprep.subr.bf16.mxu0 %v4443_v36 }
 0x74b   :  { %4446 = vmatpush3.bf16.msra.mxu0 %v4443_v36 }
 0x806   :  { %v4060_v37 = vpop.f32.mrb[20].mxu0 }
 0x807   :  { %v932_v38 = vpop.f32.mrb[21].mxu0 }
 0x808   :  { %v4061_v39 = vpop.f32.mrb[22].mxu0 }
 0x809   :  { %v935_v40 = vpop.f32.mrb[23].mxu0 }
 0x80e   :  { %v4064_v43 = vpop.f32.mrb[24].mxu0 }
 0x80f   :  { %v948_v44 = vpop.f32.mrb[25].mxu0 }
 0x810   :  { %967 = vrot.lane.b32.xlu0 %v948_v44, %s4925_s20  ;;  %v4065_v45 = vpop.f32.mrb[26].mxu0 }
 0x811   :  { %v951_v46 = vpop.f32.mrb[27].mxu0 }
 0x812   :  { %969 = vrot.lane.b32.xlu1 %v951_v46, %s4925_s20 }
 0x814   :  { %971 = vrot.lane.b32.xlu0 %v4064_v43, %s4925_s20 }
 0x816   :  { %973 = vrot.lane.b32.xlu1 %v4065_v45, %s4925_s20 }
 0x818   :  { %987 = vrot.lane.b32.xlu0 %v5295_v47, %s4924_s30 }
 0x81a   :  { %989 = vrot.lane.b32.xlu1 %v5301_v48, %s4924_s30 }
 0x882   :  { %v968_v51 = vpop.permute.xlu0 %967 }
 0x883   :  { %v995_v52 = vsel %vm283_vm1, %v932_v38, %v968_v51 }
 0x884   :  { %v970_v53 = vpop.permute.xlu1 %969  ;;  %v999_v54 = vsel %vm288_vm2, %v995_v52, %v984_v49 }
 0x885   :  { %v996_v41 = vsel %vm283_vm1, %v935_v40, %v970_v53  ;;  %4090 = vmatprep.mubr.msk.f32.mxu0 %vm309_vm3, %v999_v54  ;;  %v1153_v53 = vrot.slane %v5333_v7, %v5047_v15 }
 0x886   :  { %v1000_v28 = vsel %vm288_vm2, %v996_v41, %v986_v50  ;;  %v972_v55 = vpop.permute.xlu0 %971 }
 0x887   :  { %4091 = vmatmul.mubr.msk.f32.vlgmr.msra.gmra.mrb[18].mxu0 %vm309_vm3, %v1000_v28  ;;  %v997_v27 = vsel %vm283_vm1, %v4060_v37, %v972_v55 }
 0x888   :  { %v974_v42 = vpop.permute.xlu1 %973 }
 0x889   :  { %v998_v58 = vsel %vm283_vm1, %v4061_v39, %v974_v42 }
 0x88a   :  { %v988_v56 = vpop.permute.xlu0 %987 }
 0x88b   :  { %v1001_v57 = vsel %vm288_vm2, %v997_v27, %v988_v56 }
 0x88c   :  { %4093 = vmatprep.mubr.msk.f32.mxu0 %vm309_vm3, %v1001_v57  ;;  %v990_v61 = vpop.permute.xlu1 %989 }
 0x88d   :  { %v1002_v62 = vsel %vm288_vm2, %v998_v58, %v990_v61 }
 0x88e   :  { %4094 = vmatmul.mubr.msk.f32.gmra.mrb[28].mxu0 %vm309_vm3, %v1002_v62 }
 0x95a   :  { %v4092_v2 = vpop.f32.mrb[18].mxu0 }
 0x95b   :  { %v1104_v23 = vadd.f32 %v4092_v2, %v1019_v10  ;;  %v1098_v12 = vpop.f32.mrb[19].mxu0 }
 0x95c   :  { %v1099_v13 = vadd.f32 %v1098_v12, %v1019_v10  ;;  %v1286_v12 = vrot.slane %v5333_v7, %v5148_v4 }
 0x95d   :  { %v3600_v14 = vmul.f32 -1.442695, %v1104_v23 }
 0x95e   :  { %v3599_v24 = vmul.f32 -1.442695, %v1099_v13 }
 0x95f   :  { %4715 = vpow2.f32 %v3600_v14 }
 0x960   :  { %4717 = vpow2.f32 %v3599_v24 }
 0x961   :  { %v4095_v25 = vpop.f32.mrb[28].mxu0 }
 0x962   :  { %v1114_v26 = vadd.f32 %v4095_v25, %v1019_v10  ;;  %v1108_v19 = vpop.f32.mrb[29].mxu0 }
 0x963   :  { %v1109_v20 = vadd.f32 %v1108_v19, %v1019_v10 }
 0x964   :  { %v3602_v30 = vmul.f32 -1.442695, %v1114_v26 }
 0x965   :  { %v3601_v31 = vmul.f32 -1.442695, %v1109_v20 }
 0x966   :  { %4719 = vpow2.f32 %v3602_v30 }
 0x967   :  { %4721 = vpow2.f32 %v3601_v31 }
 0x969   :  { %v4716_v32 = vpop.eup %4715 }
 0x96a   :  { %v4718_v34 = vpop.eup %4717  ;;  %v1130_v35 = vadd.f32 1.0, %v4716_v32 }
 0x96b   :  { %v1129_v36 = vadd.f32 1.0, %v4718_v34 }
 0x96c   :  { %4723 = vrcp.f32 %v1130_v35 }
 0x96d   :  { %4725 = vrcp.f32 %v1129_v36 }
 0x970   :  { %v4720_v37 = vpop.eup %4719 }
 0x971   :  { %v4722_v38 = vpop.eup %4721  ;;  %v1132_v39 = vadd.f32 1.0, %v4720_v37 }
 0x972   :  { %v1131_v40 = vadd.f32 1.0, %v4722_v38 }
 0x973   :  { %4727 = vrcp.f32 %v1132_v39 }
 0x974   :  { %4729 = vrcp.f32 %v1131_v40  ;;  %v1306_v40 = vrot.slane %v5333_v7, %v5169_v33 }
 0x976   :  { %v4724_v43 = vpop.eup %4723 }
 0x977   :  { %v4726_v44 = vpop.eup %4725  ;;  %v1142_v46 = vmul.f32 %v4724_v43, %v1104_v23 }
 0x978   :  { %v1141_v45 = vmul.f32 %v4726_v44, %v1099_v13 }
 0x97a   :  { %4104 = vmatprep.mubr.msk.f32.mxu1 %vm283_vm1, %v1141_v45 }
 0x97b   :  { %4105 = vmatmul.mubr.msk.f32.vlgmr.msra.gmra.mrb[6].mxu1 %vm283_vm1, %v1142_v46 }
 0x97d   :  { %v4728_v49 = vpop.eup %4727 }
 0x97e   :  { %v4730_v50 = vpop.eup %4729  ;;  %v1144_v52 = vmul.f32 %v4728_v49, %v1114_v26 }
 0x97f   :  { %v1143_v51 = vmul.f32 %v4730_v50, %v1109_v20 }
 0x981   :  { %4107 = vmatprep.mubr.msk.f32.mxu1 %vm283_vm1, %v1143_v51 }
 0x982   :  { %4108 = vmatmul.mubr.msk.f32.gmra.mrb[8].mxu1 %vm283_vm1, %v1144_v52 }
 0x983   :  { %4114 = vmatprep.mubr.msk.bf16.mxu1 %vm4927_vm4, %v4926_v60 }
 0xa4e   :  { %v4106_v54 = vpop.f32.mrb[6].mxu1 }
 0xa4f   :  { %v1238_v41 = vadd.f32 %v4106_v54, %v1153_v53  ;;  %v1232_v28 = vpop.f32.mrb[7].mxu1 }
 0xa50   :  { %v1233_v55 = vadd.f32 %v1232_v28, %v1153_v53 }
 0xa51   :  { %v3612_v42 = vmul.f32 -1.442695, %v1238_v41 }
 0xa52   :  { %v3611_v27 = vmul.f32 -1.442695, %v1233_v55 }
 0xa53   :  { %4731 = vpow2.f32 %v3612_v42 }
 0xa54   :  { %4733 = vpow2.f32 %v3611_v27 }
 0xa55   :  { %v4109_v56 = vpop.f32.mrb[8].mxu1 }
 0xa56   :  { %v1248_v57 = vadd.f32 %v4109_v56, %v1153_v53  ;;  %v1242_v58 = vpop.f32.mrb[9].mxu1 }
 0xa57   :  { %v1243_v61 = vadd.f32 %v1242_v58, %v1153_v53 }
 0xa58   :  { %v3614_v62 = vmul.f32 -1.442695, %v1248_v57 }
 0xa59   :  { %v3613_v0 = vmul.f32 -1.442695, %v1243_v61 }
 0xa5a   :  { %4735 = vpow2.f32 %v3614_v62 }
 0xa5b   :  { %4737 = vpow2.f32 %v3613_v0 }
 0xa5d   :  { %v4732_v5 = vpop.eup %4731 }
 0xa5e   :  { %v4734_v11 = vpop.eup %4733  ;;  %v1264_v8 = vadd.f32 1.0, %v4732_v5 }
 0xa5f   :  { %v1263_v17 = vadd.f32 1.0, %v4734_v11 }
 0xa60   :  { %4739 = vrcp.f32 %v1264_v8 }
 0xa61   :  { %4741 = vrcp.f32 %v1263_v17 }
 0xa64   :  { %v4736_v22 = vpop.eup %4735 }
 0xa65   :  { %v4738_v10 = vpop.eup %4737  ;;  %v1266_v2 = vadd.f32 1.0, %v4736_v22 }
 0xa66   :  { %v1265_v23 = vadd.f32 1.0, %v4738_v10  ;;  %v3620_v10 = vld [vmem:[%s5935_s6 + $0x80] sm:$0xff] }
 0xa67   :  { %4743 = vrcp.f32 %v1266_v2 }
 0xa68   :  { %4745 = vrcp.f32 %v1265_v23 }
 0xa6a   :  { %v4740_v13 = vpop.eup %4739 }
 0xa6b   :  { %v4742_v14 = vpop.eup %4741  ;;  %v5347_v24 = vmul.f32 %v4740_v13, %v1238_v41 }
 0xa6c   :  { %v5349_v25 = vmul.f32 %v4742_v14, %v1233_v55 }
 0xa6d   :  { %v1288_v26 = vmul.f32 %v1286_v12, %v5347_v24  ;;  %v5373_v22 = vadd.f32 %v5347_v24, %v5182_v63 }
 0xa6e   :  { %v1287_v19 = vmul.f32 %v1286_v12, %v5349_v25  ;;  %v5367_v11 = vadd.f32 %v5349_v25, %v5175_v59  ;;  %v3621_v59 = vld [vmem:[%s5935_s6 + $0x88] sm:$0xff] }
 0xa6f   :  { %v1294_v20 = vsel %vm283_vm1, %v1288_v26, 0.0  ;;  %v4455_v2 = vpack.c.bf16 %v3621_v59, %v3620_v10 }
 0xa70   :  { %1295 = vadd.xlane.f32.xlu1 %v1294_v20  ;;  %v1291_v30 = vsel %vm283_vm1, %v1287_v19, 0.0 }
 0xa71   :  { %v4744_v31 = vpop.eup %4743  ;;  %1292 = vadd.xlane.f32.xlu0 %v1291_v30  ;;  %4456 = vmatprep.subr.bf16.mxu0 %v4455_v2 }
 0xa72   :  { %v4746_v32 = vpop.eup %4745  ;;  %v5355_v34 = vmul.f32 %v4744_v31, %v1248_v57  ;;  %4458 = vmatpush3.bf16.msra.mxu0 %v4455_v2 }
 0xa73   :  { %v5357_v35 = vmul.f32 %v4746_v32, %v1243_v61 }
 0xa74   :  { %v1290_v38 = vmul.f32 %v1286_v12, %v5355_v34 }
 0xa75   :  { %v1289_v36 = vmul.f32 %v1286_v12, %v5357_v35 }
 0xa76   :  { %v1300_v39 = vsel %vm283_vm1, %v1290_v38, 0.0 }
 0xa77   :  { %v1297_v37 = vsel %vm283_vm1, %v1289_v36, 0.0 }
 0xa78   :  { %1298 = vadd.xlane.f32.xlu0 %v1297_v37 }
 0xa7c   :  { %1301 = vadd.xlane.f32.xlu0 %v1300_v39 }
 0xafd   :  { %v1296_v43 = vpop.xlane.xlu1 %1295 }
 0xafe   :  { %v1308_v44 = vadd.f32 %v1306_v40, %v1296_v43  ;;  %v1293_v45 = vpop.xlane.xlu0 %1292 }
 0xaff   :  { %v1307_v46 = vadd.f32 %v1306_v40, %v1293_v45  ;;  %v3629_v45 = vld [vmem:[%s5935_s6 + $0xa8] sm:$0xff] }
 0xb00   :  { %v3616_v49 = vmul.f32 -1.442695, %v1308_v44  ;;  %v3628_v44 = vld [vmem:[%s5935_s6 + $0xa0] sm:$0xff] }
 0xb01   :  { %v3615_v50 = vmul.f32 -1.442695, %v1307_v46  ;;  %v4463_v46 = vpack.c.bf16 %v3629_v45, %v3628_v44  ;;  %v3650_v44 = vld [vmem:[%s5934_s5 + $0x118] sm:$0xff] }
 0xb02   :  { %4747 = vpow2.f32 %v3616_v49  ;;  %v3630_v49 = vld [vmem:[%s5935_s6 + $0xb0] sm:$0xff] }
 0xb03   :  { %4749 = vpow2.f32 %v3615_v50  ;;  %v3631_v50 = vld [vmem:[%s5935_s6 + $0xb8] sm:$0xff] }
 0xb05   :  { %v1299_v51 = vpop.xlane.xlu0 %1298 }
 0xb06   :  { %v1309_v52 = vadd.f32 %v1306_v40, %v1299_v51  ;;  %v4467_v51 = vpack.c.bf16 %v3631_v50, %v3630_v49 }
 0xb08   :  { %v3617_v53 = vmul.f32 -1.442695, %v1309_v52  ;;  %v1410_v52 = vrot.slane %v5333_v7, %v5050_v16 }
 0xb09   :  { %v1302_v54 = vpop.xlane.xlu0 %1301 }
 0xb0a   :  { %4751 = vpow2.f32 %v3617_v53  ;;  %v1310_v41 = vadd.f32 %v1306_v40, %v1302_v54 }
 0xb0c   :  { %v4748_v28 = vpop.eup %4747  ;;  %v3618_v55 = vmul.f32 -1.442695, %v1310_v41 }
 0xb0d   :  { %v4750_v42 = vpop.eup %4749  ;;  %v1324_v27 = vadd.f32 1.0, %v4748_v28 }
 0xb0e   :  { %v1323_v56 = vadd.f32 1.0, %v4750_v42  ;;  %4753 = vpow2.f32 %v3618_v55 }
 0xb0f   :  { %4755 = vrcp.f32 %v1324_v27 }
 0xb10   :  { %4757 = vrcp.f32 %v1323_v56 }
 0xb14   :  { %v4752_v57 = vpop.eup %4751 }
 0xb15   :  { %v1325_v58 = vadd.f32 1.0, %v4752_v57 }
 0xb17   :  { %4759 = vrcp.f32 %v1325_v58 }
 0xb18   :  { %v4754_v61 = vpop.eup %4753 }
 0xb19   :  { %v4756_v62 = vpop.eup %4755  ;;  %v1326_v0 = vadd.f32 1.0, %v4754_v61 }
 0xb1a   :  { %v4758_v5 = vpop.eup %4757  ;;  %1342 = vperm.xlu0 %4618, %v4756_v62  }
 0xb1b   :  { %4761 = vrcp.f32 %v1326_v0  ;;  %1337 = vperm.xlu1 %4619, %v4758_v5  }
 0xb1e   :  { %1686 = vrot.lane.b32.xlu0 %v5367_v11, %s4924_s30 }
 0xb21   :  { %v4760_v8 = vpop.eup %4759 }
 0xb22   :  { %1347 = vperm.xlu1 %4619, %v4760_v8   ;;  %v1514_v8 = vrot.slane %v5333_v7, %v5235_v1  ;;  %v3639_v7 = vld [vmem:[%s5934_s5 + $0xc0] sm:$0xff] }
 0xb25   :  { %v4762_v17 = vpop.eup %4761 }
 0xb26   :  { %1352 = vperm.xlu1 %4619, %v4762_v17  }
 0xb2a   :  { %1688 = vrot.lane.b32.xlu1 %v5373_v22, %s4924_s30 }
 0xb99   :  { %v1343_v23 = vpop.permute.xlu0 %1342 }
 0xb9a   :  { %v1356_v12 = vmul.f32 %v1343_v23, %v5347_v24  ;;  %v1338_v13 = vpop.permute.xlu1 %1337  ;;  %v3622_v24 = vld [vmem:[%s5935_s6 + $0x90] sm:$0xff] }
 0xb9b   :  { %v1355_v63 = vmul.f32 %v1338_v13, %v5349_v25  ;;  %v3623_v25 = vld [vmem:[%s5935_s6 + $0x98] sm:$0xff] }
 0xb9c   :  { %v4459_v32 = vpack.c.bf16 %v3623_v25, %v3622_v24  ;;  %v3644_v24 = vld [vmem:[%s5934_s5 + $0xe8] sm:$0xff] }
 0xb9d   :  { %v1359_v14 = vpack.c.bf16 %v1356_v12, %v1355_v63  ;;  %v5436_v63 = vld [vmem:[%s5930_s1 + $0x8] sm:$0xff]  }
 0xb9e   :  { %4460 = vmatprep.subr.bf16.mxu0 %v4459_v32 }
 0xb9f   :  { %4111 = vmatpush3.bf16.msra.mxu1 %v1359_v14  ;;  %4462 = vmatpush3.bf16.msra.mxu0 %v4459_v32  ;;  %v3640_v14 = vld [vmem:[%s5934_s5 + $0xc8] sm:$0xff]  ;;  %v3645_v32 = vld [vmem:[%s5934_s5 + $0xf0] sm:$0xff] }
 0xba0   :  { %4112 = vmatprep.subr.bf16.mxu1 %v4926_v60 }
 0xba1   :  { %v1348_v26 = vpop.permute.xlu1 %1347 }
 0xba2   :  { %v1357_v20 = vmul.f32 %v1348_v26, %v5357_v35  ;;  %v3641_v26 = vld [vmem:[%s5934_s5 + $0xd0] sm:$0xff] }
 0xba5   :  { %v1353_v19 = vpop.permute.xlu1 %1352 }
 0xba6   :  { %v1358_v30 = vmul.f32 %v1353_v19, %v5355_v34  ;;  %v4471_v19 = vpack.c.bf16 %v3640_v14, %v3639_v7  ;;  %v3661_v7 = vld [vmem:[%s5935_s6 + $0xd0] sm:$0xff]  ;;  %v3662_v14 = vld [vmem:[%s5935_s6 + $0xd8] sm:$0xff] }
 0xba8   :  { %v1360_v31 = vpack.c.bf16 %v1358_v30, %v1357_v20  ;;  %v3642_v20 = vld [vmem:[%s5934_s5 + $0xd8] sm:$0xff] }
 0xba9   :  { %v4475_v30 = vpack.c.bf16 %v3642_v20, %v3641_v26  ;;  %v4499_v26 = vpack.c.bf16 %v3662_v14, %v3661_v7 }
 0xbaa   :  { %4113 = vmatpush3.bf16.msra.mxu1 %v1360_v31  ;;  %v3643_v31 = vld [vmem:[%s5934_s5 + $0xe0] sm:$0xff] }
 0xbab   :  { %4464 = vmatprep.subr.bf16.mxu1 %v4463_v46  ;;  %v4479_v25 = vpack.c.bf16 %v3644_v24, %v3643_v31 }
 0xbad   :  { %4115 = vmatmul.mubr.msk.bf16.vlgmr.msra.gmra.mrb[12].mxu1 %vm283_vm1, %v5202_v29  ;;  %v5403_v29 = vld [vmem:[%s5930_s1] sm:$0xff]  }
 0xbae   :  { %4466 = vmatpush3.bf16.msra.mxu1 %v4463_v46 }
 0xbaf   :  { %4468 = vmatprep.subr.bf16.mxu1 %v4467_v51 }
 0xbb2   :  { %4470 = vmatpush3.bf16.msra.mxu1 %v4467_v51 }
 0xbb3   :  { %4472 = vmatprep.subr.bf16.mxu1 %v4471_v19 }
 0xc80   :  { %v1395_v36 = vpop.f32.mrb[12].mxu1 }
 0xc81   :  { %v1396_v37 = vadd.f32 %v1395_v36, %v5243_v21  ;;  %v4116_v38 = vpop.f32.mrb[13].mxu1  ;;  %v3646_v36 = vld [vmem:[%s5934_s5 + $0xf8] sm:$0xff] }
 0xc82   :  { %v1398_v39 = vpop.f32.mrb[14].mxu1  ;;  %v3647_v38 = vld [vmem:[%s5934_s5 + $0x100] sm:$0xff] }
 0xc83   :  { %v1399_v40 = vadd.f32 %v1398_v39, %v5240_v18  ;;  %v4117_v43 = vpop.f32.mrb[15].mxu1  ;;  %4126 = vmatprep.mubr.msk.f32.mxu0 %vm283_vm1, %v1396_v37  ;;  %v4483_v37 = vpack.c.bf16 %v3646_v36, %v3645_v32  ;;  %v3648_v39 = vld [vmem:[%s5934_s5 + $0x108] sm:$0xff] }
 0xc84   :  { %v3649_v43 = vld [vmem:[%s5934_s5 + $0x110] sm:$0xff] }
 0xc85   :  { %4127 = vmatmul.mubr.msk.f32.vlgmr.msra.gmra.mrb[30].mxu0 %vm283_vm1, %v1399_v40  ;;  %v4487_v40 = vpack.c.bf16 %v3648_v39, %v3647_v38  ;;  %v4491_v45 = vpack.c.bf16 %v3650_v44, %v3649_v43 }
 0xc86   :  { %4142 = vmatprep.mubr.msk.bf16.mxu0 %vm173_vm0, %v5403_v29 }
 0xd58   :  { %v4128_v53 = vpop.f32.mrb[30].mxu0 }
 0xd59   :  { %v1489_v54 = vadd.f32 %v4128_v53, %v1410_v52  ;;  %v1483_v41 = vpop.f32.mrb[31].mxu0 }
 0xd5a   :  { %v1484_v28 = vadd.f32 %v1483_v41, %v1410_v52 }
 0xd5b   :  { %v3627_v55 = vmul.f32 -1.442695, %v1489_v54 }
 0xd5c   :  { %v3626_v42 = vmul.f32 -1.442695, %v1484_v28 }
 0xd5d   :  { %4763 = vpow2.f32 %v3627_v55  ;;  %v5502_v55 = vadd.f32 %v5355_v34, %v5301_v48 }
 0xd5e   :  { %4765 = vpow2.f32 %v3626_v42  ;;  %v1687_v42 = vpop.permute.xlu0 %1686 }
 0xd67   :  { %v4764_v27 = vpop.eup %4763 }
 0xd68   :  { %v4766_v56 = vpop.eup %4765  ;;  %v1499_v57 = vadd.f32 1.0, %v4764_v27  ;;  %v1689_v27 = vpop.permute.xlu1 %1688 }
 0xd69   :  { %v1498_v58 = vadd.f32 1.0, %v4766_v56 }
 0xd6a   :  { %4767 = vrcp.f32 %v1499_v57 }
 0xd6b   :  { %4769 = vrcp.f32 %v1498_v58 }
 0xd74   :  { %v4768_v61 = vpop.eup %4767 }
 0xd75   :  { %v4770_v62 = vpop.eup %4769  ;;  %v1505_v5 = vmul.f32 %v4768_v61, %v1489_v54 }
 0xd76   :  { %v1504_v0 = vmul.f32 %v4770_v62, %v1484_v28  ;;  %v5496_v28 = vadd.f32 %v5357_v35, %v5295_v47 }
 0xd78   :  { %4137 = vmatprep.mubr.msk.f32.mxu1 %vm283_vm1, %v1504_v0 }
 0xd79   :  { %4138 = vmatmul.mubr.msk.f32.vlgmr.msra.gmra.mrb[10].mxu1 %vm283_vm1, %v1505_v5 }
 0xd7a   :  { %4474 = vmatpush3.bf16.msra.mxu1 %v4471_v19  ;;  %v5534_v19 = vld [vmem:[%s5936_s7 + $0x10] sm:$0x3f] }
 0xd7b   :  { %4476 = vmatprep.subr.bf16.mxu1 %v4475_v30  ;;  %v1722_v20 = vrot.slane %v5534_v19, %v5016_v9 }
 0xd7e   :  { %4478 = vmatpush3.bf16.msra.mxu1 %v4475_v30 }
 0xd7f   :  { %4480 = vmatprep.subr.bf16.mxu1 %v4479_v25 }
 0xd82   :  { %4482 = vmatpush3.bf16.msra.mxu1 %v4479_v25 }
 0xd83   :  { %4484 = vmatprep.subr.bf16.mxu1 %v4483_v37 }
 0xd86   :  { %4486 = vmatpush3.bf16.msra.mxu1 %v4483_v37 }
 0xd87   :  { %4488 = vmatprep.subr.bf16.mxu1 %v4487_v40 }
 0xd8a   :  { %4490 = vmatpush3.bf16.msra.mxu1 %v4487_v40 }
 0xd8b   :  { %4492 = vmatprep.subr.bf16.mxu1 %v4491_v45 }
 0xd8e   :  { %4494 = vmatpush3.bf16.msra.mxu1 %v4491_v45 }
 0xe4c   :  { %v4139_v17 = vpop.f32.mrb[10].mxu1 }
 0xe4d   :  { %v1593_v10 = vadd.f32 %v4139_v17, %v1514_v8  ;;  %v1587_v59 = vpop.f32.mrb[11].mxu1 }
 0xe4e   :  { %v1588_v2 = vadd.f32 %v1587_v59, %v1514_v8  ;;  %v3659_v59 = vld [vmem:[%s5935_s6 + $0xc0] sm:$0xff] }
 0xe4f   :  { %v5426_v23 = vadd.f32 %v1593_v10, %v5240_v18  ;;  %v5443_v18 = vld [vmem:[%s5930_s1 + $0x10] sm:$0xff]  }
 0xe50   :  { %v5429_v12 = vadd.f32 %v1588_v2, %v5243_v21  ;;  %v5450_v21 = vld [vmem:[%s5930_s1 + $0x18] sm:$0xff]   ;;  %v3660_v2 = vld [vmem:[%s5935_s6 + $0xc8] sm:$0xff] }
 0xe52   :  { %v1600_v13 = vpack.c.bf16 %v5426_v23, %v5429_v12 }
 0xe54   :  { %4140 = vmatprep.subr.bf16.mxu0 %v1600_v13 }
 0xe55   :  { %4141 = vmatpush3.bf16.msra.mxu0 %v1600_v13  ;;  %v4495_v13 = vpack.c.bf16 %v3660_v2, %v3659_v59 }
 0xe57   :  { %4496 = vmatprep.subr.bf16.mxu0 %v4495_v13 }
 0xe58   :  { %4143 = vmatmul.mubr.msk.bf16.vlgmr.msra.gmra.mrb[32].mxu0 %vm173_vm0, %v5436_v63 }
 0xe59   :  { %4146 = vmatprep.mubr.msk.bf16.mxu0 %vm173_vm0, %v5443_v18  ;;  %4498 = vmatpush3.bf16.msra.mxu0 %v4495_v13 }
 0xe5a   :  { %4500 = vmatprep.subr.bf16.mxu0 %v4499_v26 }
 0xe5d   :  { %4502 = vmatpush3.bf16.msra.mxu0 %v4499_v26 }
 0xe5e   :  { %4194 = vmatprep.subr.bf16.mxu0 %v4926_v60 }
 0xe60   :  { %4147 = vmatmul.mubr.msk.bf16.gmra.mrb[36].mxu0 %vm173_vm0, %v5450_v21 }
 0xf2b   :  { %v4144_v46 = vpop.f32.mrb[32].mxu0 }
 0xf2c   :  { %v1635_v49 = vpop.f32.mrb[33].mxu0 }
 0xf2d   :  { %v4145_v50 = vpop.f32.mrb[34].mxu0 }
 0xf2e   :  { %v1638_v51 = vpop.f32.mrb[35].mxu0 }
 0xf33   :  { %v4148_v52 = vpop.f32.mrb[36].mxu0 }
 0xf34   :  { %v1651_v53 = vpop.f32.mrb[37].mxu0 }
 0xf35   :  { %1670 = vrot.lane.b32.xlu0 %v1651_v53, %s4925_s20  ;;  %v4149_v54 = vpop.f32.mrb[38].mxu0 }
 0xf36   :  { %v1654_v41 = vpop.f32.mrb[39].mxu0 }
 0xf37   :  { %1672 = vrot.lane.b32.xlu1 %v1654_v41, %s4925_s20 }
 0xf39   :  { %1674 = vrot.lane.b32.xlu0 %v4148_v52, %s4925_s20 }
 0xf3b   :  { %1676 = vrot.lane.b32.xlu1 %v4149_v54, %s4925_s20 }
 0xf3d   :  { %1690 = vrot.lane.b32.xlu0 %v5496_v28, %s4924_s30 }
 0xf3f   :  { %1692 = vrot.lane.b32.xlu1 %v5502_v55, %s4924_s30 }
 0xfa7   :  { %v1671_v56 = vpop.permute.xlu0 %1670 }
 0xfa8   :  { %v1698_v57 = vsel %vm283_vm1, %v1635_v49, %v1671_v56 }
 0xfa9   :  { %v1673_v58 = vpop.permute.xlu1 %1672  ;;  %v1702_v61 = vsel %vm288_vm2, %v1698_v57, %v1687_v42 }
 0xfaa   :  { %v1699_v47 = vsel %vm283_vm1, %v1638_v51, %v1673_v58  ;;  %4174 = vmatprep.mubr.msk.f32.mxu1 %vm309_vm3, %v1702_v61 }
 0xfab   :  { %v1703_v35 = vsel %vm288_vm2, %v1699_v47, %v1689_v27  ;;  %v1675_v62 = vpop.permute.xlu0 %1674 }
 0xfac   :  { %4175 = vmatmul.mubr.msk.f32.vlgmr.msra.gmra.mrb[16].mxu1 %vm309_vm3, %v1703_v35  ;;  %v1700_v34 = vsel %vm283_vm1, %v4144_v46, %v1675_v62  ;;  %v1856_v35 = vrot.slane %v5534_v19, %v5047_v15 }
 0xfad   :  { %v1677_v48 = vpop.permute.xlu1 %1676 }
 0xfae   :  { %v1701_v8 = vsel %vm283_vm1, %v4145_v50, %v1677_v48 }
 0xfaf   :  { %v1691_v0 = vpop.permute.xlu0 %1690 }
 0xfb0   :  { %v1704_v5 = vsel %vm288_vm2, %v1700_v34, %v1691_v0 }
 0xfb1   :  { %4177 = vmatprep.mubr.msk.f32.mxu1 %vm309_vm3, %v1704_v5  ;;  %v1693_v17 = vpop.permute.xlu1 %1692 }
 0xfb2   :  { %v1705_v10 = vsel %vm288_vm2, %v1701_v8, %v1693_v17 }
 0xfb3   :  { %4178 = vmatmul.mubr.msk.f32.gmra.mrb[18].mxu1 %vm309_vm3, %v1705_v10 }
0x107f   :  { %v4176_v30 = vpop.f32.mrb[16].mxu1 }
0x1080   :  { %v1807_v31 = vadd.f32 %v4176_v30, %v1722_v20  ;;  %v1801_v24 = vpop.f32.mrb[17].mxu1 }
0x1081   :  { %v1802_v25 = vadd.f32 %v1801_v24, %v1722_v20 }
0x1082   :  { %v3656_v32 = vmul.f32 -1.442695, %v1807_v31 }
0x1083   :  { %v3655_v36 = vmul.f32 -1.442695, %v1802_v25 }
0x1084   :  { %4771 = vpow2.f32 %v3656_v32 }
0x1085   :  { %4773 = vpow2.f32 %v3655_v36  ;;  %v1989_v36 = vrot.slane %v5534_v19, %v5148_v4 }
0x1086   :  { %v4179_v37 = vpop.f32.mrb[18].mxu1 }
0x1087   :  { %v1817_v38 = vadd.f32 %v4179_v37, %v1722_v20  ;;  %v1811_v39 = vpop.f32.mrb[19].mxu1 }
0x1088   :  { %v1812_v40 = vadd.f32 %v1811_v39, %v1722_v20 }
0x1089   :  { %v3658_v43 = vmul.f32 -1.442695, %v1817_v38 }
0x108a   :  { %v3657_v44 = vmul.f32 -1.442695, %v1812_v40 }
0x108b   :  { %4775 = vpow2.f32 %v3658_v43 }
0x108c   :  { %4777 = vpow2.f32 %v3657_v44 }
0x108e   :  { %v4772_v45 = vpop.eup %4771 }
0x108f   :  { %v4774_v46 = vpop.eup %4773  ;;  %v1833_v49 = vadd.f32 1.0, %v4772_v45 }
0x1090   :  { %v1832_v50 = vadd.f32 1.0, %v4774_v46 }
0x1091   :  { %4779 = vrcp.f32 %v1833_v49 }
0x1092   :  { %4781 = vrcp.f32 %v1832_v50 }
0x1095   :  { %v4776_v51 = vpop.eup %4775 }
0x1096   :  { %v4778_v52 = vpop.eup %4777  ;;  %v1835_v53 = vadd.f32 1.0, %v4776_v51 }
0x1097   :  { %v1834_v54 = vadd.f32 1.0, %v4778_v52 }
0x1098   :  { %4783 = vrcp.f32 %v1835_v53 }
0x1099   :  { %4785 = vrcp.f32 %v1834_v54 }
0x109b   :  { %v4780_v41 = vpop.eup %4779 }
0x109c   :  { %v4782_v42 = vpop.eup %4781  ;;  %v1845_v56 = vmul.f32 %v4780_v41, %v1807_v31 }
0x109d   :  { %v1844_v27 = vmul.f32 %v4782_v42, %v1802_v25 }
0x109f   :  { %4188 = vmatprep.mubr.msk.f32.mxu0 %vm283_vm1, %v1844_v27  ;;  %v2009_v27 = vrot.slane %v5534_v19, %v5169_v33 }
0x10a0   :  { %4189 = vmatmul.mubr.msk.f32.vlgmr.msra.gmra.mrb[40].mxu0 %vm283_vm1, %v1845_v56 }
0x10a2   :  { %v4784_v57 = vpop.eup %4783 }
0x10a3   :  { %v4786_v58 = vpop.eup %4785  ;;  %v1847_v47 = vmul.f32 %v4784_v57, %v1817_v38 }
0x10a4   :  { %v1846_v61 = vmul.f32 %v4786_v58, %v1812_v40 }
0x10a6   :  { %4191 = vmatprep.mubr.msk.f32.mxu0 %vm283_vm1, %v1846_v61 }
0x10a7   :  { %4192 = vmatmul.mubr.msk.f32.gmra.mrb[42].mxu0 %vm283_vm1, %v1847_v47 }
0x10a8   :  { %4198 = vmatprep.mubr.msk.bf16.mxu0 %vm4927_vm4, %v4926_v60 }
0x1173   :  { %v4190_v62 = vpop.f32.mrb[40].mxu0 }
0x1174   :  { %v1941_v48 = vadd.f32 %v4190_v62, %v1856_v35  ;;  %v1935_v34 = vpop.f32.mrb[41].mxu0 }
0x1175   :  { %v1936_v0 = vadd.f32 %v1935_v34, %v1856_v35 }
0x1176   :  { %v3668_v5 = vmul.f32 -1.442695, %v1941_v48 }
0x1177   :  { %v3667_v8 = vmul.f32 -1.442695, %v1936_v0 }
0x1178   :  { %4787 = vpow2.f32 %v3668_v5 }
0x1179   :  { %4789 = vpow2.f32 %v3667_v8 }
0x117a   :  { %v4193_v17 = vpop.f32.mrb[42].mxu0 }
0x117b   :  { %v1951_v10 = vadd.f32 %v4193_v17, %v1856_v35  ;;  %v1945_v59 = vpop.f32.mrb[43].mxu0 }
0x117c   :  { %v1946_v2 = vadd.f32 %v1945_v59, %v1856_v35 }
0x117d   :  { %v3670_v13 = vmul.f32 -1.442695, %v1951_v10 }
0x117e   :  { %v3669_v7 = vmul.f32 -1.442695, %v1946_v2 }
0x117f   :  { %4791 = vpow2.f32 %v3670_v13 }
0x1180   :  { %4793 = vpow2.f32 %v3669_v7 }
0x1182   :  { %v4788_v14 = vpop.eup %4787 }
0x1183   :  { %v4790_v26 = vpop.eup %4789  ;;  %v1967_v20 = vadd.f32 1.0, %v4788_v14 }
0x1184   :  { %v1966_v30 = vadd.f32 1.0, %v4790_v26 }
0x1185   :  { %4795 = vrcp.f32 %v1967_v20 }
0x1186   :  { %4797 = vrcp.f32 %v1966_v30 }
0x1189   :  { %v4792_v31 = vpop.eup %4791 }
0x118a   :  { %v4794_v24 = vpop.eup %4793  ;;  %v1969_v25 = vadd.f32 1.0, %v4792_v31 }
0x118b   :  { %v1968_v32 = vadd.f32 1.0, %v4794_v24 }
0x118c   :  { %4799 = vrcp.f32 %v1969_v25 }
0x118d   :  { %4801 = vrcp.f32 %v1968_v32 }
0x118f   :  { %v4796_v37 = vpop.eup %4795 }
0x1190   :  { %v4798_v38 = vpop.eup %4797  ;;  %v5548_v39 = vmul.f32 %v4796_v37, %v1941_v48  ;;  %v3677_v37 = vld [vmem:[%s5935_s6 + $0xe8] sm:$0xff] }
0x1191   :  { %v5550_v40 = vmul.f32 %v4798_v38, %v1936_v0 }
0x1192   :  { %v1991_v43 = vmul.f32 %v1989_v36, %v5548_v39  ;;  %v1983_v32 = vadd.f32 %v5548_v39, %v5373_v22 }
0x1193   :  { %v1990_v44 = vmul.f32 %v1989_v36, %v5550_v40  ;;  %v1982_v31 = vadd.f32 %v5550_v40, %v5367_v11 }
0x1194   :  { %v1997_v45 = vsel %vm283_vm1, %v1991_v43, 0.0 }
0x1195   :  { %1998 = vadd.xlane.f32.xlu1 %v1997_v45  ;;  %v1994_v46 = vsel %vm283_vm1, %v1990_v44, 0.0 }
0x1196   :  { %v4800_v49 = vpop.eup %4799  ;;  %1995 = vadd.xlane.f32.xlu0 %v1994_v46 }
0x1197   :  { %v4802_v50 = vpop.eup %4801  ;;  %v5556_v51 = vmul.f32 %v4800_v49, %v1951_v10 }
0x1198   :  { %v5558_v52 = vmul.f32 %v4802_v50, %v1946_v2 }
0x1199   :  { %v1993_v41 = vmul.f32 %v1989_v36, %v5556_v51 }
0x119a   :  { %v1992_v53 = vmul.f32 %v1989_v36, %v5558_v52  ;;  %v3676_v36 = vld [vmem:[%s5935_s6 + $0xe0] sm:$0xff] }
0x119b   :  { %v2003_v42 = vsel %vm283_vm1, %v1993_v41, 0.0  ;;  %v4503_v11 = vpack.c.bf16 %v3677_v37, %v3676_v36  ;;  %v5586_v41 = vld [vmem:[%s5931_s2] sm:$0xff]  }
0x119c   :  { %v2000_v54 = vsel %vm283_vm1, %v1992_v53, 0.0 }
0x119d   :  { %2001 = vadd.xlane.f32.xlu0 %v2000_v54  ;;  %4504 = vmatprep.subr.bf16.mxu1 %v4503_v11 }
0x119e   :  { %4506 = vmatpush3.bf16.msra.mxu1 %v4503_v11 }
0x11a1   :  { %2004 = vadd.xlane.f32.xlu0 %v2003_v42 }
0x1222   :  { %v1999_v56 = vpop.xlane.xlu1 %1998 }
0x1223   :  { %v2011_v57 = vadd.f32 %v2009_v27, %v1999_v56  ;;  %v1996_v58 = vpop.xlane.xlu0 %1995 }
0x1224   :  { %v2010_v61 = vadd.f32 %v2009_v27, %v1996_v58 }
0x1225   :  { %v3672_v47 = vmul.f32 -1.442695, %v2011_v57 }
0x1226   :  { %v3671_v35 = vmul.f32 -1.442695, %v2010_v61 }
0x1227   :  { %4803 = vpow2.f32 %v3672_v47 }
0x1228   :  { %4805 = vpow2.f32 %v3671_v35  ;;  %v3684_v35 = vld [vmem:[%s5935_s6 + $0x100] sm:$0xff] }
0x122a   :  { %v2002_v62 = vpop.xlane.xlu0 %2001 }
0x122b   :  { %v2012_v48 = vadd.f32 %v2009_v27, %v2002_v62  ;;  %v3685_v62 = vld [vmem:[%s5935_s6 + $0x108] sm:$0xff] }
0x122d   :  { %v3673_v34 = vmul.f32 -1.442695, %v2012_v48  ;;  %v4511_v48 = vpack.c.bf16 %v3685_v62, %v3684_v35 }
0x122e   :  { %v2005_v0 = vpop.xlane.xlu0 %2004 }
0x122f   :  { %4807 = vpow2.f32 %v3673_v34  ;;  %v2013_v5 = vadd.f32 %v2009_v27, %v2005_v0  ;;  %v3686_v34 = vld [vmem:[%s5935_s6 + $0x110] sm:$0xff]  ;;  %v3687_v0 = vld [vmem:[%s5935_s6 + $0x118] sm:$0xff] }
0x1231   :  { %v4804_v8 = vpop.eup %4803  ;;  %v3674_v17 = vmul.f32 -1.442695, %v2013_v5  ;;  %v2113_v5 = vrot.slane %v5534_v19, %v5050_v16 }
0x1232   :  { %v4806_v10 = vpop.eup %4805  ;;  %v2027_v59 = vadd.f32 1.0, %v4804_v8 }
0x1233   :  { %v2026_v2 = vadd.f32 1.0, %v4806_v10  ;;  %4809 = vpow2.f32 %v3674_v17 }
0x1234   :  { %4811 = vrcp.f32 %v2027_v59 }
0x1235   :  { %4813 = vrcp.f32 %v2026_v2 }
0x1239   :  { %v4808_v13 = vpop.eup %4807 }
0x123a   :  { %v2028_v7 = vadd.f32 1.0, %v4808_v13 }
0x123c   :  { %4815 = vrcp.f32 %v2028_v7 }
0x123d   :  { %v4810_v14 = vpop.eup %4809 }
0x123e   :  { %v4812_v26 = vpop.eup %4811  ;;  %v2029_v20 = vadd.f32 1.0, %v4810_v14 }
0x123f   :  { %v4814_v30 = vpop.eup %4813  ;;  %2045 = vperm.xlu0 %4618, %v4812_v26  }
0x1240   :  { %4817 = vrcp.f32 %v2029_v20  ;;  %2040 = vperm.xlu1 %4619, %v4814_v30  }
0x1243   :  { %2389 = vrot.lane.b32.xlu0 %v1982_v31, %s4924_s30 }
0x1246   :  { %v4816_v24 = vpop.eup %4815 }
0x1247   :  { %2050 = vperm.xlu1 %4619, %v4816_v24  }
0x124a   :  { %v4818_v25 = vpop.eup %4817 }
0x124b   :  { %2055 = vperm.xlu1 %4619, %v4818_v25  }
0x124f   :  { %2391 = vrot.lane.b32.xlu1 %v1983_v32, %s4924_s30  ;;  %v2217_v32 = vrot.slane %v5534_v19, %v5235_v1  ;;  %v3697_v19 = vld [vmem:[%s5934_s5 + $0x130] sm:$0xff] }
0x12be   :  { %v2046_v38 = vpop.permute.xlu0 %2045 }
0x12bf   :  { %v2059_v43 = vmul.f32 %v2046_v38, %v5548_v39  ;;  %v2041_v44 = vpop.permute.xlu1 %2040  ;;  %v3678_v39 = vld [vmem:[%s5935_s6 + $0xf0] sm:$0xff] }
0x12c0   :  { %v2058_v45 = vmul.f32 %v2041_v44, %v5550_v40  ;;  %v3679_v40 = vld [vmem:[%s5935_s6 + $0xf8] sm:$0xff] }
0x12c1   :  { %v4507_v42 = vpack.c.bf16 %v3679_v40, %v3678_v39  ;;  %v3703_v39 = vld [vmem:[%s5934_s5 + $0x160] sm:$0xff]  ;;  %v3704_v40 = vld [vmem:[%s5934_s5 + $0x168] sm:$0xff] }
0x12c2   :  { %v2062_v22 = vpack.c.bf16 %v2059_v43, %v2058_v45 }
0x12c3   :  { %4508 = vmatprep.subr.bf16.mxu1 %v4507_v42 }
0x12c4   :  { %4195 = vmatpush3.bf16.msra.mxu0 %v2062_v22  ;;  %4510 = vmatpush3.bf16.msra.mxu1 %v4507_v42  ;;  %v4535_v42 = vpack.c.bf16 %v3704_v40, %v3703_v39 }
0x12c5   :  { %4196 = vmatprep.subr.bf16.mxu0 %v4926_v60 }
0x12c6   :  { %v2051_v46 = vpop.permute.xlu1 %2050 }
0x12c7   :  { %v2060_v50 = vmul.f32 %v2051_v46, %v5558_v52  ;;  %v3700_v46 = vld [vmem:[%s5934_s5 + $0x148] sm:$0xff] }
0x12ca   :  { %v2056_v49 = vpop.permute.xlu1 %2055 }
0x12cb   :  { %v2061_v53 = vmul.f32 %v2056_v49, %v5556_v51 }
0x12cd   :  { %v2063_v54 = vpack.c.bf16 %v2061_v53, %v2060_v50  ;;  %v3701_v50 = vld [vmem:[%s5934_s5 + $0x150] sm:$0xff]  ;;  %v3702_v53 = vld [vmem:[%s5934_s5 + $0x158] sm:$0xff] }
0x12cf   :  { %4197 = vmatpush3.bf16.msra.mxu0 %v2063_v54  ;;  %v4531_v54 = vpack.c.bf16 %v3702_v53, %v3701_v50 }
0x12d0   :  { %4512 = vmatprep.subr.bf16.mxu0 %v4511_v48 }
0x12d2   :  { %4199 = vmatmul.mubr.msk.bf16.vlgmr.msra.gmra.mrb[44].mxu0 %vm283_vm1, %v5586_v41 }
0x12d3   :  { %4514 = vmatpush3.bf16.msra.mxu0 %v4511_v48 }
0x13a5   :  { %v2098_v27 = vpop.f32.mrb[44].mxu0 }
0x13a6   :  { %v2099_v56 = vadd.f32 %v2098_v27, %v5429_v12  ;;  %v4200_v57 = vpop.f32.mrb[45].mxu0  ;;  %v3705_v27 = vld [vmem:[%s5934_s5 + $0x170] sm:$0xff] }
0x13a7   :  { %v2101_v58 = vpop.f32.mrb[46].mxu0 }
0x13a8   :  { %v2102_v61 = vadd.f32 %v2101_v58, %v5426_v23  ;;  %v4201_v47 = vpop.f32.mrb[47].mxu0  ;;  %4210 = vmatprep.mubr.msk.f32.mxu1 %vm283_vm1, %v2099_v56  ;;  %v3706_v56 = vld [vmem:[%s5934_s5 + $0x178] sm:$0xff] }
0x13a9   :  { %v4539_v57 = vpack.c.bf16 %v3706_v56, %v3705_v27 }
0x13aa   :  { %4211 = vmatmul.mubr.msk.f32.vlgmr.msra.gmra.mrb[20].mxu1 %vm283_vm1, %v2102_v61 }
0x13ab   :  { %4226 = vmatprep.mubr.msk.bf16.mxu1 %vm173_vm0, %v5403_v29  ;;  %v4515_v29 = vpack.c.bf16 %v3687_v0, %v3686_v34 }
0x13ad   :  { %4516 = vmatprep.subr.bf16.mxu0 %v4515_v29 }
0x13ae   :  { %4518 = vmatpush3.bf16.msra.mxu0 %v4515_v29  ;;  %v1984_v29 = vadd.f32 %v5558_v52, %v5496_v28 }
0x147d   :  { %v4212_v8 = vpop.f32.mrb[20].mxu1 }
0x147e   :  { %v2192_v17 = vadd.f32 %v4212_v8, %v2113_v5  ;;  %v2186_v10 = vpop.f32.mrb[21].mxu1  ;;  %v2390_v8 = vpop.permute.xlu0 %2389 }
0x147f   :  { %v2187_v59 = vadd.f32 %v2186_v10, %v2113_v5  ;;  %v1985_v5 = vadd.f32 %v5556_v51, %v5502_v55 }
0x1480   :  { %v3683_v2 = vmul.f32 -1.442695, %v2192_v17 }
0x1481   :  { %v3682_v13 = vmul.f32 -1.442695, %v2187_v59 }
0x1482   :  { %4819 = vpow2.f32 %v3683_v2 }
0x1483   :  { %4821 = vpow2.f32 %v3682_v13 }
0x148c   :  { %v4820_v7 = vpop.eup %4819 }
0x148d   :  { %v4822_v14 = vpop.eup %4821  ;;  %v2202_v26 = vadd.f32 1.0, %v4820_v7 }
0x148e   :  { %v2201_v20 = vadd.f32 1.0, %v4822_v14 }
0x148f   :  { %4823 = vrcp.f32 %v2202_v26 }
0x1490   :  { %4825 = vrcp.f32 %v2201_v20 }
0x1499   :  { %v4824_v30 = vpop.eup %4823 }
0x149a   :  { %v4826_v31 = vpop.eup %4825  ;;  %v2208_v25 = vmul.f32 %v4824_v30, %v2192_v17  ;;  %v2392_v17 = vpop.permute.xlu1 %2391 }
0x149b   :  { %v2207_v24 = vmul.f32 %v4826_v31, %v2187_v59 }
0x149d   :  { %4221 = vmatprep.mubr.msk.f32.mxu0 %vm283_vm1, %v2207_v24  ;;  %v3715_v24 = vld [vmem:[%s5935_s6 + $0x120] sm:$0xff] }
0x149e   :  { %4222 = vmatmul.mubr.msk.f32.vlgmr.msra.gmra.mrb[48].mxu0 %vm283_vm1, %v2208_v25  ;;  %v3716_v25 = vld [vmem:[%s5935_s6 + $0x128] sm:$0xff] }
0x1571   :  { %v4223_v36 = vpop.f32.mrb[48].mxu0 }
0x1572   :  { %v2296_v37 = vadd.f32 %v4223_v36, %v2217_v32  ;;  %v2290_v11 = vpop.f32.mrb[49].mxu0  ;;  %v3717_v36 = vld [vmem:[%s5935_s6 + $0x130] sm:$0xff] }
0x1573   :  { %v2291_v38 = vadd.f32 %v2290_v11, %v2217_v32  ;;  %v4543_v32 = vpack.c.bf16 %v3716_v25, %v3715_v24 }
0x1574   :  { %v5621_v43 = vadd.f32 %v2296_v37, %v5426_v23  ;;  %v3695_v23 = vld [vmem:[%s5934_s5 + $0x120] sm:$0xff]  ;;  %v3718_v37 = vld [vmem:[%s5935_s6 + $0x138] sm:$0xff] }
0x1575   :  { %v5624_v44 = vadd.f32 %v2291_v38, %v5429_v12  ;;  %v3696_v12 = vld [vmem:[%s5934_s5 + $0x128] sm:$0xff]  ;;  %v4547_v11 = vpack.c.bf16 %v3718_v37, %v3717_v36  ;;  %v5708_v38 = vld [vmem:[%s5936_s7 + $0x18] sm:$0x3f] }
0x1576   :  { %v4519_v22 = vpack.c.bf16 %v3696_v12, %v3695_v23  ;;  %v2688_v36 = vrot.slane %v5708_v38, %v5148_v4 }
0x1577   :  { %v2303_v45 = vpack.c.bf16 %v5621_v43, %v5624_v44 }
0x1578   :  { %4520 = vmatprep.subr.bf16.mxu0 %v4519_v22 }
0x1579   :  { %4224 = vmatprep.subr.bf16.mxu1 %v2303_v45  ;;  %4522 = vmatpush3.bf16.msra.mxu0 %v4519_v22 }
0x157a   :  { %4225 = vmatpush3.bf16.msra.mxu1 %v2303_v45  ;;  %v2425_v45 = vrot.slane %v5708_v38, %v5016_v9 }
0x157b   :  { %4544 = vmatprep.subr.bf16.mxu1 %v4543_v32 }
0x157d   :  { %4227 = vmatmul.mubr.msk.bf16.vlgmr.msra.gmra.mrb[24].mxu1 %vm173_vm0, %v5436_v63  ;;  %v3698_v63 = vld [vmem:[%s5934_s5 + $0x138] sm:$0xff] }
0x157e   :  { %4230 = vmatprep.mubr.msk.bf16.mxu1 %vm173_vm0, %v5443_v18  ;;  %v4523_v18 = vpack.c.bf16 %v3698_v63, %v3697_v19  ;;  %4546 = vmatpush3.bf16.msra.mxu1 %v4543_v32 }
0x157f   :  { %4548 = vmatprep.subr.bf16.mxu1 %v4547_v11 }
0x1580   :  { %4524 = vmatprep.subr.bf16.mxu0 %v4523_v18 }
0x1581   :  { %4526 = vmatpush3.bf16.msra.mxu0 %v4523_v18 }
0x1582   :  { %4550 = vmatpush3.bf16.msra.mxu1 %v4547_v11 }
0x1583   :  { %4278 = vmatprep.subr.bf16.mxu1 %v4926_v60 }
0x1585   :  { %4231 = vmatmul.mubr.msk.bf16.gmra.mrb[28].mxu1 %vm173_vm0, %v5450_v21  ;;  %v3699_v21 = vld [vmem:[%s5934_s5 + $0x140] sm:$0xff] }
0x1586   :  { %v4527_v49 = vpack.c.bf16 %v3700_v46, %v3699_v21 }
0x1588   :  { %4528 = vmatprep.subr.bf16.mxu0 %v4527_v49 }
0x1589   :  { %4530 = vmatpush3.bf16.msra.mxu0 %v4527_v49 }
0x158a   :  { %4532 = vmatprep.subr.bf16.mxu0 %v4531_v54 }
0x158d   :  { %4534 = vmatpush3.bf16.msra.mxu0 %v4531_v54 }
0x158e   :  { %4536 = vmatprep.subr.bf16.mxu0 %v4535_v42 }
0x1591   :  { %4538 = vmatpush3.bf16.msra.mxu0 %v4535_v42 }
0x1592   :  { %4540 = vmatprep.subr.bf16.mxu0 %v4539_v57 }
0x1595   :  { %4542 = vmatpush3.bf16.msra.mxu0 %v4539_v57 }
0x1650   :  { %v4228_v58 = vpop.f32.mrb[24].mxu1 }
0x1651   :  { %v2338_v61 = vpop.f32.mrb[25].mxu1 }
0x1652   :  { %v4229_v47 = vpop.f32.mrb[26].mxu1 }
0x1653   :  { %v2341_v35 = vpop.f32.mrb[27].mxu1 }
0x1658   :  { %v4232_v62 = vpop.f32.mrb[28].mxu1 }
0x1659   :  { %v2354_v48 = vpop.f32.mrb[29].mxu1 }
0x165a   :  { %2373 = vrot.lane.b32.xlu0 %v2354_v48, %s4925_s20  ;;  %v4233_v34 = vpop.f32.mrb[30].mxu1 }
0x165b   :  { %v2357_v0 = vpop.f32.mrb[31].mxu1 }
0x165c   :  { %2375 = vrot.lane.b32.xlu1 %v2357_v0, %s4925_s20 }
0x165e   :  { %2377 = vrot.lane.b32.xlu0 %v4232_v62, %s4925_s20 }
0x1660   :  { %2379 = vrot.lane.b32.xlu1 %v4233_v34, %s4925_s20 }
0x1662   :  { %2393 = vrot.lane.b32.xlu0 %v1984_v29, %s4924_s30 }
0x1664   :  { %2395 = vrot.lane.b32.xlu1 %v1985_v5, %s4924_s30  ;;  %v2559_v5 = vrot.slane %v5708_v38, %v5047_v15 }
0x16cc   :  { %v2374_v10 = vpop.permute.xlu0 %2373 }
0x16cd   :  { %v2401_v59 = vsel %vm283_vm1, %v2338_v61, %v2374_v10 }
0x16ce   :  { %v2376_v2 = vpop.permute.xlu1 %2375  ;;  %v2405_v13 = vsel %vm288_vm2, %v2401_v59, %v2390_v8 }
0x16cf   :  { %v2402_v7 = vsel %vm283_vm1, %v2341_v35, %v2376_v2  ;;  %4258 = vmatprep.mubr.msk.f32.mxu0 %vm309_vm3, %v2405_v13 }
0x16d0   :  { %v2406_v28 = vsel %vm288_vm2, %v2402_v7, %v2392_v17  ;;  %v2378_v52 = vpop.permute.xlu0 %2377 }
0x16d1   :  { %4259 = vmatmul.mubr.msk.f32.vlgmr.msra.gmra.mrb[50].mxu0 %vm309_vm3, %v2406_v28  ;;  %v2403_v51 = vsel %vm283_vm1, %v4228_v58, %v2378_v52 }
0x16d2   :  { %v2380_v55 = vpop.permute.xlu1 %2379 }
0x16d3   :  { %v2404_v20 = vsel %vm283_vm1, %v4229_v47, %v2380_v55 }
0x16d4   :  { %v2394_v14 = vpop.permute.xlu0 %2393 }
0x16d5   :  { %v2407_v26 = vsel %vm288_vm2, %v2403_v51, %v2394_v14 }
0x16d6   :  { %4261 = vmatprep.mubr.msk.f32.mxu0 %vm309_vm3, %v2407_v26  ;;  %v2396_v30 = vpop.permute.xlu1 %2395 }
0x16d7   :  { %v2408_v31 = vsel %vm288_vm2, %v2404_v20, %v2396_v30 }
0x16d8   :  { %4262 = vmatmul.mubr.msk.f32.gmra.mrb[52].mxu0 %vm309_vm3, %v2408_v31 }
0x17a4   :  { %v4260_v23 = vpop.f32.mrb[50].mxu0 }
0x17a5   :  { %v2510_v12 = vadd.f32 %v4260_v23, %v2425_v45  ;;  %v2504_v19 = vpop.f32.mrb[51].mxu0 }
0x17a6   :  { %v2505_v22 = vadd.f32 %v2504_v19, %v2425_v45 }
0x17a7   :  { %v3712_v63 = vmul.f32 -1.442695, %v2510_v12 }
0x17a8   :  { %v3711_v18 = vmul.f32 -1.442695, %v2505_v22 }
0x17a9   :  { %4827 = vpow2.f32 %v3712_v63 }
0x17aa   :  { %4829 = vpow2.f32 %v3711_v18 }
0x17ab   :  { %v4263_v21 = vpop.f32.mrb[52].mxu0 }
0x17ac   :  { %v2520_v46 = vadd.f32 %v4263_v21, %v2425_v45  ;;  %v2514_v49 = vpop.f32.mrb[53].mxu0 }
0x17ad   :  { %v2515_v50 = vadd.f32 %v2514_v49, %v2425_v45 }
0x17ae   :  { %v3714_v53 = vmul.f32 -1.442695, %v2520_v46 }
0x17af   :  { %v3713_v54 = vmul.f32 -1.442695, %v2515_v50 }
0x17b0   :  { %4831 = vpow2.f32 %v3714_v53 }
0x17b1   :  { %4833 = vpow2.f32 %v3713_v54 }
0x17b3   :  { %v4828_v39 = vpop.eup %4827 }
0x17b4   :  { %v4830_v40 = vpop.eup %4829  ;;  %v2536_v42 = vadd.f32 1.0, %v4828_v39 }
0x17b5   :  { %v2535_v9 = vadd.f32 1.0, %v4830_v40  ;;  %v2708_v40 = vrot.slane %v5708_v38, %v5169_v33 }
0x17b6   :  { %4835 = vrcp.f32 %v2536_v42 }
0x17b7   :  { %4837 = vrcp.f32 %v2535_v9 }
0x17ba   :  { %v4832_v27 = vpop.eup %4831 }
0x17bb   :  { %v4834_v56 = vpop.eup %4833  ;;  %v2538_v57 = vadd.f32 1.0, %v4832_v27 }
0x17bc   :  { %v2537_v58 = vadd.f32 1.0, %v4834_v56 }
0x17bd   :  { %4839 = vrcp.f32 %v2538_v57 }
0x17be   :  { %4841 = vrcp.f32 %v2537_v58 }
0x17c0   :  { %v4836_v61 = vpop.eup %4835 }
0x17c1   :  { %v4838_v47 = vpop.eup %4837  ;;  %v2548_v62 = vmul.f32 %v4836_v61, %v2510_v12 }
0x17c2   :  { %v2547_v35 = vmul.f32 %v4838_v47, %v2505_v22 }
0x17c4   :  { %4272 = vmatprep.mubr.msk.f32.mxu1 %vm283_vm1, %v2547_v35 }
0x17c5   :  { %4273 = vmatmul.mubr.msk.f32.vlgmr.msra.gmra.mrb[22].mxu1 %vm283_vm1, %v2548_v62 }
0x17c7   :  { %v4840_v48 = vpop.eup %4839 }
0x17c8   :  { %v4842_v34 = vpop.eup %4841  ;;  %v2550_v29 = vmul.f32 %v4840_v48, %v2520_v46 }
0x17c9   :  { %v2549_v0 = vmul.f32 %v4842_v34, %v2515_v50 }
0x17cb   :  { %4275 = vmatprep.mubr.msk.f32.mxu1 %vm283_vm1, %v2549_v0 }
0x17cc   :  { %4276 = vmatmul.mubr.msk.f32.gmra.mrb[32].mxu1 %vm283_vm1, %v2550_v29 }
0x17cd   :  { %4282 = vmatprep.mubr.msk.bf16.mxu1 %vm4927_vm4, %v4926_v60 }
0x1898   :  { %v4274_v8 = vpop.f32.mrb[22].mxu1 }
0x1899   :  { %v2644_v17 = vadd.f32 %v4274_v8, %v2559_v5  ;;  %v2638_v10 = vpop.f32.mrb[23].mxu1 }
0x189a   :  { %v2639_v59 = vadd.f32 %v2638_v10, %v2559_v5 }
0x189b   :  { %v3724_v2 = vmul.f32 -1.442695, %v2644_v17 }
0x189c   :  { %v3723_v13 = vmul.f32 -1.442695, %v2639_v59 }
0x189d   :  { %4843 = vpow2.f32 %v3724_v2 }
0x189e   :  { %4845 = vpow2.f32 %v3723_v13 }
0x189f   :  { %v4277_v7 = vpop.f32.mrb[32].mxu1 }
0x18a0   :  { %v2654_v28 = vadd.f32 %v4277_v7, %v2559_v5  ;;  %v2648_v52 = vpop.f32.mrb[33].mxu1 }
0x18a1   :  { %v2649_v55 = vadd.f32 %v2648_v52, %v2559_v5 }
0x18a2   :  { %v3726_v51 = vmul.f32 -1.442695, %v2654_v28 }
0x18a3   :  { %v3725_v14 = vmul.f32 -1.442695, %v2649_v55 }
0x18a4   :  { %4847 = vpow2.f32 %v3726_v51  ;;  %v3195_v51 = vld [vmem:[%s5933_s4 + $0x8] sm:$0xff] }
0x18a5   :  { %4849 = vpow2.f32 %v3725_v14  ;;  %vm3277_vm6 = vcmp.gt.f32.partialorder %v3195_v51, 0.0 }
0x18a7   :  { %v4844_v26 = vpop.eup %4843 }
0x18a8   :  { %v4846_v20 = vpop.eup %4845  ;;  %v2670_v30 = vadd.f32 1.0, %v4844_v26  ;;  %v5751_v26 = vsel %vm3277_vm6, 1, %v4923_v3 }
0x18a9   :  { %v2669_v15 = vadd.f32 1.0, %v4846_v20  ;;  %v3732_v20 = vld [vmem:[%s5935_s6 + $0x140] sm:$0xff] }
0x18aa   :  { %4851 = vrcp.f32 %v2670_v30  ;;  %v3733_v30 = vld [vmem:[%s5935_s6 + $0x148] sm:$0xff] }
0x18ab   :  { %4853 = vrcp.f32 %v2669_v15  ;;  %v4551_v15 = vpack.c.bf16 %v3733_v30, %v3732_v20 }
0x18ad   :  { %4552 = vmatprep.subr.bf16.mxu0 %v4551_v15 }
0x18ae   :  { %v4848_v31 = vpop.eup %4847  ;;  %4554 = vmatpush3.bf16.msra.mxu0 %v4551_v15  ;;  %v3750_v15 = vld [vmem:[%s5938_s9 + $0x20] sm:$0xff] }
0x18af   :  { %v4850_v24 = vpop.eup %4849  ;;  %v2672_v25 = vadd.f32 1.0, %v4848_v31 }
0x18b0   :  { %v2671_v32 = vadd.f32 1.0, %v4850_v24 }
0x18b1   :  { %4855 = vrcp.f32 %v2672_v25 }
0x18b2   :  { %4857 = vrcp.f32 %v2671_v32 }
0x18b4   :  { %v4852_v37 = vpop.eup %4851 }
0x18b5   :  { %v4854_v11 = vpop.eup %4853  ;;  %v5722_v45 = vmul.f32 %v4852_v37, %v2644_v17 }
0x18b6   :  { %v5724_v23 = vmul.f32 %v4854_v11, %v2639_v59  ;;  %v3194_v59 = vld [vmem:[%s5933_s4] sm:$0xff] }
0x18b7   :  { %v2690_v12 = vmul.f32 %v2688_v36, %v5722_v45  ;;  %vm3276_vm5 = vcmp.gt.f32.partialorder %v3194_v59, 0.0 }
0x18b8   :  { %v2689_v19 = vmul.f32 %v2688_v36, %v5724_v23  ;;  %v5744_v52 = vsel %vm3276_vm5, 1, %v4923_v3 }
0x18b9   :  { %v2696_v22 = vsel %vm283_vm1, %v2690_v12, 0.0 }
0x18ba   :  { %2697 = vadd.xlane.f32.xlu1 %v2696_v22  ;;  %v2693_v63 = vsel %vm283_vm1, %v2689_v19, 0.0 }
0x18bb   :  { %v4856_v18 = vpop.eup %4855  ;;  %2694 = vadd.xlane.f32.xlu0 %v2693_v63 }
0x18bc   :  { %v4858_v21 = vpop.eup %4857  ;;  %v5730_v46 = vmul.f32 %v4856_v18, %v2654_v28 }
0x18bd   :  { %v5732_v49 = vmul.f32 %v4858_v21, %v2649_v55 }
0x18be   :  { %v2692_v54 = vmul.f32 %v2688_v36, %v5730_v46 }
0x18bf   :  { %v2691_v50 = vmul.f32 %v2688_v36, %v5732_v49 }
0x18c0   :  { %v2702_v39 = vsel %vm283_vm1, %v2692_v54, 0.0 }
0x18c1   :  { %v2699_v53 = vsel %vm283_vm1, %v2691_v50, 0.0 }
0x18c2   :  { %2700 = vadd.xlane.f32.xlu0 %v2699_v53  ;;  %v3741_v53 = vld [vmem:[%s5935_s6 + $0x168] sm:$0xff] }
0x18c6   :  { %2703 = vadd.xlane.f32.xlu0 %v2702_v39  ;;  %v3742_v39 = vld [vmem:[%s5935_s6 + $0x170] sm:$0xff] }
0x1947   :  { %v2698_v42 = vpop.xlane.xlu1 %2697 }
0x1948   :  { %v2710_v9 = vadd.f32 %v2708_v40, %v2698_v42  ;;  %v2695_v27 = vpop.xlane.xlu0 %2694 }
0x1949   :  { %v2709_v56 = vadd.f32 %v2708_v40, %v2695_v27  ;;  %v3001_v27 = vld [vmem:[%s5938_s9 + $0x8] sm:$0xff] }
0x194a   :  { %v3728_v57 = vmul.f32 -1.442695, %v2710_v9  ;;  %v3000_v9 = vld [vmem:[%s5938_s9] sm:$0xff] }
0x194b   :  { %v3727_v58 = vmul.f32 -1.442695, %v2709_v56  ;;  %v4567_v56 = vpack.c.bf16 %v3001_v27, %v3000_v9 }
0x194c   :  { %4859 = vpow2.f32 %v3728_v57  ;;  %v2812_v57 = vrot.slane %v5708_v38, %v5050_v16  ;;  %v3002_v16 = vld [vmem:[%s5938_s9 + $0x10] sm:$0xff] }
0x194d   :  { %4861 = vpow2.f32 %v3727_v58 }
0x194f   :  { %v2701_v61 = vpop.xlane.xlu0 %2700 }
0x1950   :  { %v2711_v47 = vadd.f32 %v2708_v40, %v2701_v61 }
0x1952   :  { %v3729_v35 = vmul.f32 -1.442695, %v2711_v47 }
0x1953   :  { %v2704_v62 = vpop.xlane.xlu0 %2703 }
0x1954   :  { %4863 = vpow2.f32 %v3729_v35  ;;  %v2712_v48 = vadd.f32 %v2708_v40, %v2704_v62  ;;  %v3743_v40 = vld [vmem:[%s5935_s6 + $0x178] sm:$0xff] }
0x1955   :  { %v4563_v42 = vpack.c.bf16 %v3743_v40, %v3742_v39 }
0x1956   :  { %v4860_v34 = vpop.eup %4859  ;;  %v3730_v0 = vmul.f32 -1.442695, %v2712_v48 }
0x1957   :  { %v4862_v29 = vpop.eup %4861  ;;  %v2726_v5 = vadd.f32 1.0, %v4860_v34 }
0x1958   :  { %v2725_v8 = vadd.f32 1.0, %v4862_v29  ;;  %4865 = vpow2.f32 %v3730_v0 }
0x1959   :  { %4867 = vrcp.f32 %v2726_v5 }
0x195a   :  { %4869 = vrcp.f32 %v2725_v8 }
0x195e   :  { %v4864_v17 = vpop.eup %4863 }
0x195f   :  { %v2727_v10 = vadd.f32 1.0, %v4864_v17 }
0x1961   :  { %4871 = vrcp.f32 %v2727_v10 }
0x1962   :  { %v4866_v2 = vpop.eup %4865 }
0x1963   :  { %v4868_v13 = vpop.eup %4867  ;;  %v2728_v7 = vadd.f32 1.0, %v4866_v2  ;;  %v3003_v2 = vld [vmem:[%s5938_s9 + $0x18] sm:$0xff] }
0x1964   :  { %v4870_v28 = vpop.eup %4869  ;;  %2744 = vperm.xlu0 %4618, %v4868_v13   ;;  %v4571_v13 = vpack.c.bf16 %v3003_v2, %v3002_v16 }
0x1965   :  { %4873 = vrcp.f32 %v2728_v7  ;;  %2739 = vperm.xlu1 %4619, %v4870_v28   ;;  %v2916_v7 = vrot.slane %v5708_v38, %v5235_v1  ;;  %v3751_v38 = vld [vmem:[%s5938_s9 + $0x28] sm:$0xff] }
0x1968   :  { %3281 = vperm.xlu0 %4618, %v5744_v52  }
0x196b   :  { %v4872_v55 = vpop.eup %4871 }
0x196c   :  { %2749 = vperm.xlu1 %4619, %v4872_v55  }
0x196f   :  { %v4874_v14 = vpop.eup %4873 }
0x1970   :  { %2754 = vperm.xlu1 %4619, %v4874_v14  }
0x1974   :  { %3284 = vperm.xlu1 %4619, %v5751_v26  }
0x19e3   :  { %v2745_v31 = vpop.permute.xlu0 %2744 }
0x19e4   :  { %v2758_v24 = vmul.f32 %v2745_v31, %v5722_v45  ;;  %v2740_v25 = vpop.permute.xlu1 %2739  ;;  %v3734_v45 = vld [vmem:[%s5935_s6 + $0x150] sm:$0xff]  ;;  %v4575_v31 = vpack.c.bf16 %v3751_v38, %v3750_v15  ;;  %v3339_v15 = vld [vmem:[%s5939_s10 + $0x18] sm:$0xff] }
0x19e5   :  { %v2757_v3 = vmul.f32 %v2740_v25, %v5724_v23  ;;  %v3735_v23 = vld [vmem:[%s5935_s6 + $0x158] sm:$0xff]  ;;  %v4928_v25 = vmov 1  }
0x19e6   :  { %v4555_v22 = vpack.c.bf16 %v3735_v23, %v3734_v45  ;;  %4621 = vset.pattern.permute.xlu1 %v4928_v25  ;;  %4620 = vset.pattern.permute.xlu0 %v4928_v25  ;;  %v3343_v25 = vld [vmem:[%s5939_s10 + $0x38] sm:$0xff] }
0x19e7   :  { %v2761_v32 = vpack.c.bf16 %v2758_v24, %v2757_v3  ;;  %3305 = vperm.xlu1 %4621, %v5751_v26   ;;  %3302 = vperm.xlu0 %4620, %v5744_v52   ;;  %v3193_v3 = vld [vmem:[%s5932_s3] sm:$0x3] }
0x19e8   :  { %4556 = vmatprep.subr.bf16.mxu0 %v4555_v22 }
0x19e9   :  { %4279 = vmatpush3.bf16.msra.mxu1 %v2761_v32  ;;  %4558 = vmatpush3.bf16.msra.mxu0 %v4555_v22  ;;  %v3270_v32 = vsel %vm3269_vm7, %v3193_v3, 0.0 }
0x19ea   :  { %4280 = vmatprep.subr.bf16.mxu1 %v4926_v60  ;;  %4568 = vmatprep.subr.bf16.mxu0 %v4567_v56 }
0x19eb   :  { %v2750_v36 = vpop.permute.xlu1 %2749 }
0x19ec   :  { %v2759_v11 = vmul.f32 %v2750_v36, %v5732_v49  ;;  %v5833_v36 = vld [vmem:[%s5937_s8] sm:$0x7f] }
0x19ef   :  { %v2755_v37 = vpop.permute.xlu1 %2754 }
0x19f0   :  { %v2760_v12 = vmul.f32 %v2755_v37, %v5730_v46  ;;  %v3007_v37 = vrot.slane %v5833_v36, %v5235_v1  ;;  %v4929_v1 = vmov 0.0|0.0  }
0x19f2   :  { %v2762_v19 = vpack.c.bf16 %v2760_v12, %v2759_v11 }
0x19f4   :  { %4281 = vmatpush3.bf16.msra.mxu1 %v2762_v19 }
0x19f7   :  { %4283 = vmatmul.mubr.msk.bf16.vlgmr.msra.gmra.mrb[36].mxu1 %vm283_vm1, %v5586_v41  ;;  %v3740_v41 = vld [vmem:[%s5935_s6 + $0x160] sm:$0xff] }
0x19f8   :  { %v4559_v54 = vpack.c.bf16 %v3741_v53, %v3740_v41  ;;  %v3285_v41 = vpop.permute.xlu1 %3284  ;;  %v3282_v53 = vpop.permute.xlu0 %3281 }
0x19f9   :  { %vm3287_vm9 = vcmp.eq.s32.totalorder %v3285_v41, 1  ;;  %vm3286_vm11 = vcmp.eq.s32.totalorder %v3282_v53, 1 }
0x19fa   :  { %4560 = vmatprep.subr.bf16.mxu1 %v4559_v54 }
0x19fb   :  { %4562 = vmatpush3.bf16.msra.mxu1 %v4559_v54  ;;  %v3111_v54 = vrot.slane %v5833_v36, %v5148_v4 }
0x19fc   :  { %4564 = vmatprep.subr.bf16.mxu1 %v4563_v42 }
0x19ff   :  { %4566 = vmatpush3.bf16.msra.mxu1 %v4563_v42 }
0x1a00   :  { %4576 = vmatprep.subr.bf16.mxu1 %v4575_v31 }
0x1a0b   :  { %3271 = vadd.xlane.f32.xlu1 %v3270_v32  ;;  %v3344_v32 = vld [vmem:[%s5939_s10 + $0x40] sm:$0xff] }
0x1a66   :  { %v3306_v39 = vpop.permute.xlu1 %3305  ;;  %v3303_v40 = vpop.permute.xlu0 %3302 }
0x1a67   :  { %vm3308_vm8 = vcmp.eq.s32.totalorder %v3306_v39, 1  ;;  %vm3307_vm10 = vcmp.eq.s32.totalorder %v3303_v40, 1  ;;  %v3759_v39 = vld [vmem:[%s5938_s9 + $0x48] sm:$0xff] }
0x1aca   :  { %v2797_v63 = vpop.f32.mrb[36].mxu1 }
0x1acb   :  { %v2798_v18 = vadd.f32 %v2797_v63, %v5624_v44  ;;  %v4284_v21 = vpop.f32.mrb[37].mxu1 }
0x1acc   :  { %v2800_v46 = vpop.f32.mrb[38].mxu1 }
0x1acd   :  { %v2801_v49 = vadd.f32 %v2800_v46, %v5621_v43  ;;  %v4285_v50 = vpop.f32.mrb[39].mxu1  ;;  %4294 = vmatprep.mubr.msk.f32.mxu0 %vm283_vm1, %v2798_v18 }
0x1acf   :  { %4295 = vmatmul.mubr.msk.f32.vlgmr.msra.gmra.mrb[54].mxu0 %vm283_vm1, %v2801_v49 }
0x1ad0   :  { %4570 = vmatpush3.bf16.msra.mxu0 %v4567_v56 }
0x1ad1   :  { %4572 = vmatprep.subr.bf16.mxu0 %v4571_v13 }
0x1ad4   :  { %4574 = vmatpush3.bf16.msra.mxu0 %v4571_v13 }
0x1ad5   :  { %4583 = vmatprep.subr.bf16.mxu0 %v4929_v1 }
0x1ba2   :  { %v4296_v58 = vpop.f32.mrb[54].mxu0 }
0x1ba3   :  { %v2891_v61 = vadd.f32 %v4296_v58, %v2812_v57  ;;  %v2885_v47 = vpop.f32.mrb[55].mxu0 }
0x1ba4   :  { %v2886_v35 = vadd.f32 %v2885_v47, %v2812_v57 }
0x1ba5   :  { %v3739_v62 = vmul.f32 -1.442695, %v2891_v61 }
0x1ba6   :  { %v3738_v48 = vmul.f32 -1.442695, %v2886_v35 }
0x1ba7   :  { %4875 = vpow2.f32 %v3739_v62 }
0x1ba8   :  { %4877 = vpow2.f32 %v3738_v48 }
0x1bb1   :  { %v4876_v34 = vpop.eup %4875 }
0x1bb2   :  { %v4878_v0 = vpop.eup %4877  ;;  %v2901_v29 = vadd.f32 1.0, %v4876_v34 }
0x1bb3   :  { %v2900_v5 = vadd.f32 1.0, %v4878_v0 }
0x1bb4   :  { %4879 = vrcp.f32 %v2901_v29 }
0x1bb5   :  { %4881 = vrcp.f32 %v2900_v5 }
0x1bbe   :  { %v4880_v8 = vpop.eup %4879 }
0x1bbf   :  { %v4882_v17 = vpop.eup %4881  ;;  %v2907_v59 = vmul.f32 %v4880_v8, %v2891_v61 }
0x1bc0   :  { %v2906_v10 = vmul.f32 %v4882_v17, %v2886_v35 }
0x1bc2   :  { %4305 = vmatprep.mubr.msk.f32.mxu1 %vm283_vm1, %v2906_v10 }
0x1bc3   :  { %4306 = vmatmul.mubr.msk.f32.vlgmr.msra.gmra.mrb[34].mxu1 %vm283_vm1, %v2907_v59 }
0x1bc4   :  { %4578 = vmatpush3.bf16.msra.mxu1 %v4575_v31  ;;  %v3340_v31 = vld [vmem:[%s5939_s10 + $0x20] sm:$0xff] }
0x1c96   :  { %v4307_v28 = vpop.f32.mrb[34].mxu1 }
0x1c97   :  { %v2995_v55 = vadd.f32 %v4307_v28, %v2916_v7  ;;  %v2989_v51 = vpop.f32.mrb[35].mxu1 }
0x1c98   :  { %v2990_v14 = vadd.f32 %v2989_v51, %v2916_v7 }
0x1c99   :  { %v2999_v30 = vadd.f32 %v2995_v55, %v5621_v43  ;;  %v3752_v43 = vld [vmem:[%s5938_s9 + $0x30] sm:$0xff] }
0x1c9a   :  { %v2998_v20 = vadd.f32 %v2990_v14, %v5624_v44  ;;  %v3753_v44 = vld [vmem:[%s5938_s9 + $0x38] sm:$0xff]  ;;  %v3336_v14 = vld [vmem:[%s5939_s10] sm:$0xff] }
0x1c9b   :  { %v4579_v24 = vpack.c.bf16 %v3753_v44, %v3752_v43  ;;  %v3341_v43 = vld [vmem:[%s5939_s10 + $0x28] sm:$0xff] }
0x1c9c   :  { %4316 = vmatprep.mubr.msk.f32.mxu0 %vm283_vm1, %v2998_v20  ;;  %v3338_v20 = vld [vmem:[%s5939_s10 + $0x10] sm:$0xff]  ;;  %v4593_v44 = vpack.c.bf16 %v3341_v43, %v3340_v31 }
0x1c9d   :  { %4317 = vmatmul.mubr.msk.f32.vlgmr.msra.gmra.mrb[56].mxu0 %vm283_vm1, %v2999_v30  ;;  %4580 = vmatprep.subr.bf16.mxu1 %v4579_v24  ;;  %v4590_v38 = vpack.c.bf16 %v3339_v15, %v3338_v20 }
0x1c9e   :  { %4334 = vmatprep.mubr.msk.f32.mxu0 %vm4927_vm4, %v4926_v60  ;;  %4582 = vmatpush3.bf16.msra.mxu1 %v4579_v24  ;;  %v3342_v24 = vld [vmem:[%s5939_s10 + $0x30] sm:$0xff] }
0x1c9f   :  { %4586 = vmatprep.subr.bf16.mxu1 %v4929_v1 }
0x1d70   :  { %v4318_v11 = vpop.f32.mrb[56].mxu0 }
0x1d71   :  { %v3086_v12 = vadd.f32 %v4318_v11, %v3007_v37  ;;  %v3080_v26 = vpop.f32.mrb[57].mxu0 }
0x1d72   :  { %v3081_v19 = vadd.f32 %v3080_v26, %v3007_v37  ;;  %v3345_v37 = vld [vmem:[%s5939_s10 + $0x48] sm:$0xff] }
0x1d73   :  { %v3749_v52 = vmul.f32 -1.442695, %v3086_v12  ;;  %v4599_v11 = vpack.c.bf16 %v3345_v37, %v3344_v32 }
0x1d74   :  { %v3748_v45 = vmul.f32 -1.442695, %v3081_v19 }
0x1d75   :  { %4883 = vpow2.f32 %v3749_v52  ;;  %v3347_v52 = vld [vmem:[%s5939_s10 + $0x58] sm:$0xff] }
0x1d76   :  { %4885 = vpow2.f32 %v3748_v45 }
0x1d7f   :  { %v4884_v23 = vpop.eup %4883 }
0x1d80   :  { %v4886_v22 = vpop.eup %4885  ;;  %v3096_v63 = vadd.f32 1.0, %v4884_v23 }
0x1d81   :  { %v3095_v18 = vadd.f32 1.0, %v4886_v22 }
0x1d82   :  { %4887 = vrcp.f32 %v3096_v63 }
0x1d83   :  { %4889 = vrcp.f32 %v3095_v18 }
0x1d8c   :  { %v4888_v21 = vpop.eup %4887 }
0x1d8d   :  { %v4890_v46 = vpop.eup %4889  ;;  %v3102_v50 = vmul.f32 %v4888_v21, %v3086_v12  ;;  %v3272_v12 = vpop.xlane.xlu1 %3271 }
0x1d8e   :  { %v3101_v49 = vmul.f32 %v4890_v46, %v3081_v19  ;;  %v3273_v26 = vmax.f32 %v3272_v12, 1.0  ;;  %v3346_v19 = vld [vmem:[%s5939_s10 + $0x50] sm:$0xff]  ;;  %vm3322_vm13 = vcmp.gt.f32.partialorder %v3272_v12, 0.0 }
0x1d8f   :  { %v4602_v45 = vpack.c.bf16 %v3347_v52, %v3346_v19 }
0x1d90   :  { %4327 = vmatprep.mubr.msk.f32.mxu1 %vm283_vm1, %v3101_v49  ;;  %4891 = vrcp.f32 %v3273_v26 }
0x1d91   :  { %4328 = vmatmul.mubr.msk.f32.vlgmr.msra.gmra.mrb[40].mxu1 %vm283_vm1, %v3102_v50 }
0x1d92   :  { %4361 = vmatprep.mubr.msk.f32.mxu1 %vm4927_vm4, %v4926_v60 }
0x1d9a   :  { %v4892_v23 = vpop.eup %4891 }
0x1e64   :  { %v4329_v42 = vpop.f32.mrb[40].mxu1 }
0x1e65   :  { %v3190_v9 = vadd.f32 %v4329_v42, %v3111_v54  ;;  %v3184_v27 = vpop.f32.mrb[41].mxu1  ;;  %v3760_v42 = vld [vmem:[%s5938_s9 + $0x50] sm:$0xff] }
0x1e66   :  { %v3185_v56 = vadd.f32 %v3184_v27, %v3111_v54  ;;  %v3758_v54 = vld [vmem:[%s5938_s9 + $0x40] sm:$0xff] }
0x1e67   :  { %v3289_v57 = vsel %vm3287_vm9, %v3190_v9, -1e+30  ;;  %v3310_v58 = vsel %vm3308_vm8, %v3190_v9, -1e+30  ;;  %v4605_v40 = vpack.c.bf16 %v3759_v39, %v3758_v54 }
0x1e68   :  { %v3291_v61 = vsel %vm283_vm1, %v3289_v57, -inf  ;;  %v4584_v47 = vpack.c.bf16 %v3190_v9, %v3185_v56  ;;  %v3288_v35 = vsel %vm3286_vm11, %v3185_v56, -1e+30  ;;  %v3312_v62 = vsel %vm283_vm1, %v3310_v58, -inf  ;;  %v3761_v9 = vld [vmem:[%s5938_s9 + $0x58] sm:$0xff]  ;;  %s4899_s9 = scalar_lea.vmem %s3519_s18, 32 }
0x1e69   :  { %v3290_v4 = vsel %vm283_vm1, %v3288_v35, -inf  ;;  %v3309_v48 = vsel %vm3307_vm10, %v3185_v56, -1e+30  ;;  %v4608_v27 = vpack.c.bf16 %v3761_v9, %v3760_v42  ;;  %v3351_v56 = vrot.slane %v5833_v36, %v5169_v33  ;;  %p4900_p0 = scmp.ne.s32.totalorder %s3519_s18, %s4899_s9  ;;  %p4905_p2 = scmp.lt.s32.totalorder %s4899_s9, %s4899_s9 }
0x1e6a   :  { %v3292_v34 = vmax.f32 %v3290_v4, %v3291_v61  ;;  %v3311_v0 = vsel %vm283_vm1, %v3309_v48, -inf  ;;  %4585 = vmatpush3.bf16.msra.mxu0 %v4584_v47 }
0x1e6b   :  { %v3313_v29 = vmax.f32 %v3311_v0, %v3312_v62  ;;  %4604 = vmatprep.subr.bf16.mxu0 %v4929_v1  ;;  %p4906_p3 = por %p4905_p2, %p4904_p1 }
0x1e6c   :  { %v3293_v5 = vrot.slane %v3292_v34, 4 }
0x1e6d   :  { %v3314_v8 = vrot.slane %v3313_v29, 4  ;;  %4335 = vmatmul.mubr.msk.f32.vlgmr.msra.gmra.mrb[58].mxu0 %vm173_vm0, %v3193_v3  ;;  %v4596_v3 = vpack.c.bf16 %v3343_v25, %v3342_v24  ;;  %p4907_p4 = pnand %p4906_p3, %p4900_p0 }
0x1e6e   :  { %v3294_v17 = vmax.f32 %v3292_v34, %v3293_v5  ;;  %4372 = vmatprep.mubr.msk.f32.mxu0 %vm4927_vm4, %v4926_v60  ;;  %v3337_v60 = vld [vmem:[%s5939_s10 + $0x8] sm:$0xff]  ;;  %4606 = vmatpush3.bf16.msra.mxu0 %v4605_v40 }
0x1e6f   :  { %v3315_v10 = vmax.f32 %v3313_v29, %v3314_v8  ;;  %v4587_v30 = vpack.c.bf16 %v3337_v60, %v3336_v14  ;;  %4607 = vmatprep.subr.bf16.mxu0 %v4929_v1 }
0x1e70   :  { %v3295_v59 = vrot.slane %v3294_v17, 2 }
0x1e71   :  { %v3316_v16 = vrot.slane %v3315_v10, 2  ;;  %4588 = vmatpush3.bf16.msra.mxu1 %v4587_v30 }
0x1e72   :  { %v3296_v2 = vmax.f32 %v3294_v17, %v3295_v59  ;;  %4589 = vmatprep.subr.bf16.mxu1 %v4929_v1  ;;  %4609 = vmatpush3.bf16.msra.mxu0 %v4608_v27 }
0x1e73   :  { %v3317_v13 = vmax.f32 %v3315_v10, %v3316_v16 }
0x1e74   :  { %v3297_v7 = vrot.slane %v3296_v2, 1 }
0x1e75   :  { %v3318_v28 = vrot.slane %v3317_v13, 1  ;;  %4591 = vmatpush3.bf16.msra.mxu1 %v4590_v38 }
0x1e76   :  { %v3298_v55 = vmax.f32 %v3296_v2, %v3297_v7  ;;  %4592 = vmatprep.subr.bf16.mxu1 %v4929_v1 }
0x1e77   :  { %v3319_v51 = vmax.f32 %v3317_v13, %v3318_v28 }
0x1e78   :  { %3300 = vst.msk [vmem:[#allocation2] sm:$0x1] %vm3299_vm12, %v3298_v55 }
0x1e79   :  { %3320 = vst.msk [vmem:[#allocation2 + $0x1] sm:$0x1] %vm3299_vm12, %v3319_v51  ;;  %4594 = vmatpush3.bf16.msra.mxu1 %v4593_v44 }
0x1e7a   :  { %4595 = vmatprep.subr.bf16.mxu1 %v4929_v1 }
0x1e7d   :  { %4597 = vmatpush3.bf16.msra.mxu1 %v4596_v3 }
0x1e7e   :  { %4598 = vmatprep.subr.bf16.mxu1 %v4929_v1 }
0x1e80   :  { %v3321_v21 = vld [vmem:[#allocation2] sm:$0x3] }
0x1e81   :  { %4600 = vmatpush3.bf16.msra.mxu1 %v4599_v11  ;;  %v3325_v46 = vsel %vm3322_vm13, %v3321_v21, 0.0 }
0x1e82   :  { %4601 = vmatprep.subr.bf16.mxu1 %v4929_v1  ;;  %v3507_v1 = vsub.s32 6, %v5005_v6 }
0x1e84   :  { %v3508_v62 = vrot.slane %v5833_v36, %v3507_v1 }
0x1e85   :  { %4603 = vmatpush3.bf16.msra.mxu1 %v4602_v45 }
0x1f40   :  { %v3265_v22 = vpop.f32.mrb[58].mxu0 }
0x1f41   :  { %v3275_v63 = vmul.f32 %v4892_v23, %v3265_v22  ;;  %v4336_v18 = vpop.f32.mrb[59].mxu0 }
0x1f43   :  { %3327 = vrot.lane.b32.xlu0 %v3275_v63, %s4925_s20 }
0x1f47   :  { %3331 = vrot.lane.b32.xlu0 %v3325_v46, %s4924_s30 }
0x1fb5   :  { %v3328_v49 = vpop.permute.xlu0 %3327 }
0x1fb6   :  { %v3334_v50 = vsel %vm283_vm1, %v3265_v22, %v3328_v49 }
0x1fb9   :  { %v3332_v41 = vpop.permute.xlu0 %3331 }
0x1fba   :  { %v3335_v53 = vsel %vm288_vm2, %v3334_v50, %v3332_v41 }
0x1fbb   :  { %4362 = vmatmul.mubr.msk.f32.vlgmr.msra.gmra.mrb[42].mxu1 %vm309_vm3, %v3335_v53 }
0x208e   :  { %v3421_v57 = vpop.f32.mrb[42].mxu1 }
0x208f   :  { %v3422_v58 = vadd.f32 %v3421_v57, %v3351_v56  ;;  %v4363_v61 = vpop.f32.mrb[43].mxu1 }
0x2091   :  { %v3425_v47 = vmul.f32 0.999995, %v3422_v58 }
0x2093   :  { %v3426_v35 = vmax.f32 %v3425_v47, 0.0 }
0x2095   :  { %4373 = vmatmul.mubr.msk.f32.vlgmr.msra.gmra.mrb[60].mxu0 %vm283_vm1, %v3426_v35 }
0x2168   :  { %v3501_v4 = vpop.f32.mrb[60].mxu0 }
0x2169   :  { %v3509_v48 = vadd.f32 %v3508_v62, %v3501_v4  ;;  %v4374_v34 = vpop.f32.mrb[61].mxu0 }
0x216b   :  { %3511 = vst.msk [vmem:[#allocation3] sm:$0x3] %vm3510_vm14, %v3509_v48 }
0x216c   :  { %4910 = shalt.err (!%p4907_p4)
}
0x216d   :  { %s4911_s22 = scalar_lea.hbm %s5940_s11, 32 }
0x216e   :  { %p4912_p5 = scmp.ne.s32.totalorder %s5940_s11, %s4911_s22  ;;  %p4915_p6 = scmp.lt.u32.totalorder %s4911_s22, %s5940_s11 }
0x2170   :  { %p4917_p7 = pnand %p4915_p6, %p4912_p5 }
0x2172   :  { %4920 = shalt.err (!%p4917_p7)
}
0x2173   :  { %3521 = dma.vmem_to_hbm [thread:$0]  %s3519_s18, 32, %s5940_s11, [#allocation4]  }
0x2174   :  { %4921 = dma.done.wait [#allocation4], 32  }
0x2175   :  { %4922 = vsyncadd [#allocation4], 4294967264 }
0x2176   :  { %3525 = vsyncpa [#allocation4], 1 }

</bundles_post_ra>
